<compile_context>
chip_gen: v7x
topology: tpu7x:2x2x1
jax: 0.10.0
libtpu: 0.0.40
codegen_flags: <defaults>
</compile_context>

<pallas_src>
import functools

import jax
import jax.numpy as jnp
import numpy as np
from jax import lax
from jax.experimental import pallas as pl
from jax.experimental.pallas import tpu as pltpu

_HI = lax.Precision.HIGHEST


# ------------------------------ fused kernel --------------------------------

def _fused_kernel(x_ref, w_ref, b_ref, o_ref, *, K, Cin, Cout_g, Hp, Wp):
    """Conv2d(K=2, s=1) + bias + ReLU + MaxPool2d(2, 2) for one (batch, group).

    x_ref : (1, Cin, H+2p, W+2p)  zero-padded input, VMEM (W on the lane axis)
    w_ref : (Cout*Cin*K*K,)       conv weights, SMEM (scalar reads)
    b_ref : (Cout,)               bias, SMEM
    o_ref : (1, Cout_g, Hp, Wp)   pooled NCHW output block
    """
    g = pl.program_id(1)
    CW = 2 * Wp            # conv columns that feed the pool (floor mode)

    # 0/1 column-pair selection matrices: exact data movement on the MXU.
    #   (rp @ sel_c_even)[:, w] = rp[:, 2w]   (rp @ sel_c_odd)[:, w] = rp[:, 2w+1]
    ccol = lax.broadcasted_iota(jnp.int32, (CW, Wp), 0)
    pcol = lax.broadcasted_iota(jnp.int32, (CW, Wp), 1)
    sel_c_even = jnp.where(ccol == 2 * pcol, 1.0, 0.0).astype(jnp.float32)
    sel_c_odd = jnp.where(ccol == 2 * pcol + 1, 1.0, 0.0).astype(jnp.float32)

    def sdot(a, b):        # f32 matmul for the 0/1 selections (keep it exact)
        return jnp.dot(a, b, preferred_element_type=jnp.float32, precision=_HI)

    # Chunks of <= 8 pooled rows bound the accumulators' live ranges.
    # TODO(synk): switch to lax.fori_loop over chunks for very tall images.
    for r0 in range(0, Hp, 8):
        rows = min(8, Hp - r0)
        HCc = 2 * rows     # conv rows in this chunk

        # 0/1 row-pair selection matrices for this chunk:
        #   (sel_r_even @ acc)[r, :] = acc[2r, :]
        prow = lax.broadcasted_iota(jnp.int32, (rows, HCc), 0)
        crow = lax.broadcasted_iota(jnp.int32, (rows, HCc), 1)
        sel_r_even = jnp.where(crow == 2 * prow, 1.0, 0.0).astype(jnp.float32)
        sel_r_odd = jnp.where(crow == 2 * prow + 1, 1.0, 0.0).astype(jnp.float32)

        # Load each (cin, kh) input slab once per chunk (shared by all output
        # channels).  x0 / x1 are the kw=0 / kw=1 column alignments (static
        # slices of the lane axis -- no wrapper parity split, no scratch copy).
        x0, x1 = [], []
        for ci in range(Cin):
            for kh in range(K):
                rb = 2 * r0 + kh
                slab = x_ref[0, ci, rb:rb + HCc, 0:CW + 1]   # (HCc, CW+1)
                x0.append(slab[:, 0:CW])
                x1.append(slab[:, 1:CW + 1])

        for cg in range(Cout_g):
            c = g * Cout_g + cg                              # global out channel
            acc = jnp.zeros((HCc, CW), jnp.float32)
            t = 0
            for ci in range(Cin):
                for kh in range(K):
                    wb = ((c * Cin + ci) * K + kh) * K       # SMEM scalar index
                    acc = acc + x0[t] * w_ref[wb] + x1[t] * w_ref[wb + 1]
                    t += 1
            # 2x2 max pool: pairwise row max then pairwise column max via the
            # selection matmuls.  Bias (constant over the window) and ReLU
            # (monotone) commute with max, so apply them once at the end.
            rp = jnp.maximum(sdot(sel_r_even, acc), sdot(sel_r_odd, acc))
            pooled = jnp.maximum(sdot(rp, sel_c_even), sdot(rp, sel_c_odd))
            pooled = jnp.maximum(pooled + b_ref[c], 0.0)
            # NOTE: Wp lanes wide (2 KiB per batch at these shapes); padding the
            # last dim to 128 lanes would 16x the store traffic and force an
            # extra wrapper slice, so we store the exact NCHW block instead.
            o_ref[0, cg, r0:r0 + rows, :] = pooled


# ------------------------------ Python wrapper -------------------------------

def _round_up(a, m):
    return (a + m - 1) // m * m


def cnn2d_unit_forward(x, weight, bias, *, kernel_size=2, stride=1, padding=1):
    """Forward of Cnn2dUnit: Conv2d(k=2, s=1, p=padding) -> ReLU -> MaxPool2d(2).

    x: (N, Cin, H, W) f32, weight: (Cout, Cin, K, K), bias: (Cout,).
    Returns the NCHW output like the PyTorch module.
    """
    # TODO(synk): only the module defaults are implemented (kernel_size=2 for
    # conv & pool, activation='relu', pooling='max').
    assert kernel_size == 2 and stride == 1
    N, Cin, H, W = x.shape
    Cout, Cin_w, K, _ = weight.shape
    assert K == kernel_size and Cin_w == Cin
    p = padding

    Ho = H + 2 * p - K + 1
    Wo = W + 2 * p - K + 1
    Hp, Wp = Ho // 2, Wo // 2          # MaxPool2d(2): stride = kernel = 2, floor
    assert Hp > 0 and Wp > 0
    HR, WC = H + 2 * p, W + 2 * p

    # Single wrapper pass over the input: zero padding.  NCHW is kept, so W
    # stays on the lane axis.  TODO(synk): stream x / weights as bf16 on
    # v6e/v7x to halve HBM->VMEM DMA bytes (upcast in-kernel, f32 accum).
    xp = jnp.pad(x.astype(jnp.float32), ((0, 0), (0, 0), (p, p), (p, p)))

    # Weights / bias flattened for SMEM scalar reads (1-D avoids 2-D SMEM padding).
    w_flat = weight.astype(jnp.float32).reshape(-1)   # ((co*Cin+ci)*K+kh)*K + kw
    b_flat = bias.astype(jnp.float32).reshape(-1)

    # grid = (batch, Cout groups); split Cout when batch alone cannot give the
    # v7x megacore >= 2 parallel grid steps (no effect on v5e/v6e, 1 TC).
    G = 1 if N >= 2 else (2 if Cout % 2 == 0 else 1)
    COG = Cout // G

    # VMEM budget with Mosaic-padded (8, 128) f32 tile shapes, double buffered.
    def _padded_bytes(shape):
        s = list(shape)
        s[-1] = _round_up(s[-1], 128)
        s[-2] = _round_up(s[-2], 8)
        return int(np.prod(s)) * 4

    vmem_need = (2 * _padded_bytes((1, Cin, HR, WC))
                 + 2 * _padded_bytes((1, COG, Hp, Wp)))
    # TODO(synk): add a pooled-row grid axis (with a 1-row halo stream) for
    # images whose padded per-batch slab does not fit the VMEM budget.
    assert vmem_need < 24 * 1024 * 1024, vmem_need

    kernel = functools.partial(
        _fused_kernel, K=K, Cin=Cin, Cout_g=COG, Hp=Hp, Wp=Wp)

    out = pl.pallas_call(
        kernel,
        out_shape=jax.ShapeDtypeStruct((N, Cout, Hp, Wp), jnp.float32),
        grid_spec=pltpu.PrefetchScalarGridSpec(
            num_scalar_prefetch=0,
            grid=(N, G),
            in_specs=[
                # full padded image per batch: last two block dims == full dims
                pl.BlockSpec((1, Cin, HR, WC), lambda n, g: (n, 0, 0, 0)),
                pl.BlockSpec(memory_space=pltpu.MemorySpace.SMEM),   # weights
                pl.BlockSpec(memory_space=pltpu.MemorySpace.SMEM),   # bias
            ],
            out_specs=pl.BlockSpec((1, COG, Hp, Wp), lambda n, g: (n, g, 0, 0)),
        ),
        compiler_params=pltpu.CompilerParams(
            dimension_semantics=("parallel", "parallel"),
            vmem_limit_bytes=int(min(64 * 1024 * 1024,
                                     max(32 * 1024 * 1024, 2 * vmem_need))),
        ),
    )(xp, w_flat, b_flat)

    # Kernel emits the consumer (NCHW) layout directly; nothing to undo.
    return out


# --------------------------------- reference ---------------------------------

def reference_forward(x, weight, bias, *, kernel_size=2, stride=1, padding=1):
    conv = lax.conv_general_dilated(
        x, weight, window_strides=(stride, stride),
        padding=((padding, padding), (padding, padding)),
        dimension_numbers=("NCHW", "OIHW", "NCHW"),
        precision=_HI,
    ) + bias[None, :, None, None]
    act = jnp.maximum(conv, 0.0)
    return lax.reduce_window(
        act, -jnp.inf, lax.max,
        (1, 1, kernel_size, kernel_size), (1, 1, kernel_size, kernel_size),
        "VALID")


# ------------------------------------ main ------------------------------------

if __name__ == "__main__":
    key = jax.random.PRNGKey(0)
    kx, kw, kb = jax.random.split(key, 3)

    N, Cin, H, W = 2, 4, 16, 16
    Cout, K = 8, 2

    x = jax.random.normal(kx, (N, Cin, H, W), dtype=jnp.float32)

    # deterministic Conv2d-style init (uniform +- 1/sqrt(fan_in))
    fan_in = Cin * K * K
    bound = 1.0 / np.sqrt(fan_in)
    weight = jax.random.uniform(kw, (Cout, Cin, K, K), jnp.float32, -bound, bound)
    bias = jax.random.uniform(kb, (Cout,), jnp.float32, -bound, bound)

    out = jax.block_until_ready(cnn2d_unit_forward(x, weight, bias))
    ref = jax.block_until_ready(reference_forward(x, weight, bias))

    np.testing.assert_allclose(np.asarray(out), np.asarray(ref),
                               rtol=1e-4, atol=1e-4)
    assert out.shape == (N, Cout, 8, 8), out.shape

    print("KERNEL_OK")
</pallas_src>

<mosaic_0001>
module attributes {stable_mosaic.version = 11 : i64} {
  func.func @_fused_kernel(%arg0: i32, %arg1: i32, %arg2: memref<1x4x18x18xf32, #tpu.memory_space<vmem>>, %arg3: memref<128xf32, #tpu.memory_space<smem>>, %arg4: memref<8xf32, #tpu.memory_space<smem>>, %arg5: memref<1x8x8x8xf32, #tpu.memory_space<vmem>>) attributes {dimension_semantics = [#tpu.dimension_semantics<parallel>, #tpu.dimension_semantics<parallel>], iteration_bounds = array<i64: 2, 1>, scalar_prefetch = 0 : i64, scratch_operands = 0 : i64, tpu.core_type = #tpu.core_type<tc>, window_params = [{transform_indices = @transform_0, window_bounds = array<i64: 1, 4, 18, 18>}, {transform_indices = @transform_1, window_bounds = array<i64: 128>}, {transform_indices = @transform_2, window_bounds = array<i64: 8>}, {transform_indices = @transform_3, window_bounds = array<i64: 1, 8, 8, 8>}]} {
    %0 = tpu.iota {dimensions = array<i32: 0>} : vector<16x8xi32>
    %1 = tpu.iota {dimensions = array<i32: 1>} : vector<16x8xi32>
    %c2_i32 = arith.constant 2 : i32
    %2 = vector.broadcast %c2_i32 : i32 to vector<16x8xi32>
    %3 = arith.muli %2, %1 : vector<16x8xi32>
    %4 = arith.cmpi eq, %0, %3 : vector<16x8xi32>
    %cst = arith.constant 1.000000e+00 : f32
    %cst_0 = arith.constant 0.000000e+00 : f32
    %5 = vector.broadcast %cst : f32 to vector<16x8xf32>
    %6 = vector.broadcast %cst_0 : f32 to vector<16x8xf32>
    %7 = arith.select %4, %5, %6 : vector<16x8xi1>, vector<16x8xf32>
    %c2_i32_1 = arith.constant 2 : i32
    %8 = vector.broadcast %c2_i32_1 : i32 to vector<16x8xi32>
    %9 = arith.muli %8, %1 : vector<16x8xi32>
    %c1_i32 = arith.constant 1 : i32
    %10 = vector.broadcast %c1_i32 : i32 to vector<16x8xi32>
    %11 = arith.addi %9, %10 : vector<16x8xi32>
    %12 = arith.cmpi eq, %0, %11 : vector<16x8xi32>
    %cst_2 = arith.constant 1.000000e+00 : f32
    %cst_3 = arith.constant 0.000000e+00 : f32
    %13 = vector.broadcast %cst_2 : f32 to vector<16x8xf32>
    %14 = vector.broadcast %cst_3 : f32 to vector<16x8xf32>
    %15 = arith.select %12, %13, %14 : vector<16x8xi1>, vector<16x8xf32>
    %16 = tpu.iota {dimensions = array<i32: 0>} : vector<8x16xi32>
    %17 = tpu.iota {dimensions = array<i32: 1>} : vector<8x16xi32>
    %c2_i32_4 = arith.constant 2 : i32
    %18 = vector.broadcast %c2_i32_4 : i32 to vector<8x16xi32>
    %19 = arith.muli %18, %16 : vector<8x16xi32>
    %20 = arith.cmpi eq, %17, %19 : vector<8x16xi32>
    %cst_5 = arith.constant 1.000000e+00 : f32
    %cst_6 = arith.constant 0.000000e+00 : f32
    %21 = vector.broadcast %cst_5 : f32 to vector<8x16xf32>
    %22 = vector.broadcast %cst_6 : f32 to vector<8x16xf32>
    %23 = arith.select %20, %21, %22 : vector<8x16xi1>, vector<8x16xf32>
    %c2_i32_7 = arith.constant 2 : i32
    %24 = vector.broadcast %c2_i32_7 : i32 to vector<8x16xi32>
    %25 = arith.muli %24, %16 : vector<8x16xi32>
    %c1_i32_8 = arith.constant 1 : i32
    %26 = vector.broadcast %c1_i32_8 : i32 to vector<8x16xi32>
    %27 = arith.addi %25, %26 : vector<8x16xi32>
    %28 = arith.cmpi eq, %17, %27 : vector<8x16xi32>
    %cst_9 = arith.constant 1.000000e+00 : f32
    %cst_10 = arith.constant 0.000000e+00 : f32
    %29 = vector.broadcast %cst_9 : f32 to vector<8x16xf32>
    %30 = vector.broadcast %cst_10 : f32 to vector<8x16xf32>
    %31 = arith.select %28, %29, %30 : vector<8x16xi1>, vector<8x16xf32>
    %c0 = arith.constant 0 : index
    %c0_11 = arith.constant 0 : index
    %c0_12 = arith.constant 0 : index
    %c0_13 = arith.constant 0 : index
    %32 = vector.load %arg2[%c0, %c0_11, %c0_12, %c0_13] : memref<1x4x18x18xf32, #tpu.memory_space<vmem>>, vector<1x1x16x17xf32>
    %33 = vector.shape_cast %32 : vector<1x1x16x17xf32> to vector<16x17xf32>
    %34 = vector.extract_strided_slice %33 {offsets = [0, 0], sizes = [16, 16], strides = [1, 1]} : vector<16x17xf32> to vector<16x16xf32>
    %35 = vector.extract_strided_slice %33 {offsets = [0, 1], sizes = [16, 16], strides = [1, 1]} : vector<16x17xf32> to vector<16x16xf32>
    %c0_14 = arith.constant 0 : index
    %c0_15 = arith.constant 0 : index
    %c1 = arith.constant 1 : index
    %c0_16 = arith.constant 0 : index
    %36 = vector.load %arg2[%c0_14, %c0_15, %c1, %c0_16] : memref<1x4x18x18xf32, #tpu.memory_space<vmem>>, vector<1x1x16x17xf32>
    %37 = vector.shape_cast %36 : vector<1x1x16x17xf32> to vector<16x17xf32>
    %38 = vector.extract_strided_slice %37 {offsets = [0, 0], sizes = [16, 16], strides = [1, 1]} : vector<16x17xf32> to vector<16x16xf32>
    %39 = vector.extract_strided_slice %37 {offsets = [0, 1], sizes = [16, 16], strides = [1, 1]} : vector<16x17xf32> to vector<16x16xf32>
    %c0_17 = arith.constant 0 : index
    %c1_18 = arith.constant 1 : index
    %c0_19 = arith.constant 0 : index
    %c0_20 = arith.constant 0 : index
    %40 = vector.load %arg2[%c0_17, %c1_18, %c0_19, %c0_20] : memref<1x4x18x18xf32, #tpu.memory_space<vmem>>, vector<1x1x16x17xf32>
    %41 = vector.shape_cast %40 : vector<1x1x16x17xf32> to vector<16x17xf32>
    %42 = vector.extract_strided_slice %41 {offsets = [0, 0], sizes = [16, 16], strides = [1, 1]} : vector<16x17xf32> to vector<16x16xf32>
    %43 = vector.extract_strided_slice %41 {offsets = [0, 1], sizes = [16, 16], strides = [1, 1]} : vector<16x17xf32> to vector<16x16xf32>
    %c0_21 = arith.constant 0 : index
    %c1_22 = arith.constant 1 : index
    %c1_23 = arith.constant 1 : index
    %c0_24 = arith.constant 0 : index
    %44 = vector.load %arg2[%c0_21, %c1_22, %c1_23, %c0_24] : memref<1x4x18x18xf32, #tpu.memory_space<vmem>>, vector<1x1x16x17xf32>
    %45 = vector.shape_cast %44 : vector<1x1x16x17xf32> to vector<16x17xf32>
    %46 = vector.extract_strided_slice %45 {offsets = [0, 0], sizes = [16, 16], strides = [1, 1]} : vector<16x17xf32> to vector<16x16xf32>
    %47 = vector.extract_strided_slice %45 {offsets = [0, 1], sizes = [16, 16], strides = [1, 1]} : vector<16x17xf32> to vector<16x16xf32>
    %c0_25 = arith.constant 0 : index
    %c2 = arith.constant 2 : index
    %c0_26 = arith.constant 0 : index
    %c0_27 = arith.constant 0 : index
    %48 = vector.load %arg2[%c0_25, %c2, %c0_26, %c0_27] : memref<1x4x18x18xf32, #tpu.memory_space<vmem>>, vector<1x1x16x17xf32>
    %49 = vector.shape_cast %48 : vector<1x1x16x17xf32> to vector<16x17xf32>
    %50 = vector.extract_strided_slice %49 {offsets = [0, 0], sizes = [16, 16], strides = [1, 1]} : vector<16x17xf32> to vector<16x16xf32>
    %51 = vector.extract_strided_slice %49 {offsets = [0, 1], sizes = [16, 16], strides = [1, 1]} : vector<16x17xf32> to vector<16x16xf32>
    %c0_28 = arith.constant 0 : index
    %c2_29 = arith.constant 2 : index
    %c1_30 = arith.constant 1 : index
    %c0_31 = arith.constant 0 : index
    %52 = vector.load %arg2[%c0_28, %c2_29, %c1_30, %c0_31] : memref<1x4x18x18xf32, #tpu.memory_space<vmem>>, vector<1x1x16x17xf32>
    %53 = vector.shape_cast %52 : vector<1x1x16x17xf32> to vector<16x17xf32>
    %54 = vector.extract_strided_slice %53 {offsets = [0, 0], sizes = [16, 16], strides = [1, 1]} : vector<16x17xf32> to vector<16x16xf32>
    %55 = vector.extract_strided_slice %53 {offsets = [0, 1], sizes = [16, 16], strides = [1, 1]} : vector<16x17xf32> to vector<16x16xf32>
    %c0_32 = arith.constant 0 : index
    %c3 = arith.constant 3 : index
    %c0_33 = arith.constant 0 : index
    %c0_34 = arith.constant 0 : index
    %56 = vector.load %arg2[%c0_32, %c3, %c0_33, %c0_34] : memref<1x4x18x18xf32, #tpu.memory_space<vmem>>, vector<1x1x16x17xf32>
    %57 = vector.shape_cast %56 : vector<1x1x16x17xf32> to vector<16x17xf32>
    %58 = vector.extract_strided_slice %57 {offsets = [0, 0], sizes = [16, 16], strides = [1, 1]} : vector<16x17xf32> to vector<16x16xf32>
    %59 = vector.extract_strided_slice %57 {offsets = [0, 1], sizes = [16, 16], strides = [1, 1]} : vector<16x17xf32> to vector<16x16xf32>
    %c0_35 = arith.constant 0 : index
    %c3_36 = arith.constant 3 : index
    %c1_37 = arith.constant 1 : index
    %c0_38 = arith.constant 0 : index
    %60 = vector.load %arg2[%c0_35, %c3_36, %c1_37, %c0_38] : memref<1x4x18x18xf32, #tpu.memory_space<vmem>>, vector<1x1x16x17xf32>
    %61 = vector.shape_cast %60 : vector<1x1x16x17xf32> to vector<16x17xf32>
    %62 = vector.extract_strided_slice %61 {offsets = [0, 0], sizes = [16, 16], strides = [1, 1]} : vector<16x17xf32> to vector<16x16xf32>
    %63 = vector.extract_strided_slice %61 {offsets = [0, 1], sizes = [16, 16], strides = [1, 1]} : vector<16x17xf32> to vector<16x16xf32>
    %c8_i32 = arith.constant 8 : i32
    %64 = arith.muli %arg1, %c8_i32 : i32
    %c0_i32 = arith.constant 0 : i32
    %65 = arith.addi %64, %c0_i32 : i32
    %cst_39 = arith.constant 0.000000e+00 : f32
    %66 = vector.broadcast %cst_39 : f32 to vector<16x16xf32>
    %c4_i32 = arith.constant 4 : i32
    %67 = arith.muli %65, %c4_i32 : i32
    %c0_i32_40 = arith.constant 0 : i32
    %68 = arith.addi %67, %c0_i32_40 : i32
    %c2_i32_41 = arith.constant 2 : i32
    %69 = arith.muli %68, %c2_i32_41 : i32
    %c0_i32_42 = arith.constant 0 : i32
    %70 = arith.addi %69, %c0_i32_42 : i32
    %c2_i32_43 = arith.constant 2 : i32
    %71 = arith.muli %70, %c2_i32_43 : i32
    %72 = arith.index_cast %71 : i32 to index
    %73 = memref.load %arg3[%72] : memref<128xf32, #tpu.memory_space<smem>>
    %74 = vector.broadcast %73 : f32 to vector<16x16xf32>
    %75 = arith.mulf %34, %74 : vector<16x16xf32>
    %76 = arith.addf %66, %75 : vector<16x16xf32>
    %c1_i32_44 = arith.constant 1 : i32
    %77 = arith.addi %71, %c1_i32_44 : i32
    %78 = arith.index_cast %77 : i32 to index
    %79 = memref.load %arg3[%78] : memref<128xf32, #tpu.memory_space<smem>>
    %80 = vector.broadcast %79 : f32 to vector<16x16xf32>
    %81 = arith.mulf %35, %80 : vector<16x16xf32>
    %82 = arith.addf %76, %81 : vector<16x16xf32>
    %c4_i32_45 = arith.constant 4 : i32
    %83 = arith.muli %65, %c4_i32_45 : i32
    %c0_i32_46 = arith.constant 0 : i32
    %84 = arith.addi %83, %c0_i32_46 : i32
    %c2_i32_47 = arith.constant 2 : i32
    %85 = arith.muli %84, %c2_i32_47 : i32
    %c1_i32_48 = arith.constant 1 : i32
    %86 = arith.addi %85, %c1_i32_48 : i32
    %c2_i32_49 = arith.constant 2 : i32
    %87 = arith.muli %86, %c2_i32_49 : i32
    %88 = arith.index_cast %87 : i32 to index
    %89 = memref.load %arg3[%88] : memref<128xf32, #tpu.memory_space<smem>>
    %90 = vector.broadcast %89 : f32 to vector<16x16xf32>
    %91 = arith.mulf %38, %90 : vector<16x16xf32>
    %92 = arith.addf %82, %91 : vector<16x16xf32>
    %c1_i32_50 = arith.constant 1 : i32
    %93 = arith.addi %87, %c1_i32_50 : i32
    %94 = arith.index_cast %93 : i32 to index
    %95 = memref.load %arg3[%94] : memref<128xf32, #tpu.memory_space<smem>>
    %96 = vector.broadcast %95 : f32 to vector<16x16xf32>
    %97 = arith.mulf %39, %96 : vector<16x16xf32>
    %98 = arith.addf %92, %97 : vector<16x16xf32>
    %c4_i32_51 = arith.constant 4 : i32
    %99 = arith.muli %65, %c4_i32_51 : i32
    %c1_i32_52 = arith.constant 1 : i32
    %100 = arith.addi %99, %c1_i32_52 : i32
    %c2_i32_53 = arith.constant 2 : i32
    %101 = arith.muli %100, %c2_i32_53 : i32
    %c0_i32_54 = arith.constant 0 : i32
    %102 = arith.addi %101, %c0_i32_54 : i32
    %c2_i32_55 = arith.constant 2 : i32
    %103 = arith.muli %102, %c2_i32_55 : i32
    %104 = arith.index_cast %103 : i32 to index
    %105 = memref.load %arg3[%104] : memref<128xf32, #tpu.memory_space<smem>>
    %106 = vector.broadcast %105 : f32 to vector<16x16xf32>
    %107 = arith.mulf %42, %106 : vector<16x16xf32>
    %108 = arith.addf %98, %107 : vector<16x16xf32>
    %c1_i32_56 = arith.constant 1 : i32
    %109 = arith.addi %103, %c1_i32_56 : i32
    %110 = arith.index_cast %109 : i32 to index
    %111 = memref.load %arg3[%110] : memref<128xf32, #tpu.memory_space<smem>>
    %112 = vector.broadcast %111 : f32 to vector<16x16xf32>
    %113 = arith.mulf %43, %112 : vector<16x16xf32>
    %114 = arith.addf %108, %113 : vector<16x16xf32>
    %c4_i32_57 = arith.constant 4 : i32
    %115 = arith.muli %65, %c4_i32_57 : i32
    %c1_i32_58 = arith.constant 1 : i32
    %116 = arith.addi %115, %c1_i32_58 : i32
    %c2_i32_59 = arith.constant 2 : i32
    %117 = arith.muli %116, %c2_i32_59 : i32
    %c1_i32_60 = arith.constant 1 : i32
    %118 = arith.addi %117, %c1_i32_60 : i32
    %c2_i32_61 = arith.constant 2 : i32
    %119 = arith.muli %118, %c2_i32_61 : i32
    %120 = arith.index_cast %119 : i32 to index
    %121 = memref.load %arg3[%120] : memref<128xf32, #tpu.memory_space<smem>>
    %122 = vector.broadcast %121 : f32 to vector<16x16xf32>
    %123 = arith.mulf %46, %122 : vector<16x16xf32>
    %124 = arith.addf %114, %123 : vector<16x16xf32>
    %c1_i32_62 = arith.constant 1 : i32
    %125 = arith.addi %119, %c1_i32_62 : i32
    %126 = arith.index_cast %125 : i32 to index
    %127 = memref.load %arg3[%126] : memref<128xf32, #tpu.memory_space<smem>>
    %128 = vector.broadcast %127 : f32 to vector<16x16xf32>
    %129 = arith.mulf %47, %128 : vector<16x16xf32>
    %130 = arith.addf %124, %129 : vector<16x16xf32>
    %c4_i32_63 = arith.constant 4 : i32
    %131 = arith.muli %65, %c4_i32_63 : i32
    %c2_i32_64 = arith.constant 2 : i32
    %132 = arith.addi %131, %c2_i32_64 : i32
    %c2_i32_65 = arith.constant 2 : i32
    %133 = arith.muli %132, %c2_i32_65 : i32
    %c0_i32_66 = arith.constant 0 : i32
    %134 = arith.addi %133, %c0_i32_66 : i32
    %c2_i32_67 = arith.constant 2 : i32
    %135 = arith.muli %134, %c2_i32_67 : i32
    %136 = arith.index_cast %135 : i32 to index
    %137 = memref.load %arg3[%136] : memref<128xf32, #tpu.memory_space<smem>>
    %138 = vector.broadcast %137 : f32 to vector<16x16xf32>
    %139 = arith.mulf %50, %138 : vector<16x16xf32>
    %140 = arith.addf %130, %139 : vector<16x16xf32>
    %c1_i32_68 = arith.constant 1 : i32
    %141 = arith.addi %135, %c1_i32_68 : i32
    %142 = arith.index_cast %141 : i32 to index
    %143 = memref.load %arg3[%142] : memref<128xf32, #tpu.memory_space<smem>>
    %144 = vector.broadcast %143 : f32 to vector<16x16xf32>
    %145 = arith.mulf %51, %144 : vector<16x16xf32>
    %146 = arith.addf %140, %145 : vector<16x16xf32>
    %c4_i32_69 = arith.constant 4 : i32
    %147 = arith.muli %65, %c4_i32_69 : i32
    %c2_i32_70 = arith.constant 2 : i32
    %148 = arith.addi %147, %c2_i32_70 : i32
    %c2_i32_71 = arith.constant 2 : i32
    %149 = arith.muli %148, %c2_i32_71 : i32
    %c1_i32_72 = arith.constant 1 : i32
    %150 = arith.addi %149, %c1_i32_72 : i32
    %c2_i32_73 = arith.constant 2 : i32
    %151 = arith.muli %150, %c2_i32_73 : i32
    %152 = arith.index_cast %151 : i32 to index
    %153 = memref.load %arg3[%152] : memref<128xf32, #tpu.memory_space<smem>>
    %154 = vector.broadcast %153 : f32 to vector<16x16xf32>
    %155 = arith.mulf %54, %154 : vector<16x16xf32>
    %156 = arith.addf %146, %155 : vector<16x16xf32>
    %c1_i32_74 = arith.constant 1 : i32
    %157 = arith.addi %151, %c1_i32_74 : i32
    %158 = arith.index_cast %157 : i32 to index
    %159 = memref.load %arg3[%158] : memref<128xf32, #tpu.memory_space<smem>>
    %160 = vector.broadcast %159 : f32 to vector<16x16xf32>
    %161 = arith.mulf %55, %160 : vector<16x16xf32>
    %162 = arith.addf %156, %161 : vector<16x16xf32>
    %c4_i32_75 = arith.constant 4 : i32
    %163 = arith.muli %65, %c4_i32_75 : i32
    %c3_i32 = arith.constant 3 : i32
    %164 = arith.addi %163, %c3_i32 : i32
    %c2_i32_76 = arith.constant 2 : i32
    %165 = arith.muli %164, %c2_i32_76 : i32
    %c0_i32_77 = arith.constant 0 : i32
    %166 = arith.addi %165, %c0_i32_77 : i32
    %c2_i32_78 = arith.constant 2 : i32
    %167 = arith.muli %166, %c2_i32_78 : i32
    %168 = arith.index_cast %167 : i32 to index
    %169 = memref.load %arg3[%168] : memref<128xf32, #tpu.memory_space<smem>>
    %170 = vector.broadcast %169 : f32 to vector<16x16xf32>
    %171 = arith.mulf %58, %170 : vector<16x16xf32>
    %172 = arith.addf %162, %171 : vector<16x16xf32>
    %c1_i32_79 = arith.constant 1 : i32
    %173 = arith.addi %167, %c1_i32_79 : i32
    %174 = arith.index_cast %173 : i32 to index
    %175 = memref.load %arg3[%174] : memref<128xf32, #tpu.memory_space<smem>>
    %176 = vector.broadcast %175 : f32 to vector<16x16xf32>
    %177 = arith.mulf %59, %176 : vector<16x16xf32>
    %178 = arith.addf %172, %177 : vector<16x16xf32>
    %c4_i32_80 = arith.constant 4 : i32
    %179 = arith.muli %65, %c4_i32_80 : i32
    %c3_i32_81 = arith.constant 3 : i32
    %180 = arith.addi %179, %c3_i32_81 : i32
    %c2_i32_82 = arith.constant 2 : i32
    %181 = arith.muli %180, %c2_i32_82 : i32
    %c1_i32_83 = arith.constant 1 : i32
    %182 = arith.addi %181, %c1_i32_83 : i32
    %c2_i32_84 = arith.constant 2 : i32
    %183 = arith.muli %182, %c2_i32_84 : i32
    %184 = arith.index_cast %183 : i32 to index
    %185 = memref.load %arg3[%184] : memref<128xf32, #tpu.memory_space<smem>>
    %186 = vector.broadcast %185 : f32 to vector<16x16xf32>
    %187 = arith.mulf %62, %186 : vector<16x16xf32>
    %188 = arith.addf %178, %187 : vector<16x16xf32>
    %c1_i32_85 = arith.constant 1 : i32
    %189 = arith.addi %183, %c1_i32_85 : i32
    %190 = arith.index_cast %189 : i32 to index
    %191 = memref.load %arg3[%190] : memref<128xf32, #tpu.memory_space<smem>>
    %192 = vector.broadcast %191 : f32 to vector<16x16xf32>
    %193 = arith.mulf %63, %192 : vector<16x16xf32>
    %194 = arith.addf %188, %193 : vector<16x16xf32>
    %cst_86 = arith.constant dense<0.000000e+00> : vector<8x16xf32>
    %195 = tpu.matmul %23, %194, %cst_86 {dimension_numbers = #tpu.dot_dimension_numbers<[1], [0], [0], [1], [0, 0, 1, 1], [], []>, precision = #tpu.contract_precision<fp32>} : vector<8x16xf32>, vector<16x16xf32>, vector<8x16xf32> -> vector<8x16xf32>
    %cst_87 = arith.constant dense<0.000000e+00> : vector<8x16xf32>
    %196 = tpu.matmul %31, %194, %cst_87 {dimension_numbers = #tpu.dot_dimension_numbers<[1], [0], [0], [1], [0, 0, 1, 1], [], []>, precision = #tpu.contract_precision<fp32>} : vector<8x16xf32>, vector<16x16xf32>, vector<8x16xf32> -> vector<8x16xf32>
    %197 = arith.maximumf %195, %196 : vector<8x16xf32>
    %cst_88 = arith.constant dense<0.000000e+00> : vector<8x8xf32>
    %198 = tpu.matmul %197, %7, %cst_88 {dimension_numbers = #tpu.dot_dimension_numbers<[1], [0], [0], [1], [0, 0, 1, 1], [], []>, precision = #tpu.contract_precision<fp32>} : vector<8x16xf32>, vector<16x8xf32>, vector<8x8xf32> -> vector<8x8xf32>
    %cst_89 = arith.constant dense<0.000000e+00> : vector<8x8xf32>
    %199 = tpu.matmul %197, %15, %cst_89 {dimension_numbers = #tpu.dot_dimension_numbers<[1], [0], [0], [1], [0, 0, 1, 1], [], []>, precision = #tpu.contract_precision<fp32>} : vector<8x16xf32>, vector<16x8xf32>, vector<8x8xf32> -> vector<8x8xf32>
    %200 = arith.maximumf %198, %199 : vector<8x8xf32>
    %201 = arith.index_cast %65 : i32 to index
    %202 = memref.load %arg4[%201] : memref<8xf32, #tpu.memory_space<smem>>
    %203 = vector.broadcast %202 : f32 to vector<8x8xf32>
    %204 = arith.addf %200, %203 : vector<8x8xf32>
    %cst_90 = arith.constant 0.000000e+00 : f32
    %205 = vector.broadcast %cst_90 : f32 to vector<8x8xf32>
    %206 = arith.maximumf %204, %205 : vector<8x8xf32>
    %c0_91 = arith.constant 0 : index
    %c0_92 = arith.constant 0 : index
    %c0_93 = arith.constant 0 : index
    %c0_94 = arith.constant 0 : index
    %207 = vector.load %arg5[%c0_91, %c0_92, %c0_93, %c0_94] : memref<1x8x8x8xf32, #tpu.memory_space<vmem>>, vector<1x1x8x8xf32>
    %208 = vector.shape_cast %207 : vector<1x1x8x8xf32> to vector<8x8xf32>
    %209 = vector.shape_cast %206 : vector<8x8xf32> to vector<1x1x8x8xf32>
    tpu.vector_store %arg5[%c0_91, %c0_92, %c0_93, %c0_94], %209 {strides = array<i32>} : memref<1x8x8x8xf32, #tpu.memory_space<vmem>>, vector<1x1x8x8xf32>,
    %c8_i32_95 = arith.constant 8 : i32
    %210 = arith.muli %arg1, %c8_i32_95 : i32
    %c1_i32_96 = arith.constant 1 : i32
    %211 = arith.addi %210, %c1_i32_96 : i32
    %cst_97 = arith.constant 0.000000e+00 : f32
    %212 = vector.broadcast %cst_97 : f32 to vector<16x16xf32>
    %c4_i32_98 = arith.constant 4 : i32
    %213 = arith.muli %211, %c4_i32_98 : i32
    %c0_i32_99 = arith.constant 0 : i32
    %214 = arith.addi %213, %c0_i32_99 : i32
    %c2_i32_100 = arith.constant 2 : i32
    %215 = arith.muli %214, %c2_i32_100 : i32
    %c0_i32_101 = arith.constant 0 : i32
    %216 = arith.addi %215, %c0_i32_101 : i32
    %c2_i32_102 = arith.constant 2 : i32
    %217 = arith.muli %216, %c2_i32_102 : i32
    %218 = arith.index_cast %217 : i32 to index
    %219 = memref.load %arg3[%218] : memref<128xf32, #tpu.memory_space<smem>>
    %220 = vector.broadcast %219 : f32 to vector<16x16xf32>
    %221 = arith.mulf %34, %220 : vector<16x16xf32>
    %222 = arith.addf %212, %221 : vector<16x16xf32>
    %c1_i32_103 = arith.constant 1 : i32
    %223 = arith.addi %217, %c1_i32_103 : i32
    %224 = arith.index_cast %223 : i32 to index
    %225 = memref.load %arg3[%224] : memref<128xf32, #tpu.memory_space<smem>>
    %226 = vector.broadcast %225 : f32 to vector<16x16xf32>
    %227 = arith.mulf %35, %226 : vector<16x16xf32>
    %228 = arith.addf %222, %227 : vector<16x16xf32>
    %c4_i32_104 = arith.constant 4 : i32
    %229 = arith.muli %211, %c4_i32_104 : i32
    %c0_i32_105 = arith.constant 0 : i32
    %230 = arith.addi %229, %c0_i32_105 : i32
    %c2_i32_106 = arith.constant 2 : i32
    %231 = arith.muli %230, %c2_i32_106 : i32
    %c1_i32_107 = arith.constant 1 : i32
    %232 = arith.addi %231, %c1_i32_107 : i32
    %c2_i32_108 = arith.constant 2 : i32
    %233 = arith.muli %232, %c2_i32_108 : i32
    %234 = arith.index_cast %233 : i32 to index
    %235 = memref.load %arg3[%234] : memref<128xf32, #tpu.memory_space<smem>>
    %236 = vector.broadcast %235 : f32 to vector<16x16xf32>
    %237 = arith.mulf %38, %236 : vector<16x16xf32>
    %238 = arith.addf %228, %237 : vector<16x16xf32>
    %c1_i32_109 = arith.constant 1 : i32
    %239 = arith.addi %233, %c1_i32_109 : i32
    %240 = arith.index_cast %239 : i32 to index
    %241 = memref.load %arg3[%240] : memref<128xf32, #tpu.memory_space<smem>>
    %242 = vector.broadcast %241 : f32 to vector<16x16xf32>
    %243 = arith.mulf %39, %242 : vector<16x16xf32>
    %244 = arith.addf %238, %243 : vector<16x16xf32>
    %c4_i32_110 = arith.constant 4 : i32
    %245 = arith.muli %211, %c4_i32_110 : i32
    %c1_i32_111 = arith.constant 1 : i32
    %246 = arith.addi %245, %c1_i32_111 : i32
    %c2_i32_112 = arith.constant 2 : i32
    %247 = arith.muli %246, %c2_i32_112 : i32
    %c0_i32_113 = arith.constant 0 : i32
    %248 = arith.addi %247, %c0_i32_113 : i32
    %c2_i32_114 = arith.constant 2 : i32
    %249 = arith.muli %248, %c2_i32_114 : i32
    %250 = arith.index_cast %249 : i32 to index
    %251 = memref.load %arg3[%250] : memref<128xf32, #tpu.memory_space<smem>>
    %252 = vector.broadcast %251 : f32 to vector<16x16xf32>
    %253 = arith.mulf %42, %252 : vector<16x16xf32>
    %254 = arith.addf %244, %253 : vector<16x16xf32>
    %c1_i32_115 = arith.constant 1 : i32
    %255 = arith.addi %249, %c1_i32_115 : i32
    %256 = arith.index_cast %255 : i32 to index
    %257 = memref.load %arg3[%256] : memref<128xf32, #tpu.memory_space<smem>>
    %258 = vector.broadcast %257 : f32 to vector<16x16xf32>
    %259 = arith.mulf %43, %258 : vector<16x16xf32>
    %260 = arith.addf %254, %259 : vector<16x16xf32>
    %c4_i32_116 = arith.constant 4 : i32
    %261 = arith.muli %211, %c4_i32_116 : i32
    %c1_i32_117 = arith.constant 1 : i32
    %262 = arith.addi %261, %c1_i32_117 : i32
    %c2_i32_118 = arith.constant 2 : i32
    %263 = arith.muli %262, %c2_i32_118 : i32
    %c1_i32_119 = arith.constant 1 : i32
    %264 = arith.addi %263, %c1_i32_119 : i32
    %c2_i32_120 = arith.constant 2 : i32
    %265 = arith.muli %264, %c2_i32_120 : i32
    %266 = arith.index_cast %265 : i32 to index
    %267 = memref.load %arg3[%266] : memref<128xf32, #tpu.memory_space<smem>>
    %268 = vector.broadcast %267 : f32 to vector<16x16xf32>
    %269 = arith.mulf %46, %268 : vector<16x16xf32>
    %270 = arith.addf %260, %269 : vector<16x16xf32>
    %c1_i32_121 = arith.constant 1 : i32
    %271 = arith.addi %265, %c1_i32_121 : i32
    %272 = arith.index_cast %271 : i32 to index
    %273 = memref.load %arg3[%272] : memref<128xf32, #tpu.memory_space<smem>>
    %274 = vector.broadcast %273 : f32 to vector<16x16xf32>
    %275 = arith.mulf %47, %274 : vector<16x16xf32>
    %276 = arith.addf %270, %275 : vector<16x16xf32>
    %c4_i32_122 = arith.constant 4 : i32
    %277 = arith.muli %211, %c4_i32_122 : i32
    %c2_i32_123 = arith.constant 2 : i32
    %278 = arith.addi %277, %c2_i32_123 : i32
    %c2_i32_124 = arith.constant 2 : i32
    %279 = arith.muli %278, %c2_i32_124 : i32
    %c0_i32_125 = arith.constant 0 : i32
    %280 = arith.addi %279, %c0_i32_125 : i32
    %c2_i32_126 = arith.constant 2 : i32
    %281 = arith.muli %280, %c2_i32_126 : i32
    %282 = arith.index_cast %281 : i32 to index
    %283 = memref.load %arg3[%282] : memref<128xf32, #tpu.memory_space<smem>>
    %284 = vector.broadcast %283 : f32 to vector<16x16xf32>
    %285 = arith.mulf %50, %284 : vector<16x16xf32>
    %286 = arith.addf %276, %285 : vector<16x16xf32>
    %c1_i32_127 = arith.constant 1 : i32
    %287 = arith.addi %281, %c1_i32_127 : i32
    %288 = arith.index_cast %287 : i32 to index
    %289 = memref.load %arg3[%288] : memref<128xf32, #tpu.memory_space<smem>>
    %290 = vector.broadcast %289 : f32 to vector<16x16xf32>
    %291 = arith.mulf %51, %290 : vector<16x16xf32>
    %292 = arith.addf %286, %291 : vector<16x16xf32>
    %c4_i32_128 = arith.constant 4 : i32
    %293 = arith.muli %211, %c4_i32_128 : i32
    %c2_i32_129 = arith.constant 2 : i32
    %294 = arith.addi %293, %c2_i32_129 : i32
    %c2_i32_130 = arith.constant 2 : i32
    %295 = arith.muli %294, %c2_i32_130 : i32
    %c1_i32_131 = arith.constant 1 : i32
    %296 = arith.addi %295, %c1_i32_131 : i32
    %c2_i32_132 = arith.constant 2 : i32
    %297 = arith.muli %296, %c2_i32_132 : i32
    %298 = arith.index_cast %297 : i32 to index
    %299 = memref.load %arg3[%298] : memref<128xf32, #tpu.memory_space<smem>>
    %300 = vector.broadcast %299 : f32 to vector<16x16xf32>
    %301 = arith.mulf %54, %300 : vector<16x16xf32>
    %302 = arith.addf %292, %301 : vector<16x16xf32>
    %c1_i32_133 = arith.constant 1 : i32
    %303 = arith.addi %297, %c1_i32_133 : i32
    %304 = arith.index_cast %303 : i32 to index
    %305 = memref.load %arg3[%304] : memref<128xf32, #tpu.memory_space<smem>>
    %306 = vector.broadcast %305 : f32 to vector<16x16xf32>
    %307 = arith.mulf %55, %306 : vector<16x16xf32>
    %308 = arith.addf %302, %307 : vector<16x16xf32>
    %c4_i32_134 = arith.constant 4 : i32
    %309 = arith.muli %211, %c4_i32_134 : i32
    %c3_i32_135 = arith.constant 3 : i32
    %310 = arith.addi %309, %c3_i32_135 : i32
    %c2_i32_136 = arith.constant 2 : i32
    %311 = arith.muli %310, %c2_i32_136 : i32
    %c0_i32_137 = arith.constant 0 : i32
    %312 = arith.addi %311, %c0_i32_137 : i32
    %c2_i32_138 = arith.constant 2 : i32
    %313 = arith.muli %312, %c2_i32_138 : i32
    %314 = arith.index_cast %313 : i32 to index
    %315 = memref.load %arg3[%314] : memref<128xf32, #tpu.memory_space<smem>>
    %316 = vector.broadcast %315 : f32 to vector<16x16xf32>
    %317 = arith.mulf %58, %316 : vector<16x16xf32>
    %318 = arith.addf %308, %317 : vector<16x16xf32>
    %c1_i32_139 = arith.constant 1 : i32
    %319 = arith.addi %313, %c1_i32_139 : i32
    %320 = arith.index_cast %319 : i32 to index
    %321 = memref.load %arg3[%320] : memref<128xf32, #tpu.memory_space<smem>>
    %322 = vector.broadcast %321 : f32 to vector<16x16xf32>
    %323 = arith.mulf %59, %322 : vector<16x16xf32>
    %324 = arith.addf %318, %323 : vector<16x16xf32>
    %c4_i32_140 = arith.constant 4 : i32
    %325 = arith.muli %211, %c4_i32_140 : i32
    %c3_i32_141 = arith.constant 3 : i32
    %326 = arith.addi %325, %c3_i32_141 : i32
    %c2_i32_142 = arith.constant 2 : i32
    %327 = arith.muli %326, %c2_i32_142 : i32
    %c1_i32_143 = arith.constant 1 : i32
    %328 = arith.addi %327, %c1_i32_143 : i32
    %c2_i32_144 = arith.constant 2 : i32
    %329 = arith.muli %328, %c2_i32_144 : i32
    %330 = arith.index_cast %329 : i32 to index
    %331 = memref.load %arg3[%330] : memref<128xf32, #tpu.memory_space<smem>>
    %332 = vector.broadcast %331 : f32 to vector<16x16xf32>
    %333 = arith.mulf %62, %332 : vector<16x16xf32>
    %334 = arith.addf %324, %333 : vector<16x16xf32>
    %c1_i32_145 = arith.constant 1 : i32
    %335 = arith.addi %329, %c1_i32_145 : i32
    %336 = arith.index_cast %335 : i32 to index
    %337 = memref.load %arg3[%336] : memref<128xf32, #tpu.memory_space<smem>>
    %338 = vector.broadcast %337 : f32 to vector<16x16xf32>
    %339 = arith.mulf %63, %338 : vector<16x16xf32>
    %340 = arith.addf %334, %339 : vector<16x16xf32>
    %cst_146 = arith.constant dense<0.000000e+00> : vector<8x16xf32>
    %341 = tpu.matmul %23, %340, %cst_146 {dimension_numbers = #tpu.dot_dimension_numbers<[1], [0], [0], [1], [0, 0, 1, 1], [], []>, precision = #tpu.contract_precision<fp32>} : vector<8x16xf32>, vector<16x16xf32>, vector<8x16xf32> -> vector<8x16xf32>
    %cst_147 = arith.constant dense<0.000000e+00> : vector<8x16xf32>
    %342 = tpu.matmul %31, %340, %cst_147 {dimension_numbers = #tpu.dot_dimension_numbers<[1], [0], [0], [1], [0, 0, 1, 1], [], []>, precision = #tpu.contract_precision<fp32>} : vector<8x16xf32>, vector<16x16xf32>, vector<8x16xf32> -> vector<8x16xf32>
    %343 = arith.maximumf %341, %342 : vector<8x16xf32>
    %cst_148 = arith.constant dense<0.000000e+00> : vector<8x8xf32>
    %344 = tpu.matmul %343, %7, %cst_148 {dimension_numbers = #tpu.dot_dimension_numbers<[1], [0], [0], [1], [0, 0, 1, 1], [], []>, precision = #tpu.contract_precision<fp32>} : vector<8x16xf32>, vector<16x8xf32>, vector<8x8xf32> -> vector<8x8xf32>
    %cst_149 = arith.constant dense<0.000000e+00> : vector<8x8xf32>
    %345 = tpu.matmul %343, %15, %cst_149 {dimension_numbers = #tpu.dot_dimension_numbers<[1], [0], [0], [1], [0, 0, 1, 1], [], []>, precision = #tpu.contract_precision<fp32>} : vector<8x16xf32>, vector<16x8xf32>, vector<8x8xf32> -> vector<8x8xf32>
    %346 = arith.maximumf %344, %345 : vector<8x8xf32>
    %347 = arith.index_cast %211 : i32 to index
    %348 = memref.load %arg4[%347] : memref<8xf32, #tpu.memory_space<smem>>
    %349 = vector.broadcast %348 : f32 to vector<8x8xf32>
    %350 = arith.addf %346, %349 : vector<8x8xf32>
    %cst_150 = arith.constant 0.000000e+00 : f32
    %351 = vector.broadcast %cst_150 : f32 to vector<8x8xf32>
    %352 = arith.maximumf %350, %351 : vector<8x8xf32>
    %c0_151 = arith.constant 0 : index
    %c1_152 = arith.constant 1 : index
    %c0_153 = arith.constant 0 : index
    %c0_154 = arith.constant 0 : index
    %353 = vector.load %arg5[%c0_151, %c1_152, %c0_153, %c0_154] : memref<1x8x8x8xf32, #tpu.memory_space<vmem>>, vector<1x1x8x8xf32>
    %354 = vector.shape_cast %353 : vector<1x1x8x8xf32> to vector<8x8xf32>
    %355 = vector.shape_cast %352 : vector<8x8xf32> to vector<1x1x8x8xf32>
    tpu.vector_store %arg5[%c0_151, %c1_152, %c0_153, %c0_154], %355 {strides = array<i32>} : memref<1x8x8x8xf32, #tpu.memory_space<vmem>>, vector<1x1x8x8xf32>,
    %c8_i32_155 = arith.constant 8 : i32
    %356 = arith.muli %arg1, %c8_i32_155 : i32
    %c2_i32_156 = arith.constant 2 : i32
    %357 = arith.addi %356, %c2_i32_156 : i32
    %cst_157 = arith.constant 0.000000e+00 : f32
    %358 = vector.broadcast %cst_157 : f32 to vector<16x16xf32>
    %c4_i32_158 = arith.constant 4 : i32
    %359 = arith.muli %357, %c4_i32_158 : i32
    %c0_i32_159 = arith.constant 0 : i32
    %360 = arith.addi %359, %c0_i32_159 : i32
    %c2_i32_160 = arith.constant 2 : i32
    %361 = arith.muli %360, %c2_i32_160 : i32
    %c0_i32_161 = arith.constant 0 : i32
    %362 = arith.addi %361, %c0_i32_161 : i32
    %c2_i32_162 = arith.constant 2 : i32
    %363 = arith.muli %362, %c2_i32_162 : i32
    %364 = arith.index_cast %363 : i32 to index
    %365 = memref.load %arg3[%364] : memref<128xf32, #tpu.memory_space<smem>>
    %366 = vector.broadcast %365 : f32 to vector<16x16xf32>
    %367 = arith.mulf %34, %366 : vector<16x16xf32>
    %368 = arith.addf %358, %367 : vector<16x16xf32>
    %c1_i32_163 = arith.constant 1 : i32
    %369 = arith.addi %363, %c1_i32_163 : i32
    %370 = arith.index_cast %369 : i32 to index
    %371 = memref.load %arg3[%370] : memref<128xf32, #tpu.memory_space<smem>>
    %372 = vector.broadcast %371 : f32 to vector<16x16xf32>
    %373 = arith.mulf %35, %372 : vector<16x16xf32>
    %374 = arith.addf %368, %373 : vector<16x16xf32>
    %c4_i32_164 = arith.constant 4 : i32
    %375 = arith.muli %357, %c4_i32_164 : i32
    %c0_i32_165 = arith.constant 0 : i32
    %376 = arith.addi %375, %c0_i32_165 : i32
    %c2_i32_166 = arith.constant 2 : i32
    %377 = arith.muli %376, %c2_i32_166 : i32
    %c1_i32_167 = arith.constant 1 : i32
    %378 = arith.addi %377, %c1_i32_167 : i32
    %c2_i32_168 = arith.constant 2 : i32
    %379 = arith.muli %378, %c2_i32_168 : i32
    %380 = arith.index_cast %379 : i32 to index
    %381 = memref.load %arg3[%380] : memref<128xf32, #tpu.memory_space<smem>>
    %382 = vector.broadcast %381 : f32 to vector<16x16xf32>
    %383 = arith.mulf %38, %382 : vector<16x16xf32>
    %384 = arith.addf %374, %383 : vector<16x16xf32>
    %c1_i32_169 = arith.constant 1 : i32
    %385 = arith.addi %379, %c1_i32_169 : i32
    %386 = arith.index_cast %385 : i32 to index
    %387 = memref.load %arg3[%386] : memref<128xf32, #tpu.memory_space<smem>>
    %388 = vector.broadcast %387 : f32 to vector<16x16xf32>
    %389 = arith.mulf %39, %388 : vector<16x16xf32>
    %390 = arith.addf %384, %389 : vector<16x16xf32>
    %c4_i32_170 = arith.constant 4 : i32
    %391 = arith.muli %357, %c4_i32_170 : i32
    %c1_i32_171 = arith.constant 1 : i32
    %392 = arith.addi %391, %c1_i32_171 : i32
    %c2_i32_172 = arith.constant 2 : i32
    %393 = arith.muli %392, %c2_i32_172 : i32
    %c0_i32_173 = arith.constant 0 : i32
    %394 = arith.addi %393, %c0_i32_173 : i32
    %c2_i32_174 = arith.constant 2 : i32
    %395 = arith.muli %394, %c2_i32_174 : i32
    %396 = arith.index_cast %395 : i32 to index
    %397 = memref.load %arg3[%396] : memref<128xf32, #tpu.memory_space<smem>>
    %398 = vector.broadcast %397 : f32 to vector<16x16xf32>
    %399 = arith.mulf %42, %398 : vector<16x16xf32>
    %400 = arith.addf %390, %399 : vector<16x16xf32>
    %c1_i32_175 = arith.constant 1 : i32
    %401 = arith.addi %395, %c1_i32_175 : i32
    %402 = arith.index_cast %401 : i32 to index
    %403 = memref.load %arg3[%402] : memref<128xf32, #tpu.memory_space<smem>>
    %404 = vector.broadcast %403 : f32 to vector<16x16xf32>
    %405 = arith.mulf %43, %404 : vector<16x16xf32>
    %406 = arith.addf %400, %405 : vector<16x16xf32>
    %c4_i32_176 = arith.constant 4 : i32
    %407 = arith.muli %357, %c4_i32_176 : i32
    %c1_i32_177 = arith.constant 1 : i32
    %408 = arith.addi %407, %c1_i32_177 : i32
    %c2_i32_178 = arith.constant 2 : i32
    %409 = arith.muli %408, %c2_i32_178 : i32
    %c1_i32_179 = arith.constant 1 : i32
    %410 = arith.addi %409, %c1_i32_179 : i32
    %c2_i32_180 = arith.constant 2 : i32
    %411 = arith.muli %410, %c2_i32_180 : i32
    %412 = arith.index_cast %411 : i32 to index
    %413 = memref.load %arg3[%412] : memref<128xf32, #tpu.memory_space<smem>>
    %414 = vector.broadcast %413 : f32 to vector<16x16xf32>
    %415 = arith.mulf %46, %414 : vector<16x16xf32>
    %416 = arith.addf %406, %415 : vector<16x16xf32>
    %c1_i32_181 = arith.constant 1 : i32
    %417 = arith.addi %411, %c1_i32_181 : i32
    %418 = arith.index_cast %417 : i32 to index
    %419 = memref.load %arg3[%418] : memref<128xf32, #tpu.memory_space<smem>>
    %420 = vector.broadcast %419 : f32 to vector<16x16xf32>
    %421 = arith.mulf %47, %420 : vector<16x16xf32>
    %422 = arith.addf %416, %421 : vector<16x16xf32>
    %c4_i32_182 = arith.constant 4 : i32
    %423 = arith.muli %357, %c4_i32_182 : i32
    %c2_i32_183 = arith.constant 2 : i32
    %424 = arith.addi %423, %c2_i32_183 : i32
    %c2_i32_184 = arith.constant 2 : i32
    %425 = arith.muli %424, %c2_i32_184 : i32
    %c0_i32_185 = arith.constant 0 : i32
    %426 = arith.addi %425, %c0_i32_185 : i32
    %c2_i32_186 = arith.constant 2 : i32
    %427 = arith.muli %426, %c2_i32_186 : i32
    %428 = arith.index_cast %427 : i32 to index
    %429 = memref.load %arg3[%428] : memref<128xf32, #tpu.memory_space<smem>>
    %430 = vector.broadcast %429 : f32 to vector<16x16xf32>
    %431 = arith.mulf %50, %430 : vector<16x16xf32>
    %432 = arith.addf %422, %431 : vector<16x16xf32>
    %c1_i32_187 = arith.constant 1 : i32
    %433 = arith.addi %427, %c1_i32_187 : i32
    %434 = arith.index_cast %433 : i32 to index
    %435 = memref.load %arg3[%434] : memref<128xf32, #tpu.memory_space<smem>>
    %436 = vector.broadcast %435 : f32 to vector<16x16xf32>
    %437 = arith.mulf %51, %436 : vector<16x16xf32>
    %438 = arith.addf %432, %437 : vector<16x16xf32>
    %c4_i32_188 = arith.constant 4 : i32
    %439 = arith.muli %357, %c4_i32_188 : i32
    %c2_i32_189 = arith.constant 2 : i32
    %440 = arith.addi %439, %c2_i32_189 : i32
    %c2_i32_190 = arith.constant 2 : i32
    %441 = arith.muli %440, %c2_i32_190 : i32
    %c1_i32_191 = arith.constant 1 : i32
    %442 = arith.addi %441, %c1_i32_191 : i32
    %c2_i32_192 = arith.constant 2 : i32
    %443 = arith.muli %442, %c2_i32_192 : i32
    %444 = arith.index_cast %443 : i32 to index
    %445 = memref.load %arg3[%444] : memref<128xf32, #tpu.memory_space<smem>>
    %446 = vector.broadcast %445 : f32 to vector<16x16xf32>
    %447 = arith.mulf %54, %446 : vector<16x16xf32>
    %448 = arith.addf %438, %447 : vector<16x16xf32>
    %c1_i32_193 = arith.constant 1 : i32
    %449 = arith.addi %443, %c1_i32_193 : i32
    %450 = arith.index_cast %449 : i32 to index
    %451 = memref.load %arg3[%450] : memref<128xf32, #tpu.memory_space<smem>>
    %452 = vector.broadcast %451 : f32 to vector<16x16xf32>
    %453 = arith.mulf %55, %452 : vector<16x16xf32>
    %454 = arith.addf %448, %453 : vector<16x16xf32>
    %c4_i32_194 = arith.constant 4 : i32
    %455 = arith.muli %357, %c4_i32_194 : i32
    %c3_i32_195 = arith.constant 3 : i32
    %456 = arith.addi %455, %c3_i32_195 : i32
    %c2_i32_196 = arith.constant 2 : i32
    %457 = arith.muli %456, %c2_i32_196 : i32
    %c0_i32_197 = arith.constant 0 : i32
    %458 = arith.addi %457, %c0_i32_197 : i32
    %c2_i32_198 = arith.constant 2 : i32
    %459 = arith.muli %458, %c2_i32_198 : i32
    %460 = arith.index_cast %459 : i32 to index
    %461 = memref.load %arg3[%460] : memref<128xf32, #tpu.memory_space<smem>>
    %462 = vector.broadcast %461 : f32 to vector<16x16xf32>
    %463 = arith.mulf %58, %462 : vector<16x16xf32>
    %464 = arith.addf %454, %463 : vector<16x16xf32>
    %c1_i32_199 = arith.constant 1 : i32
    %465 = arith.addi %459, %c1_i32_199 : i32
    %466 = arith.index_cast %465 : i32 to index
    %467 = memref.load %arg3[%466] : memref<128xf32, #tpu.memory_space<smem>>
    %468 = vector.broadcast %467 : f32 to vector<16x16xf32>
    %469 = arith.mulf %59, %468 : vector<16x16xf32>
    %470 = arith.addf %464, %469 : vector<16x16xf32>
    %c4_i32_200 = arith.constant 4 : i32
    %471 = arith.muli %357, %c4_i32_200 : i32
    %c3_i32_201 = arith.constant 3 : i32
    %472 = arith.addi %471, %c3_i32_201 : i32
    %c2_i32_202 = arith.constant 2 : i32
    %473 = arith.muli %472, %c2_i32_202 : i32
    %c1_i32_203 = arith.constant 1 : i32
    %474 = arith.addi %473, %c1_i32_203 : i32
    %c2_i32_204 = arith.constant 2 : i32
    %475 = arith.muli %474, %c2_i32_204 : i32
    %476 = arith.index_cast %475 : i32 to index
    %477 = memref.load %arg3[%476] : memref<128xf32, #tpu.memory_space<smem>>
    %478 = vector.broadcast %477 : f32 to vector<16x16xf32>
    %479 = arith.mulf %62, %478 : vector<16x16xf32>
    %480 = arith.addf %470, %479 : vector<16x16xf32>
    %c1_i32_205 = arith.constant 1 : i32
    %481 = arith.addi %475, %c1_i32_205 : i32
    %482 = arith.index_cast %481 : i32 to index
    %483 = memref.load %arg3[%482] : memref<128xf32, #tpu.memory_space<smem>>
    %484 = vector.broadcast %483 : f32 to vector<16x16xf32>
    %485 = arith.mulf %63, %484 : vector<16x16xf32>
    %486 = arith.addf %480, %485 : vector<16x16xf32>
    %cst_206 = arith.constant dense<0.000000e+00> : vector<8x16xf32>
    %487 = tpu.matmul %23, %486, %cst_206 {dimension_numbers = #tpu.dot_dimension_numbers<[1], [0], [0], [1], [0, 0, 1, 1], [], []>, precision = #tpu.contract_precision<fp32>} : vector<8x16xf32>, vector<16x16xf32>, vector<8x16xf32> -> vector<8x16xf32>
    %cst_207 = arith.constant dense<0.000000e+00> : vector<8x16xf32>
    %488 = tpu.matmul %31, %486, %cst_207 {dimension_numbers = #tpu.dot_dimension_numbers<[1], [0], [0], [1], [0, 0, 1, 1], [], []>, precision = #tpu.contract_precision<fp32>} : vector<8x16xf32>, vector<16x16xf32>, vector<8x16xf32> -> vector<8x16xf32>
    %489 = arith.maximumf %487, %488 : vector<8x16xf32>
    %cst_208 = arith.constant dense<0.000000e+00> : vector<8x8xf32>
    %490 = tpu.matmul %489, %7, %cst_208 {dimension_numbers = #tpu.dot_dimension_numbers<[1], [0], [0], [1], [0, 0, 1, 1], [], []>, precision = #tpu.contract_precision<fp32>} : vector<8x16xf32>, vector<16x8xf32>, vector<8x8xf32> -> vector<8x8xf32>
    %cst_209 = arith.constant dense<0.000000e+00> : vector<8x8xf32>
    %491 = tpu.matmul %489, %15, %cst_209 {dimension_numbers = #tpu.dot_dimension_numbers<[1], [0], [0], [1], [0, 0, 1, 1], [], []>, precision = #tpu.contract_precision<fp32>} : vector<8x16xf32>, vector<16x8xf32>, vector<8x8xf32> -> vector<8x8xf32>
    %492 = arith.maximumf %490, %491 : vector<8x8xf32>
    %493 = arith.index_cast %357 : i32 to index
    %494 = memref.load %arg4[%493] : memref<8xf32, #tpu.memory_space<smem>>
    %495 = vector.broadcast %494 : f32 to vector<8x8xf32>
    %496 = arith.addf %492, %495 : vector<8x8xf32>
    %cst_210 = arith.constant 0.000000e+00 : f32
    %497 = vector.broadcast %cst_210 : f32 to vector<8x8xf32>
    %498 = arith.maximumf %496, %497 : vector<8x8xf32>
    %c0_211 = arith.constant 0 : index
    %c2_212 = arith.constant 2 : index
    %c0_213 = arith.constant 0 : index
    %c0_214 = arith.constant 0 : index
    %499 = vector.load %arg5[%c0_211, %c2_212, %c0_213, %c0_214] : memref<1x8x8x8xf32, #tpu.memory_space<vmem>>, vector<1x1x8x8xf32>
    %500 = vector.shape_cast %499 : vector<1x1x8x8xf32> to vector<8x8xf32>
    %501 = vector.shape_cast %498 : vector<8x8xf32> to vector<1x1x8x8xf32>
    tpu.vector_store %arg5[%c0_211, %c2_212, %c0_213, %c0_214], %501 {strides = array<i32>} : memref<1x8x8x8xf32, #tpu.memory_space<vmem>>, vector<1x1x8x8xf32>,
    %c8_i32_215 = arith.constant 8 : i32
    %502 = arith.muli %arg1, %c8_i32_215 : i32
    %c3_i32_216 = arith.constant 3 : i32
    %503 = arith.addi %502, %c3_i32_216 : i32
    %cst_217 = arith.constant 0.000000e+00 : f32
    %504 = vector.broadcast %cst_217 : f32 to vector<16x16xf32>
    %c4_i32_218 = arith.constant 4 : i32
    %505 = arith.muli %503, %c4_i32_218 : i32
    %c0_i32_219 = arith.constant 0 : i32
    %506 = arith.addi %505, %c0_i32_219 : i32
    %c2_i32_220 = arith.constant 2 : i32
    %507 = arith.muli %506, %c2_i32_220 : i32
    %c0_i32_221 = arith.constant 0 : i32
    %508 = arith.addi %507, %c0_i32_221 : i32
    %c2_i32_222 = arith.constant 2 : i32
    %509 = arith.muli %508, %c2_i32_222 : i32
    %510 = arith.index_cast %509 : i32 to index
    %511 = memref.load %arg3[%510] : memref<128xf32, #tpu.memory_space<smem>>
    %512 = vector.broadcast %511 : f32 to vector<16x16xf32>
    %513 = arith.mulf %34, %512 : vector<16x16xf32>
    %514 = arith.addf %504, %513 : vector<16x16xf32>
    %c1_i32_223 = arith.constant 1 : i32
    %515 = arith.addi %509, %c1_i32_223 : i32
    %516 = arith.index_cast %515 : i32 to index
    %517 = memref.load %arg3[%516] : memref<128xf32, #tpu.memory_space<smem>>
    %518 = vector.broadcast %517 : f32 to vector<16x16xf32>
    %519 = arith.mulf %35, %518 : vector<16x16xf32>
    %520 = arith.addf %514, %519 : vector<16x16xf32>
    %c4_i32_224 = arith.constant 4 : i32
    %521 = arith.muli %503, %c4_i32_224 : i32
    %c0_i32_225 = arith.constant 0 : i32
    %522 = arith.addi %521, %c0_i32_225 : i32
    %c2_i32_226 = arith.constant 2 : i32
    %523 = arith.muli %522, %c2_i32_226 : i32
    %c1_i32_227 = arith.constant 1 : i32
    %524 = arith.addi %523, %c1_i32_227 : i32
    %c2_i32_228 = arith.constant 2 : i32
    %525 = arith.muli %524, %c2_i32_228 : i32
    %526 = arith.index_cast %525 : i32 to index
    %527 = memref.load %arg3[%526] : memref<128xf32, #tpu.memory_space<smem>>
    %528 = vector.broadcast %527 : f32 to vector<16x16xf32>
    %529 = arith.mulf %38, %528 : vector<16x16xf32>
    %530 = arith.addf %520, %529 : vector<16x16xf32>
    %c1_i32_229 = arith.constant 1 : i32
    %531 = arith.addi %525, %c1_i32_229 : i32
    %532 = arith.index_cast %531 : i32 to index
    %533 = memref.load %arg3[%532] : memref<128xf32, #tpu.memory_space<smem>>
    %534 = vector.broadcast %533 : f32 to vector<16x16xf32>
    %535 = arith.mulf %39, %534 : vector<16x16xf32>
    %536 = arith.addf %530, %535 : vector<16x16xf32>
    %c4_i32_230 = arith.constant 4 : i32
    %537 = arith.muli %503, %c4_i32_230 : i32
    %c1_i32_231 = arith.constant 1 : i32
    %538 = arith.addi %537, %c1_i32_231 : i32
    %c2_i32_232 = arith.constant 2 : i32
    %539 = arith.muli %538, %c2_i32_232 : i32
    %c0_i32_233 = arith.constant 0 : i32
    %540 = arith.addi %539, %c0_i32_233 : i32
    %c2_i32_234 = arith.constant 2 : i32
    %541 = arith.muli %540, %c2_i32_234 : i32
    %542 = arith.index_cast %541 : i32 to index
    %543 = memref.load %arg3[%542] : memref<128xf32, #tpu.memory_space<smem>>
    %544 = vector.broadcast %543 : f32 to vector<16x16xf32>
    %545 = arith.mulf %42, %544 : vector<16x16xf32>
    %546 = arith.addf %536, %545 : vector<16x16xf32>
    %c1_i32_235 = arith.constant 1 : i32
    %547 = arith.addi %541, %c1_i32_235 : i32
    %548 = arith.index_cast %547 : i32 to index
    %549 = memref.load %arg3[%548] : memref<128xf32, #tpu.memory_space<smem>>
    %550 = vector.broadcast %549 : f32 to vector<16x16xf32>
    %551 = arith.mulf %43, %550 : vector<16x16xf32>
    %552 = arith.addf %546, %551 : vector<16x16xf32>
    %c4_i32_236 = arith.constant 4 : i32
    %553 = arith.muli %503, %c4_i32_236 : i32
    %c1_i32_237 = arith.constant 1 : i32
    %554 = arith.addi %553, %c1_i32_237 : i32
    %c2_i32_238 = arith.constant 2 : i32
    %555 = arith.muli %554, %c2_i32_238 : i32
    %c1_i32_239 = arith.constant 1 : i32
    %556 = arith.addi %555, %c1_i32_239 : i32
    %c2_i32_240 = arith.constant 2 : i32
    %557 = arith.muli %556, %c2_i32_240 : i32
    %558 = arith.index_cast %557 : i32 to index
    %559 = memref.load %arg3[%558] : memref<128xf32, #tpu.memory_space<smem>>
    %560 = vector.broadcast %559 : f32 to vector<16x16xf32>
    %561 = arith.mulf %46, %560 : vector<16x16xf32>
    %562 = arith.addf %552, %561 : vector<16x16xf32>
    %c1_i32_241 = arith.constant 1 : i32
    %563 = arith.addi %557, %c1_i32_241 : i32
    %564 = arith.index_cast %563 : i32 to index
    %565 = memref.load %arg3[%564] : memref<128xf32, #tpu.memory_space<smem>>
    %566 = vector.broadcast %565 : f32 to vector<16x16xf32>
    %567 = arith.mulf %47, %566 : vector<16x16xf32>
    %568 = arith.addf %562, %567 : vector<16x16xf32>
    %c4_i32_242 = arith.constant 4 : i32
    %569 = arith.muli %503, %c4_i32_242 : i32
    %c2_i32_243 = arith.constant 2 : i32
    %570 = arith.addi %569, %c2_i32_243 : i32
    %c2_i32_244 = arith.constant 2 : i32
    %571 = arith.muli %570, %c2_i32_244 : i32
    %c0_i32_245 = arith.constant 0 : i32
    %572 = arith.addi %571, %c0_i32_245 : i32
    %c2_i32_246 = arith.constant 2 : i32
    %573 = arith.muli %572, %c2_i32_246 : i32
    %574 = arith.index_cast %573 : i32 to index
    %575 = memref.load %arg3[%574] : memref<128xf32, #tpu.memory_space<smem>>
    %576 = vector.broadcast %575 : f32 to vector<16x16xf32>
    %577 = arith.mulf %50, %576 : vector<16x16xf32>
    %578 = arith.addf %568, %577 : vector<16x16xf32>
    %c1_i32_247 = arith.constant 1 : i32
    %579 = arith.addi %573, %c1_i32_247 : i32
    %580 = arith.index_cast %579 : i32 to index
    %581 = memref.load %arg3[%580] : memref<128xf32, #tpu.memory_space<smem>>
    %582 = vector.broadcast %581 : f32 to vector<16x16xf32>
    %583 = arith.mulf %51, %582 : vector<16x16xf32>
    %584 = arith.addf %578, %583 : vector<16x16xf32>
    %c4_i32_248 = arith.constant 4 : i32
    %585 = arith.muli %503, %c4_i32_248 : i32
    %c2_i32_249 = arith.constant 2 : i32
    %586 = arith.addi %585, %c2_i32_249 : i32
    %c2_i32_250 = arith.constant 2 : i32
    %587 = arith.muli %586, %c2_i32_250 : i32
    %c1_i32_251 = arith.constant 1 : i32
    %588 = arith.addi %587, %c1_i32_251 : i32
    %c2_i32_252 = arith.constant 2 : i32
    %589 = arith.muli %588, %c2_i32_252 : i32
    %590 = arith.index_cast %589 : i32 to index
    %591 = memref.load %arg3[%590] : memref<128xf32, #tpu.memory_space<smem>>
    %592 = vector.broadcast %591 : f32 to vector<16x16xf32>
    %593 = arith.mulf %54, %592 : vector<16x16xf32>
    %594 = arith.addf %584, %593 : vector<16x16xf32>
    %c1_i32_253 = arith.constant 1 : i32
    %595 = arith.addi %589, %c1_i32_253 : i32
    %596 = arith.index_cast %595 : i32 to index
    %597 = memref.load %arg3[%596] : memref<128xf32, #tpu.memory_space<smem>>
    %598 = vector.broadcast %597 : f32 to vector<16x16xf32>
    %599 = arith.mulf %55, %598 : vector<16x16xf32>
    %600 = arith.addf %594, %599 : vector<16x16xf32>
    %c4_i32_254 = arith.constant 4 : i32
    %601 = arith.muli %503, %c4_i32_254 : i32
    %c3_i32_255 = arith.constant 3 : i32
    %602 = arith.addi %601, %c3_i32_255 : i32
    %c2_i32_256 = arith.constant 2 : i32
    %603 = arith.muli %602, %c2_i32_256 : i32
    %c0_i32_257 = arith.constant 0 : i32
    %604 = arith.addi %603, %c0_i32_257 : i32
    %c2_i32_258 = arith.constant 2 : i32
    %605 = arith.muli %604, %c2_i32_258 : i32
    %606 = arith.index_cast %605 : i32 to index
    %607 = memref.load %arg3[%606] : memref<128xf32, #tpu.memory_space<smem>>
    %608 = vector.broadcast %607 : f32 to vector<16x16xf32>
    %609 = arith.mulf %58, %608 : vector<16x16xf32>
    %610 = arith.addf %600, %609 : vector<16x16xf32>
    %c1_i32_259 = arith.constant 1 : i32
    %611 = arith.addi %605, %c1_i32_259 : i32
    %612 = arith.index_cast %611 : i32 to index
    %613 = memref.load %arg3[%612] : memref<128xf32, #tpu.memory_space<smem>>
    %614 = vector.broadcast %613 : f32 to vector<16x16xf32>
    %615 = arith.mulf %59, %614 : vector<16x16xf32>
    %616 = arith.addf %610, %615 : vector<16x16xf32>
    %c4_i32_260 = arith.constant 4 : i32
    %617 = arith.muli %503, %c4_i32_260 : i32
    %c3_i32_261 = arith.constant 3 : i32
    %618 = arith.addi %617, %c3_i32_261 : i32
    %c2_i32_262 = arith.constant 2 : i32
    %619 = arith.muli %618, %c2_i32_262 : i32
    %c1_i32_263 = arith.constant 1 : i32
    %620 = arith.addi %619, %c1_i32_263 : i32
    %c2_i32_264 = arith.constant 2 : i32
    %621 = arith.muli %620, %c2_i32_264 : i32
    %622 = arith.index_cast %621 : i32 to index
    %623 = memref.load %arg3[%622] : memref<128xf32, #tpu.memory_space<smem>>
    %624 = vector.broadcast %623 : f32 to vector<16x16xf32>
    %625 = arith.mulf %62, %624 : vector<16x16xf32>
    %626 = arith.addf %616, %625 : vector<16x16xf32>
    %c1_i32_265 = arith.constant 1 : i32
    %627 = arith.addi %621, %c1_i32_265 : i32
    %628 = arith.index_cast %627 : i32 to index
    %629 = memref.load %arg3[%628] : memref<128xf32, #tpu.memory_space<smem>>
    %630 = vector.broadcast %629 : f32 to vector<16x16xf32>
    %631 = arith.mulf %63, %630 : vector<16x16xf32>
    %632 = arith.addf %626, %631 : vector<16x16xf32>
    %cst_266 = arith.constant dense<0.000000e+00> : vector<8x16xf32>
    %633 = tpu.matmul %23, %632, %cst_266 {dimension_numbers = #tpu.dot_dimension_numbers<[1], [0], [0], [1], [0, 0, 1, 1], [], []>, precision = #tpu.contract_precision<fp32>} : vector<8x16xf32>, vector<16x16xf32>, vector<8x16xf32> -> vector<8x16xf32>
    %cst_267 = arith.constant dense<0.000000e+00> : vector<8x16xf32>
    %634 = tpu.matmul %31, %632, %cst_267 {dimension_numbers = #tpu.dot_dimension_numbers<[1], [0], [0], [1], [0, 0, 1, 1], [], []>, precision = #tpu.contract_precision<fp32>} : vector<8x16xf32>, vector<16x16xf32>, vector<8x16xf32> -> vector<8x16xf32>
    %635 = arith.maximumf %633, %634 : vector<8x16xf32>
    %cst_268 = arith.constant dense<0.000000e+00> : vector<8x8xf32>
    %636 = tpu.matmul %635, %7, %cst_268 {dimension_numbers = #tpu.dot_dimension_numbers<[1], [0], [0], [1], [0, 0, 1, 1], [], []>, precision = #tpu.contract_precision<fp32>} : vector<8x16xf32>, vector<16x8xf32>, vector<8x8xf32> -> vector<8x8xf32>
    %cst_269 = arith.constant dense<0.000000e+00> : vector<8x8xf32>
    %637 = tpu.matmul %635, %15, %cst_269 {dimension_numbers = #tpu.dot_dimension_numbers<[1], [0], [0], [1], [0, 0, 1, 1], [], []>, precision = #tpu.contract_precision<fp32>} : vector<8x16xf32>, vector<16x8xf32>, vector<8x8xf32> -> vector<8x8xf32>
    %638 = arith.maximumf %636, %637 : vector<8x8xf32>
    %639 = arith.index_cast %503 : i32 to index
    %640 = memref.load %arg4[%639] : memref<8xf32, #tpu.memory_space<smem>>
    %641 = vector.broadcast %640 : f32 to vector<8x8xf32>
    %642 = arith.addf %638, %641 : vector<8x8xf32>
    %cst_270 = arith.constant 0.000000e+00 : f32
    %643 = vector.broadcast %cst_270 : f32 to vector<8x8xf32>
    %644 = arith.maximumf %642, %643 : vector<8x8xf32>
    %c0_271 = arith.constant 0 : index
    %c3_272 = arith.constant 3 : index
    %c0_273 = arith.constant 0 : index
    %c0_274 = arith.constant 0 : index
    %645 = vector.load %arg5[%c0_271, %c3_272, %c0_273, %c0_274] : memref<1x8x8x8xf32, #tpu.memory_space<vmem>>, vector<1x1x8x8xf32>
    %646 = vector.shape_cast %645 : vector<1x1x8x8xf32> to vector<8x8xf32>
    %647 = vector.shape_cast %644 : vector<8x8xf32> to vector<1x1x8x8xf32>
    tpu.vector_store %arg5[%c0_271, %c3_272, %c0_273, %c0_274], %647 {strides = array<i32>} : memref<1x8x8x8xf32, #tpu.memory_space<vmem>>, vector<1x1x8x8xf32>,
    %c8_i32_275 = arith.constant 8 : i32
    %648 = arith.muli %arg1, %c8_i32_275 : i32
    %c4_i32_276 = arith.constant 4 : i32
    %649 = arith.addi %648, %c4_i32_276 : i32
    %cst_277 = arith.constant 0.000000e+00 : f32
    %650 = vector.broadcast %cst_277 : f32 to vector<16x16xf32>
    %c4_i32_278 = arith.constant 4 : i32
    %651 = arith.muli %649, %c4_i32_278 : i32
    %c0_i32_279 = arith.constant 0 : i32
    %652 = arith.addi %651, %c0_i32_279 : i32
    %c2_i32_280 = arith.constant 2 : i32
    %653 = arith.muli %652, %c2_i32_280 : i32
    %c0_i32_281 = arith.constant 0 : i32
    %654 = arith.addi %653, %c0_i32_281 : i32
    %c2_i32_282 = arith.constant 2 : i32
    %655 = arith.muli %654, %c2_i32_282 : i32
    %656 = arith.index_cast %655 : i32 to index
    %657 = memref.load %arg3[%656] : memref<128xf32, #tpu.memory_space<smem>>
    %658 = vector.broadcast %657 : f32 to vector<16x16xf32>
    %659 = arith.mulf %34, %658 : vector<16x16xf32>
    %660 = arith.addf %650, %659 : vector<16x16xf32>
    %c1_i32_283 = arith.constant 1 : i32
    %661 = arith.addi %655, %c1_i32_283 : i32
    %662 = arith.index_cast %661 : i32 to index
    %663 = memref.load %arg3[%662] : memref<128xf32, #tpu.memory_space<smem>>
    %664 = vector.broadcast %663 : f32 to vector<16x16xf32>
    %665 = arith.mulf %35, %664 : vector<16x16xf32>
    %666 = arith.addf %660, %665 : vector<16x16xf32>
    %c4_i32_284 = arith.constant 4 : i32
    %667 = arith.muli %649, %c4_i32_284 : i32
    %c0_i32_285 = arith.constant 0 : i32
    %668 = arith.addi %667, %c0_i32_285 : i32
    %c2_i32_286 = arith.constant 2 : i32
    %669 = arith.muli %668, %c2_i32_286 : i32
    %c1_i32_287 = arith.constant 1 : i32
    %670 = arith.addi %669, %c1_i32_287 : i32
    %c2_i32_288 = arith.constant 2 : i32
    %671 = arith.muli %670, %c2_i32_288 : i32
    %672 = arith.index_cast %671 : i32 to index
    %673 = memref.load %arg3[%672] : memref<128xf32, #tpu.memory_space<smem>>
    %674 = vector.broadcast %673 : f32 to vector<16x16xf32>
    %675 = arith.mulf %38, %674 : vector<16x16xf32>
    %676 = arith.addf %666, %675 : vector<16x16xf32>
    %c1_i32_289 = arith.constant 1 : i32
    %677 = arith.addi %671, %c1_i32_289 : i32
    %678 = arith.index_cast %677 : i32 to index
    %679 = memref.load %arg3[%678] : memref<128xf32, #tpu.memory_space<smem>>
    %680 = vector.broadcast %679 : f32 to vector<16x16xf32>
    %681 = arith.mulf %39, %680 : vector<16x16xf32>
    %682 = arith.addf %676, %681 : vector<16x16xf32>
    %c4_i32_290 = arith.constant 4 : i32
    %683 = arith.muli %649, %c4_i32_290 : i32
    %c1_i32_291 = arith.constant 1 : i32
    %684 = arith.addi %683, %c1_i32_291 : i32
    %c2_i32_292 = arith.constant 2 : i32
    %685 = arith.muli %684, %c2_i32_292 : i32
    %c0_i32_293 = arith.constant 0 : i32
    %686 = arith.addi %685, %c0_i32_293 : i32
    %c2_i32_294 = arith.constant 2 : i32
    %687 = arith.muli %686, %c2_i32_294 : i32
    %688 = arith.index_cast %687 : i32 to index
    %689 = memref.load %arg3[%688] : memref<128xf32, #tpu.memory_space<smem>>
    %690 = vector.broadcast %689 : f32 to vector<16x16xf32>
    %691 = arith.mulf %42, %690 : vector<16x16xf32>
    %692 = arith.addf %682, %691 : vector<16x16xf32>
    %c1_i32_295 = arith.constant 1 : i32
    %693 = arith.addi %687, %c1_i32_295 : i32
    %694 = arith.index_cast %693 : i32 to index
    %695 = memref.load %arg3[%694] : memref<128xf32, #tpu.memory_space<smem>>
    %696 = vector.broadcast %695 : f32 to vector<16x16xf32>
    %697 = arith.mulf %43, %696 : vector<16x16xf32>
    %698 = arith.addf %692, %697 : vector<16x16xf32>
    %c4_i32_296 = arith.constant 4 : i32
    %699 = arith.muli %649, %c4_i32_296 : i32
    %c1_i32_297 = arith.constant 1 : i32
    %700 = arith.addi %699, %c1_i32_297 : i32
    %c2_i32_298 = arith.constant 2 : i32
    %701 = arith.muli %700, %c2_i32_298 : i32
    %c1_i32_299 = arith.constant 1 : i32
    %702 = arith.addi %701, %c1_i32_299 : i32
    %c2_i32_300 = arith.constant 2 : i32
    %703 = arith.muli %702, %c2_i32_300 : i32
    %704 = arith.index_cast %703 : i32 to index
    %705 = memref.load %arg3[%704] : memref<128xf32, #tpu.memory_space<smem>>
    %706 = vector.broadcast %705 : f32 to vector<16x16xf32>
    %707 = arith.mulf %46, %706 : vector<16x16xf32>
    %708 = arith.addf %698, %707 : vector<16x16xf32>
    %c1_i32_301 = arith.constant 1 : i32
    %709 = arith.addi %703, %c1_i32_301 : i32
    %710 = arith.index_cast %709 : i32 to index
    %711 = memref.load %arg3[%710] : memref<128xf32, #tpu.memory_space<smem>>
    %712 = vector.broadcast %711 : f32 to vector<16x16xf32>
    %713 = arith.mulf %47, %712 : vector<16x16xf32>
    %714 = arith.addf %708, %713 : vector<16x16xf32>
    %c4_i32_302 = arith.constant 4 : i32
    %715 = arith.muli %649, %c4_i32_302 : i32
    %c2_i32_303 = arith.constant 2 : i32
    %716 = arith.addi %715, %c2_i32_303 : i32
    %c2_i32_304 = arith.constant 2 : i32
    %717 = arith.muli %716, %c2_i32_304 : i32
    %c0_i32_305 = arith.constant 0 : i32
    %718 = arith.addi %717, %c0_i32_305 : i32
    %c2_i32_306 = arith.constant 2 : i32
    %719 = arith.muli %718, %c2_i32_306 : i32
    %720 = arith.index_cast %719 : i32 to index
    %721 = memref.load %arg3[%720] : memref<128xf32, #tpu.memory_space<smem>>
    %722 = vector.broadcast %721 : f32 to vector<16x16xf32>
    %723 = arith.mulf %50, %722 : vector<16x16xf32>
    %724 = arith.addf %714, %723 : vector<16x16xf32>
    %c1_i32_307 = arith.constant 1 : i32
    %725 = arith.addi %719, %c1_i32_307 : i32
    %726 = arith.index_cast %725 : i32 to index
    %727 = memref.load %arg3[%726] : memref<128xf32, #tpu.memory_space<smem>>
    %728 = vector.broadcast %727 : f32 to vector<16x16xf32>
    %729 = arith.mulf %51, %728 : vector<16x16xf32>
    %730 = arith.addf %724, %729 : vector<16x16xf32>
    %c4_i32_308 = arith.constant 4 : i32
    %731 = arith.muli %649, %c4_i32_308 : i32
    %c2_i32_309 = arith.constant 2 : i32
    %732 = arith.addi %731, %c2_i32_309 : i32
    %c2_i32_310 = arith.constant 2 : i32
    %733 = arith.muli %732, %c2_i32_310 : i32
    %c1_i32_311 = arith.constant 1 : i32
    %734 = arith.addi %733, %c1_i32_311 : i32
    %c2_i32_312 = arith.constant 2 : i32
    %735 = arith.muli %734, %c2_i32_312 : i32
    %736 = arith.index_cast %735 : i32 to index
    %737 = memref.load %arg3[%736] : memref<128xf32, #tpu.memory_space<smem>>
    %738 = vector.broadcast %737 : f32 to vector<16x16xf32>
    %739 = arith.mulf %54, %738 : vector<16x16xf32>
    %740 = arith.addf %730, %739 : vector<16x16xf32>
    %c1_i32_313 = arith.constant 1 : i32
    %741 = arith.addi %735, %c1_i32_313 : i32
    %742 = arith.index_cast %741 : i32 to index
    %743 = memref.load %arg3[%742] : memref<128xf32, #tpu.memory_space<smem>>
    %744 = vector.broadcast %743 : f32 to vector<16x16xf32>
    %745 = arith.mulf %55, %744 : vector<16x16xf32>
    %746 = arith.addf %740, %745 : vector<16x16xf32>
    %c4_i32_314 = arith.constant 4 : i32
    %747 = arith.muli %649, %c4_i32_314 : i32
    %c3_i32_315 = arith.constant 3 : i32
    %748 = arith.addi %747, %c3_i32_315 : i32
    %c2_i32_316 = arith.constant 2 : i32
    %749 = arith.muli %748, %c2_i32_316 : i32
    %c0_i32_317 = arith.constant 0 : i32
    %750 = arith.addi %749, %c0_i32_317 : i32
    %c2_i32_318 = arith.constant 2 : i32
    %751 = arith.muli %750, %c2_i32_318 : i32
    %752 = arith.index_cast %751 : i32 to index
    %753 = memref.load %arg3[%752] : memref<128xf32, #tpu.memory_space<smem>>
    %754 = vector.broadcast %753 : f32 to vector<16x16xf32>
    %755 = arith.mulf %58, %754 : vector<16x16xf32>
    %756 = arith.addf %746, %755 : vector<16x16xf32>
    %c1_i32_319 = arith.constant 1 : i32
    %757 = arith.addi %751, %c1_i32_319 : i32
    %758 = arith.index_cast %757 : i32 to index
    %759 = memref.load %arg3[%758] : memref<128xf32, #tpu.memory_space<smem>>
    %760 = vector.broadcast %759 : f32 to vector<16x16xf32>
    %761 = arith.mulf %59, %760 : vector<16x16xf32>
    %762 = arith.addf %756, %761 : vector<16x16xf32>
    %c4_i32_320 = arith.constant 4 : i32
    %763 = arith.muli %649, %c4_i32_320 : i32
    %c3_i32_321 = arith.constant 3 : i32
    %764 = arith.addi %763, %c3_i32_321 : i32
    %c2_i32_322 = arith.constant 2 : i32
    %765 = arith.muli %764, %c2_i32_322 : i32
    %c1_i32_323 = arith.constant 1 : i32
    %766 = arith.addi %765, %c1_i32_323 : i32
    %c2_i32_324 = arith.constant 2 : i32
    %767 = arith.muli %766, %c2_i32_324 : i32
    %768 = arith.index_cast %767 : i32 to index
    %769 = memref.load %arg3[%768] : memref<128xf32, #tpu.memory_space<smem>>
    %770 = vector.broadcast %769 : f32 to vector<16x16xf32>
    %771 = arith.mulf %62, %770 : vector<16x16xf32>
    %772 = arith.addf %762, %771 : vector<16x16xf32>
    %c1_i32_325 = arith.constant 1 : i32
    %773 = arith.addi %767, %c1_i32_325 : i32
    %774 = arith.index_cast %773 : i32 to index
    %775 = memref.load %arg3[%774] : memref<128xf32, #tpu.memory_space<smem>>
    %776 = vector.broadcast %775 : f32 to vector<16x16xf32>
    %777 = arith.mulf %63, %776 : vector<16x16xf32>
    %778 = arith.addf %772, %777 : vector<16x16xf32>
    %cst_326 = arith.constant dense<0.000000e+00> : vector<8x16xf32>
    %779 = tpu.matmul %23, %778, %cst_326 {dimension_numbers = #tpu.dot_dimension_numbers<[1], [0], [0], [1], [0, 0, 1, 1], [], []>, precision = #tpu.contract_precision<fp32>} : vector<8x16xf32>, vector<16x16xf32>, vector<8x16xf32> -> vector<8x16xf32>
    %cst_327 = arith.constant dense<0.000000e+00> : vector<8x16xf32>
    %780 = tpu.matmul %31, %778, %cst_327 {dimension_numbers = #tpu.dot_dimension_numbers<[1], [0], [0], [1], [0, 0, 1, 1], [], []>, precision = #tpu.contract_precision<fp32>} : vector<8x16xf32>, vector<16x16xf32>, vector<8x16xf32> -> vector<8x16xf32>
    %781 = arith.maximumf %779, %780 : vector<8x16xf32>
    %cst_328 = arith.constant dense<0.000000e+00> : vector<8x8xf32>
    %782 = tpu.matmul %781, %7, %cst_328 {dimension_numbers = #tpu.dot_dimension_numbers<[1], [0], [0], [1], [0, 0, 1, 1], [], []>, precision = #tpu.contract_precision<fp32>} : vector<8x16xf32>, vector<16x8xf32>, vector<8x8xf32> -> vector<8x8xf32>
    %cst_329 = arith.constant dense<0.000000e+00> : vector<8x8xf32>
    %783 = tpu.matmul %781, %15, %cst_329 {dimension_numbers = #tpu.dot_dimension_numbers<[1], [0], [0], [1], [0, 0, 1, 1], [], []>, precision = #tpu.contract_precision<fp32>} : vector<8x16xf32>, vector<16x8xf32>, vector<8x8xf32> -> vector<8x8xf32>
    %784 = arith.maximumf %782, %783 : vector<8x8xf32>
    %785 = arith.index_cast %649 : i32 to index
    %786 = memref.load %arg4[%785] : memref<8xf32, #tpu.memory_space<smem>>
    %787 = vector.broadcast %786 : f32 to vector<8x8xf32>
    %788 = arith.addf %784, %787 : vector<8x8xf32>
    %cst_330 = arith.constant 0.000000e+00 : f32
    %789 = vector.broadcast %cst_330 : f32 to vector<8x8xf32>
    %790 = arith.maximumf %788, %789 : vector<8x8xf32>
    %c0_331 = arith.constant 0 : index
    %c4 = arith.constant 4 : index
    %c0_332 = arith.constant 0 : index
    %c0_333 = arith.constant 0 : index
    %791 = vector.load %arg5[%c0_331, %c4, %c0_332, %c0_333] : memref<1x8x8x8xf32, #tpu.memory_space<vmem>>, vector<1x1x8x8xf32>
    %792 = vector.shape_cast %791 : vector<1x1x8x8xf32> to vector<8x8xf32>
    %793 = vector.shape_cast %790 : vector<8x8xf32> to vector<1x1x8x8xf32>
    tpu.vector_store %arg5[%c0_331, %c4, %c0_332, %c0_333], %793 {strides = array<i32>} : memref<1x8x8x8xf32, #tpu.memory_space<vmem>>, vector<1x1x8x8xf32>,
    %c8_i32_334 = arith.constant 8 : i32
    %794 = arith.muli %arg1, %c8_i32_334 : i32
    %c5_i32 = arith.constant 5 : i32
    %795 = arith.addi %794, %c5_i32 : i32
    %cst_335 = arith.constant 0.000000e+00 : f32
    %796 = vector.broadcast %cst_335 : f32 to vector<16x16xf32>
    %c4_i32_336 = arith.constant 4 : i32
    %797 = arith.muli %795, %c4_i32_336 : i32
    %c0_i32_337 = arith.constant 0 : i32
    %798 = arith.addi %797, %c0_i32_337 : i32
    %c2_i32_338 = arith.constant 2 : i32
    %799 = arith.muli %798, %c2_i32_338 : i32
    %c0_i32_339 = arith.constant 0 : i32
    %800 = arith.addi %799, %c0_i32_339 : i32
    %c2_i32_340 = arith.constant 2 : i32
    %801 = arith.muli %800, %c2_i32_340 : i32
    %802 = arith.index_cast %801 : i32 to index
    %803 = memref.load %arg3[%802] : memref<128xf32, #tpu.memory_space<smem>>
    %804 = vector.broadcast %803 : f32 to vector<16x16xf32>
    %805 = arith.mulf %34, %804 : vector<16x16xf32>
    %806 = arith.addf %796, %805 : vector<16x16xf32>
    %c1_i32_341 = arith.constant 1 : i32
    %807 = arith.addi %801, %c1_i32_341 : i32
    %808 = arith.index_cast %807 : i32 to index
    %809 = memref.load %arg3[%808] : memref<128xf32, #tpu.memory_space<smem>>
    %810 = vector.broadcast %809 : f32 to vector<16x16xf32>
    %811 = arith.mulf %35, %810 : vector<16x16xf32>
    %812 = arith.addf %806, %811 : vector<16x16xf32>
    %c4_i32_342 = arith.constant 4 : i32
    %813 = arith.muli %795, %c4_i32_342 : i32
    %c0_i32_343 = arith.constant 0 : i32
    %814 = arith.addi %813, %c0_i32_343 : i32
    %c2_i32_344 = arith.constant 2 : i32
    %815 = arith.muli %814, %c2_i32_344 : i32
    %c1_i32_345 = arith.constant 1 : i32
    %816 = arith.addi %815, %c1_i32_345 : i32
    %c2_i32_346 = arith.constant 2 : i32
    %817 = arith.muli %816, %c2_i32_346 : i32
    %818 = arith.index_cast %817 : i32 to index
    %819 = memref.load %arg3[%818] : memref<128xf32, #tpu.memory_space<smem>>
    %820 = vector.broadcast %819 : f32 to vector<16x16xf32>
    %821 = arith.mulf %38, %820 : vector<16x16xf32>
    %822 = arith.addf %812, %821 : vector<16x16xf32>
    %c1_i32_347 = arith.constant 1 : i32
    %823 = arith.addi %817, %c1_i32_347 : i32
    %824 = arith.index_cast %823 : i32 to index
    %825 = memref.load %arg3[%824] : memref<128xf32, #tpu.memory_space<smem>>
    %826 = vector.broadcast %825 : f32 to vector<16x16xf32>
    %827 = arith.mulf %39, %826 : vector<16x16xf32>
    %828 = arith.addf %822, %827 : vector<16x16xf32>
    %c4_i32_348 = arith.constant 4 : i32
    %829 = arith.muli %795, %c4_i32_348 : i32
    %c1_i32_349 = arith.constant 1 : i32
    %830 = arith.addi %829, %c1_i32_349 : i32
    %c2_i32_350 = arith.constant 2 : i32
    %831 = arith.muli %830, %c2_i32_350 : i32
    %c0_i32_351 = arith.constant 0 : i32
    %832 = arith.addi %831, %c0_i32_351 : i32
    %c2_i32_352 = arith.constant 2 : i32
    %833 = arith.muli %832, %c2_i32_352 : i32
    %834 = arith.index_cast %833 : i32 to index
    %835 = memref.load %arg3[%834] : memref<128xf32, #tpu.memory_space<smem>>
    %836 = vector.broadcast %835 : f32 to vector<16x16xf32>
    %837 = arith.mulf %42, %836 : vector<16x16xf32>
    %838 = arith.addf %828, %837 : vector<16x16xf32>
    %c1_i32_353 = arith.constant 1 : i32
    %839 = arith.addi %833, %c1_i32_353 : i32
    %840 = arith.index_cast %839 : i32 to index
    %841 = memref.load %arg3[%840] : memref<128xf32, #tpu.memory_space<smem>>
    %842 = vector.broadcast %841 : f32 to vector<16x16xf32>
    %843 = arith.mulf %43, %842 : vector<16x16xf32>
    %844 = arith.addf %838, %843 : vector<16x16xf32>
    %c4_i32_354 = arith.constant 4 : i32
    %845 = arith.muli %795, %c4_i32_354 : i32
    %c1_i32_355 = arith.constant 1 : i32
    %846 = arith.addi %845, %c1_i32_355 : i32
    %c2_i32_356 = arith.constant 2 : i32
    %847 = arith.muli %846, %c2_i32_356 : i32
    %c1_i32_357 = arith.constant 1 : i32
    %848 = arith.addi %847, %c1_i32_357 : i32
    %c2_i32_358 = arith.constant 2 : i32
    %849 = arith.muli %848, %c2_i32_358 : i32
    %850 = arith.index_cast %849 : i32 to index
    %851 = memref.load %arg3[%850] : memref<128xf32, #tpu.memory_space<smem>>
    %852 = vector.broadcast %851 : f32 to vector<16x16xf32>
    %853 = arith.mulf %46, %852 : vector<16x16xf32>
    %854 = arith.addf %844, %853 : vector<16x16xf32>
    %c1_i32_359 = arith.constant 1 : i32
    %855 = arith.addi %849, %c1_i32_359 : i32
    %856 = arith.index_cast %855 : i32 to index
    %857 = memref.load %arg3[%856] : memref<128xf32, #tpu.memory_space<smem>>
    %858 = vector.broadcast %857 : f32 to vector<16x16xf32>
    %859 = arith.mulf %47, %858 : vector<16x16xf32>
    %860 = arith.addf %854, %859 : vector<16x16xf32>
    %c4_i32_360 = arith.constant 4 : i32
    %861 = arith.muli %795, %c4_i32_360 : i32
    %c2_i32_361 = arith.constant 2 : i32
    %862 = arith.addi %861, %c2_i32_361 : i32
    %c2_i32_362 = arith.constant 2 : i32
    %863 = arith.muli %862, %c2_i32_362 : i32
    %c0_i32_363 = arith.constant 0 : i32
    %864 = arith.addi %863, %c0_i32_363 : i32
    %c2_i32_364 = arith.constant 2 : i32
    %865 = arith.muli %864, %c2_i32_364 : i32
    %866 = arith.index_cast %865 : i32 to index
    %867 = memref.load %arg3[%866] : memref<128xf32, #tpu.memory_space<smem>>
    %868 = vector.broadcast %867 : f32 to vector<16x16xf32>
    %869 = arith.mulf %50, %868 : vector<16x16xf32>
    %870 = arith.addf %860, %869 : vector<16x16xf32>
    %c1_i32_365 = arith.constant 1 : i32
    %871 = arith.addi %865, %c1_i32_365 : i32
    %872 = arith.index_cast %871 : i32 to index
    %873 = memref.load %arg3[%872] : memref<128xf32, #tpu.memory_space<smem>>
    %874 = vector.broadcast %873 : f32 to vector<16x16xf32>
    %875 = arith.mulf %51, %874 : vector<16x16xf32>
    %876 = arith.addf %870, %875 : vector<16x16xf32>
    %c4_i32_366 = arith.constant 4 : i32
    %877 = arith.muli %795, %c4_i32_366 : i32
    %c2_i32_367 = arith.constant 2 : i32
    %878 = arith.addi %877, %c2_i32_367 : i32
    %c2_i32_368 = arith.constant 2 : i32
    %879 = arith.muli %878, %c2_i32_368 : i32
    %c1_i32_369 = arith.constant 1 : i32
    %880 = arith.addi %879, %c1_i32_369 : i32
    %c2_i32_370 = arith.constant 2 : i32
    %881 = arith.muli %880, %c2_i32_370 : i32
    %882 = arith.index_cast %881 : i32 to index
    %883 = memref.load %arg3[%882] : memref<128xf32, #tpu.memory_space<smem>>
    %884 = vector.broadcast %883 : f32 to vector<16x16xf32>
    %885 = arith.mulf %54, %884 : vector<16x16xf32>
    %886 = arith.addf %876, %885 : vector<16x16xf32>
    %c1_i32_371 = arith.constant 1 : i32
    %887 = arith.addi %881, %c1_i32_371 : i32
    %888 = arith.index_cast %887 : i32 to index
    %889 = memref.load %arg3[%888] : memref<128xf32, #tpu.memory_space<smem>>
    %890 = vector.broadcast %889 : f32 to vector<16x16xf32>
    %891 = arith.mulf %55, %890 : vector<16x16xf32>
    %892 = arith.addf %886, %891 : vector<16x16xf32>
    %c4_i32_372 = arith.constant 4 : i32
    %893 = arith.muli %795, %c4_i32_372 : i32
    %c3_i32_373 = arith.constant 3 : i32
    %894 = arith.addi %893, %c3_i32_373 : i32
    %c2_i32_374 = arith.constant 2 : i32
    %895 = arith.muli %894, %c2_i32_374 : i32
    %c0_i32_375 = arith.constant 0 : i32
    %896 = arith.addi %895, %c0_i32_375 : i32
    %c2_i32_376 = arith.constant 2 : i32
    %897 = arith.muli %896, %c2_i32_376 : i32
    %898 = arith.index_cast %897 : i32 to index
    %899 = memref.load %arg3[%898] : memref<128xf32, #tpu.memory_space<smem>>
    %900 = vector.broadcast %899 : f32 to vector<16x16xf32>
    %901 = arith.mulf %58, %900 : vector<16x16xf32>
    %902 = arith.addf %892, %901 : vector<16x16xf32>
    %c1_i32_377 = arith.constant 1 : i32
    %903 = arith.addi %897, %c1_i32_377 : i32
    %904 = arith.index_cast %903 : i32 to index
    %905 = memref.load %arg3[%904] : memref<128xf32, #tpu.memory_space<smem>>
    %906 = vector.broadcast %905 : f32 to vector<16x16xf32>
    %907 = arith.mulf %59, %906 : vector<16x16xf32>
    %908 = arith.addf %902, %907 : vector<16x16xf32>
    %c4_i32_378 = arith.constant 4 : i32
    %909 = arith.muli %795, %c4_i32_378 : i32
    %c3_i32_379 = arith.constant 3 : i32
    %910 = arith.addi %909, %c3_i32_379 : i32
    %c2_i32_380 = arith.constant 2 : i32
    %911 = arith.muli %910, %c2_i32_380 : i32
    %c1_i32_381 = arith.constant 1 : i32
    %912 = arith.addi %911, %c1_i32_381 : i32
    %c2_i32_382 = arith.constant 2 : i32
    %913 = arith.muli %912, %c2_i32_382 : i32
    %914 = arith.index_cast %913 : i32 to index
    %915 = memref.load %arg3[%914] : memref<128xf32, #tpu.memory_space<smem>>
    %916 = vector.broadcast %915 : f32 to vector<16x16xf32>
    %917 = arith.mulf %62, %916 : vector<16x16xf32>
    %918 = arith.addf %908, %917 : vector<16x16xf32>
    %c1_i32_383 = arith.constant 1 : i32
    %919 = arith.addi %913, %c1_i32_383 : i32
    %920 = arith.index_cast %919 : i32 to index
    %921 = memref.load %arg3[%920] : memref<128xf32, #tpu.memory_space<smem>>
    %922 = vector.broadcast %921 : f32 to vector<16x16xf32>
    %923 = arith.mulf %63, %922 : vector<16x16xf32>
    %924 = arith.addf %918, %923 : vector<16x16xf32>
    %cst_384 = arith.constant dense<0.000000e+00> : vector<8x16xf32>
    %925 = tpu.matmul %23, %924, %cst_384 {dimension_numbers = #tpu.dot_dimension_numbers<[1], [0], [0], [1], [0, 0, 1, 1], [], []>, precision = #tpu.contract_precision<fp32>} : vector<8x16xf32>, vector<16x16xf32>, vector<8x16xf32> -> vector<8x16xf32>
    %cst_385 = arith.constant dense<0.000000e+00> : vector<8x16xf32>
    %926 = tpu.matmul %31, %924, %cst_385 {dimension_numbers = #tpu.dot_dimension_numbers<[1], [0], [0], [1], [0, 0, 1, 1], [], []>, precision = #tpu.contract_precision<fp32>} : vector<8x16xf32>, vector<16x16xf32>, vector<8x16xf32> -> vector<8x16xf32>
    %927 = arith.maximumf %925, %926 : vector<8x16xf32>
    %cst_386 = arith.constant dense<0.000000e+00> : vector<8x8xf32>
    %928 = tpu.matmul %927, %7, %cst_386 {dimension_numbers = #tpu.dot_dimension_numbers<[1], [0], [0], [1], [0, 0, 1, 1], [], []>, precision = #tpu.contract_precision<fp32>} : vector<8x16xf32>, vector<16x8xf32>, vector<8x8xf32> -> vector<8x8xf32>
    %cst_387 = arith.constant dense<0.000000e+00> : vector<8x8xf32>
    %929 = tpu.matmul %927, %15, %cst_387 {dimension_numbers = #tpu.dot_dimension_numbers<[1], [0], [0], [1], [0, 0, 1, 1], [], []>, precision = #tpu.contract_precision<fp32>} : vector<8x16xf32>, vector<16x8xf32>, vector<8x8xf32> -> vector<8x8xf32>
    %930 = arith.maximumf %928, %929 : vector<8x8xf32>
    %931 = arith.index_cast %795 : i32 to index
    %932 = memref.load %arg4[%931] : memref<8xf32, #tpu.memory_space<smem>>
    %933 = vector.broadcast %932 : f32 to vector<8x8xf32>
    %934 = arith.addf %930, %933 : vector<8x8xf32>
    %cst_388 = arith.constant 0.000000e+00 : f32
    %935 = vector.broadcast %cst_388 : f32 to vector<8x8xf32>
    %936 = arith.maximumf %934, %935 : vector<8x8xf32>
    %c0_389 = arith.constant 0 : index
    %c5 = arith.constant 5 : index
    %c0_390 = arith.constant 0 : index
    %c0_391 = arith.constant 0 : index
    %937 = vector.load %arg5[%c0_389, %c5, %c0_390, %c0_391] : memref<1x8x8x8xf32, #tpu.memory_space<vmem>>, vector<1x1x8x8xf32>
    %938 = vector.shape_cast %937 : vector<1x1x8x8xf32> to vector<8x8xf32>
    %939 = vector.shape_cast %936 : vector<8x8xf32> to vector<1x1x8x8xf32>
    tpu.vector_store %arg5[%c0_389, %c5, %c0_390, %c0_391], %939 {strides = array<i32>} : memref<1x8x8x8xf32, #tpu.memory_space<vmem>>, vector<1x1x8x8xf32>,
    %c8_i32_392 = arith.constant 8 : i32
    %940 = arith.muli %arg1, %c8_i32_392 : i32
    %c6_i32 = arith.constant 6 : i32
    %941 = arith.addi %940, %c6_i32 : i32
    %cst_393 = arith.constant 0.000000e+00 : f32
    %942 = vector.broadcast %cst_393 : f32 to vector<16x16xf32>
    %c4_i32_394 = arith.constant 4 : i32
    %943 = arith.muli %941, %c4_i32_394 : i32
    %c0_i32_395 = arith.constant 0 : i32
    %944 = arith.addi %943, %c0_i32_395 : i32
    %c2_i32_396 = arith.constant 2 : i32
    %945 = arith.muli %944, %c2_i32_396 : i32
    %c0_i32_397 = arith.constant 0 : i32
    %946 = arith.addi %945, %c0_i32_397 : i32
    %c2_i32_398 = arith.constant 2 : i32
    %947 = arith.muli %946, %c2_i32_398 : i32
    %948 = arith.index_cast %947 : i32 to index
    %949 = memref.load %arg3[%948] : memref<128xf32, #tpu.memory_space<smem>>
    %950 = vector.broadcast %949 : f32 to vector<16x16xf32>
    %951 = arith.mulf %34, %950 : vector<16x16xf32>
    %952 = arith.addf %942, %951 : vector<16x16xf32>
    %c1_i32_399 = arith.constant 1 : i32
    %953 = arith.addi %947, %c1_i32_399 : i32
    %954 = arith.index_cast %953 : i32 to index
    %955 = memref.load %arg3[%954] : memref<128xf32, #tpu.memory_space<smem>>
    %956 = vector.broadcast %955 : f32 to vector<16x16xf32>
    %957 = arith.mulf %35, %956 : vector<16x16xf32>
    %958 = arith.addf %952, %957 : vector<16x16xf32>
    %c4_i32_400 = arith.constant 4 : i32
    %959 = arith.muli %941, %c4_i32_400 : i32
    %c0_i32_401 = arith.constant 0 : i32
    %960 = arith.addi %959, %c0_i32_401 : i32
    %c2_i32_402 = arith.constant 2 : i32
    %961 = arith.muli %960, %c2_i32_402 : i32
    %c1_i32_403 = arith.constant 1 : i32
    %962 = arith.addi %961, %c1_i32_403 : i32
    %c2_i32_404 = arith.constant 2 : i32
    %963 = arith.muli %962, %c2_i32_404 : i32
    %964 = arith.index_cast %963 : i32 to index
    %965 = memref.load %arg3[%964] : memref<128xf32, #tpu.memory_space<smem>>
    %966 = vector.broadcast %965 : f32 to vector<16x16xf32>
    %967 = arith.mulf %38, %966 : vector<16x16xf32>
    %968 = arith.addf %958, %967 : vector<16x16xf32>
    %c1_i32_405 = arith.constant 1 : i32
    %969 = arith.addi %963, %c1_i32_405 : i32
    %970 = arith.index_cast %969 : i32 to index
    %971 = memref.load %arg3[%970] : memref<128xf32, #tpu.memory_space<smem>>
    %972 = vector.broadcast %971 : f32 to vector<16x16xf32>
    %973 = arith.mulf %39, %972 : vector<16x16xf32>
    %974 = arith.addf %968, %973 : vector<16x16xf32>
    %c4_i32_406 = arith.constant 4 : i32
    %975 = arith.muli %941, %c4_i32_406 : i32
    %c1_i32_407 = arith.constant 1 : i32
    %976 = arith.addi %975, %c1_i32_407 : i32
    %c2_i32_408 = arith.constant 2 : i32
    %977 = arith.muli %976, %c2_i32_408 : i32
    %c0_i32_409 = arith.constant 0 : i32
    %978 = arith.addi %977, %c0_i32_409 : i32
    %c2_i32_410 = arith.constant 2 : i32
    %979 = arith.muli %978, %c2_i32_410 : i32
    %980 = arith.index_cast %979 : i32 to index
    %981 = memref.load %arg3[%980] : memref<128xf32, #tpu.memory_space<smem>>
    %982 = vector.broadcast %981 : f32 to vector<16x16xf32>
    %983 = arith.mulf %42, %982 : vector<16x16xf32>
    %984 = arith.addf %974, %983 : vector<16x16xf32>
    %c1_i32_411 = arith.constant 1 : i32
    %985 = arith.addi %979, %c1_i32_411 : i32
    %986 = arith.index_cast %985 : i32 to index
    %987 = memref.load %arg3[%986] : memref<128xf32, #tpu.memory_space<smem>>
    %988 = vector.broadcast %987 : f32 to vector<16x16xf32>
    %989 = arith.mulf %43, %988 : vector<16x16xf32>
    %990 = arith.addf %984, %989 : vector<16x16xf32>
    %c4_i32_412 = arith.constant 4 : i32
    %991 = arith.muli %941, %c4_i32_412 : i32
    %c1_i32_413 = arith.constant 1 : i32
    %992 = arith.addi %991, %c1_i32_413 : i32
    %c2_i32_414 = arith.constant 2 : i32
    %993 = arith.muli %992, %c2_i32_414 : i32
    %c1_i32_415 = arith.constant 1 : i32
    %994 = arith.addi %993, %c1_i32_415 : i32
    %c2_i32_416 = arith.constant 2 : i32
    %995 = arith.muli %994, %c2_i32_416 : i32
    %996 = arith.index_cast %995 : i32 to index
    %997 = memref.load %arg3[%996] : memref<128xf32, #tpu.memory_space<smem>>
    %998 = vector.broadcast %997 : f32 to vector<16x16xf32>
    %999 = arith.mulf %46, %998 : vector<16x16xf32>
    %1000 = arith.addf %990, %999 : vector<16x16xf32>
    %c1_i32_417 = arith.constant 1 : i32
    %1001 = arith.addi %995, %c1_i32_417 : i32
    %1002 = arith.index_cast %1001 : i32 to index
    %1003 = memref.load %arg3[%1002] : memref<128xf32, #tpu.memory_space<smem>>
    %1004 = vector.broadcast %1003 : f32 to vector<16x16xf32>
    %1005 = arith.mulf %47, %1004 : vector<16x16xf32>
    %1006 = arith.addf %1000, %1005 : vector<16x16xf32>
    %c4_i32_418 = arith.constant 4 : i32
    %1007 = arith.muli %941, %c4_i32_418 : i32
    %c2_i32_419 = arith.constant 2 : i32
    %1008 = arith.addi %1007, %c2_i32_419 : i32
    %c2_i32_420 = arith.constant 2 : i32
    %1009 = arith.muli %1008, %c2_i32_420 : i32
    %c0_i32_421 = arith.constant 0 : i32
    %1010 = arith.addi %1009, %c0_i32_421 : i32
    %c2_i32_422 = arith.constant 2 : i32
    %1011 = arith.muli %1010, %c2_i32_422 : i32
    %1012 = arith.index_cast %1011 : i32 to index
    %1013 = memref.load %arg3[%1012] : memref<128xf32, #tpu.memory_space<smem>>
    %1014 = vector.broadcast %1013 : f32 to vector<16x16xf32>
    %1015 = arith.mulf %50, %1014 : vector<16x16xf32>
    %1016 = arith.addf %1006, %1015 : vector<16x16xf32>
    %c1_i32_423 = arith.constant 1 : i32
    %1017 = arith.addi %1011, %c1_i32_423 : i32
    %1018 = arith.index_cast %1017 : i32 to index
    %1019 = memref.load %arg3[%1018] : memref<128xf32, #tpu.memory_space<smem>>
    %1020 = vector.broadcast %1019 : f32 to vector<16x16xf32>
    %1021 = arith.mulf %51, %1020 : vector<16x16xf32>
    %1022 = arith.addf %1016, %1021 : vector<16x16xf32>
    %c4_i32_424 = arith.constant 4 : i32
    %1023 = arith.muli %941, %c4_i32_424 : i32
    %c2_i32_425 = arith.constant 2 : i32
    %1024 = arith.addi %1023, %c2_i32_425 : i32
    %c2_i32_426 = arith.constant 2 : i32
    %1025 = arith.muli %1024, %c2_i32_426 : i32
    %c1_i32_427 = arith.constant 1 : i32
    %1026 = arith.addi %1025, %c1_i32_427 : i32
    %c2_i32_428 = arith.constant 2 : i32
    %1027 = arith.muli %1026, %c2_i32_428 : i32
    %1028 = arith.index_cast %1027 : i32 to index
    %1029 = memref.load %arg3[%1028] : memref<128xf32, #tpu.memory_space<smem>>
    %1030 = vector.broadcast %1029 : f32 to vector<16x16xf32>
    %1031 = arith.mulf %54, %1030 : vector<16x16xf32>
    %1032 = arith.addf %1022, %1031 : vector<16x16xf32>
    %c1_i32_429 = arith.constant 1 : i32
    %1033 = arith.addi %1027, %c1_i32_429 : i32
    %1034 = arith.index_cast %1033 : i32 to index
    %1035 = memref.load %arg3[%1034] : memref<128xf32, #tpu.memory_space<smem>>
    %1036 = vector.broadcast %1035 : f32 to vector<16x16xf32>
    %1037 = arith.mulf %55, %1036 : vector<16x16xf32>
    %1038 = arith.addf %1032, %1037 : vector<16x16xf32>
    %c4_i32_430 = arith.constant 4 : i32
    %1039 = arith.muli %941, %c4_i32_430 : i32
    %c3_i32_431 = arith.constant 3 : i32
    %1040 = arith.addi %1039, %c3_i32_431 : i32
    %c2_i32_432 = arith.constant 2 : i32
    %1041 = arith.muli %1040, %c2_i32_432 : i32
    %c0_i32_433 = arith.constant 0 : i32
    %1042 = arith.addi %1041, %c0_i32_433 : i32
    %c2_i32_434 = arith.constant 2 : i32
    %1043 = arith.muli %1042, %c2_i32_434 : i32
    %1044 = arith.index_cast %1043 : i32 to index
    %1045 = memref.load %arg3[%1044] : memref<128xf32, #tpu.memory_space<smem>>
    %1046 = vector.broadcast %1045 : f32 to vector<16x16xf32>
    %1047 = arith.mulf %58, %1046 : vector<16x16xf32>
    %1048 = arith.addf %1038, %1047 : vector<16x16xf32>
    %c1_i32_435 = arith.constant 1 : i32
    %1049 = arith.addi %1043, %c1_i32_435 : i32
    %1050 = arith.index_cast %1049 : i32 to index
    %1051 = memref.load %arg3[%1050] : memref<128xf32, #tpu.memory_space<smem>>
    %1052 = vector.broadcast %1051 : f32 to vector<16x16xf32>
    %1053 = arith.mulf %59, %1052 : vector<16x16xf32>
    %1054 = arith.addf %1048, %1053 : vector<16x16xf32>
    %c4_i32_436 = arith.constant 4 : i32
    %1055 = arith.muli %941, %c4_i32_436 : i32
    %c3_i32_437 = arith.constant 3 : i32
    %1056 = arith.addi %1055, %c3_i32_437 : i32
    %c2_i32_438 = arith.constant 2 : i32
    %1057 = arith.muli %1056, %c2_i32_438 : i32
    %c1_i32_439 = arith.constant 1 : i32
    %1058 = arith.addi %1057, %c1_i32_439 : i32
    %c2_i32_440 = arith.constant 2 : i32
    %1059 = arith.muli %1058, %c2_i32_440 : i32
    %1060 = arith.index_cast %1059 : i32 to index
    %1061 = memref.load %arg3[%1060] : memref<128xf32, #tpu.memory_space<smem>>
    %1062 = vector.broadcast %1061 : f32 to vector<16x16xf32>
    %1063 = arith.mulf %62, %1062 : vector<16x16xf32>
    %1064 = arith.addf %1054, %1063 : vector<16x16xf32>
    %c1_i32_441 = arith.constant 1 : i32
    %1065 = arith.addi %1059, %c1_i32_441 : i32
    %1066 = arith.index_cast %1065 : i32 to index
    %1067 = memref.load %arg3[%1066] : memref<128xf32, #tpu.memory_space<smem>>
    %1068 = vector.broadcast %1067 : f32 to vector<16x16xf32>
    %1069 = arith.mulf %63, %1068 : vector<16x16xf32>
    %1070 = arith.addf %1064, %1069 : vector<16x16xf32>
    %cst_442 = arith.constant dense<0.000000e+00> : vector<8x16xf32>
    %1071 = tpu.matmul %23, %1070, %cst_442 {dimension_numbers = #tpu.dot_dimension_numbers<[1], [0], [0], [1], [0, 0, 1, 1], [], []>, precision = #tpu.contract_precision<fp32>} : vector<8x16xf32>, vector<16x16xf32>, vector<8x16xf32> -> vector<8x16xf32>
    %cst_443 = arith.constant dense<0.000000e+00> : vector<8x16xf32>
    %1072 = tpu.matmul %31, %1070, %cst_443 {dimension_numbers = #tpu.dot_dimension_numbers<[1], [0], [0], [1], [0, 0, 1, 1], [], []>, precision = #tpu.contract_precision<fp32>} : vector<8x16xf32>, vector<16x16xf32>, vector<8x16xf32> -> vector<8x16xf32>
    %1073 = arith.maximumf %1071, %1072 : vector<8x16xf32>
    %cst_444 = arith.constant dense<0.000000e+00> : vector<8x8xf32>
    %1074 = tpu.matmul %1073, %7, %cst_444 {dimension_numbers = #tpu.dot_dimension_numbers<[1], [0], [0], [1], [0, 0, 1, 1], [], []>, precision = #tpu.contract_precision<fp32>} : vector<8x16xf32>, vector<16x8xf32>, vector<8x8xf32> -> vector<8x8xf32>
    %cst_445 = arith.constant dense<0.000000e+00> : vector<8x8xf32>
    %1075 = tpu.matmul %1073, %15, %cst_445 {dimension_numbers = #tpu.dot_dimension_numbers<[1], [0], [0], [1], [0, 0, 1, 1], [], []>, precision = #tpu.contract_precision<fp32>} : vector<8x16xf32>, vector<16x8xf32>, vector<8x8xf32> -> vector<8x8xf32>
    %1076 = arith.maximumf %1074, %1075 : vector<8x8xf32>
    %1077 = arith.index_cast %941 : i32 to index
    %1078 = memref.load %arg4[%1077] : memref<8xf32, #tpu.memory_space<smem>>
    %1079 = vector.broadcast %1078 : f32 to vector<8x8xf32>
    %1080 = arith.addf %1076, %1079 : vector<8x8xf32>
    %cst_446 = arith.constant 0.000000e+00 : f32
    %1081 = vector.broadcast %cst_446 : f32 to vector<8x8xf32>
    %1082 = arith.maximumf %1080, %1081 : vector<8x8xf32>
    %c0_447 = arith.constant 0 : index
    %c6 = arith.constant 6 : index
    %c0_448 = arith.constant 0 : index
    %c0_449 = arith.constant 0 : index
    %1083 = vector.load %arg5[%c0_447, %c6, %c0_448, %c0_449] : memref<1x8x8x8xf32, #tpu.memory_space<vmem>>, vector<1x1x8x8xf32>
    %1084 = vector.shape_cast %1083 : vector<1x1x8x8xf32> to vector<8x8xf32>
    %1085 = vector.shape_cast %1082 : vector<8x8xf32> to vector<1x1x8x8xf32>
    tpu.vector_store %arg5[%c0_447, %c6, %c0_448, %c0_449], %1085 {strides = array<i32>} : memref<1x8x8x8xf32, #tpu.memory_space<vmem>>, vector<1x1x8x8xf32>,
    %c8_i32_450 = arith.constant 8 : i32
    %1086 = arith.muli %arg1, %c8_i32_450 : i32
    %c7_i32 = arith.constant 7 : i32
    %1087 = arith.addi %1086, %c7_i32 : i32
    %cst_451 = arith.constant 0.000000e+00 : f32
    %1088 = vector.broadcast %cst_451 : f32 to vector<16x16xf32>
    %c4_i32_452 = arith.constant 4 : i32
    %1089 = arith.muli %1087, %c4_i32_452 : i32
    %c0_i32_453 = arith.constant 0 : i32
    %1090 = arith.addi %1089, %c0_i32_453 : i32
    %c2_i32_454 = arith.constant 2 : i32
    %1091 = arith.muli %1090, %c2_i32_454 : i32
    %c0_i32_455 = arith.constant 0 : i32
    %1092 = arith.addi %1091, %c0_i32_455 : i32
    %c2_i32_456 = arith.constant 2 : i32
    %1093 = arith.muli %1092, %c2_i32_456 : i32
    %1094 = arith.index_cast %1093 : i32 to index
    %1095 = memref.load %arg3[%1094] : memref<128xf32, #tpu.memory_space<smem>>
    %1096 = vector.broadcast %1095 : f32 to vector<16x16xf32>
    %1097 = arith.mulf %34, %1096 : vector<16x16xf32>
    %1098 = arith.addf %1088, %1097 : vector<16x16xf32>
    %c1_i32_457 = arith.constant 1 : i32
    %1099 = arith.addi %1093, %c1_i32_457 : i32
    %1100 = arith.index_cast %1099 : i32 to index
    %1101 = memref.load %arg3[%1100] : memref<128xf32, #tpu.memory_space<smem>>
    %1102 = vector.broadcast %1101 : f32 to vector<16x16xf32>
    %1103 = arith.mulf %35, %1102 : vector<16x16xf32>
    %1104 = arith.addf %1098, %1103 : vector<16x16xf32>
    %c4_i32_458 = arith.constant 4 : i32
    %1105 = arith.muli %1087, %c4_i32_458 : i32
    %c0_i32_459 = arith.constant 0 : i32
    %1106 = arith.addi %1105, %c0_i32_459 : i32
    %c2_i32_460 = arith.constant 2 : i32
    %1107 = arith.muli %1106, %c2_i32_460 : i32
    %c1_i32_461 = arith.constant 1 : i32
    %1108 = arith.addi %1107, %c1_i32_461 : i32
    %c2_i32_462 = arith.constant 2 : i32
    %1109 = arith.muli %1108, %c2_i32_462 : i32
    %1110 = arith.index_cast %1109 : i32 to index
    %1111 = memref.load %arg3[%1110] : memref<128xf32, #tpu.memory_space<smem>>
    %1112 = vector.broadcast %1111 : f32 to vector<16x16xf32>
    %1113 = arith.mulf %38, %1112 : vector<16x16xf32>
    %1114 = arith.addf %1104, %1113 : vector<16x16xf32>
    %c1_i32_463 = arith.constant 1 : i32
    %1115 = arith.addi %1109, %c1_i32_463 : i32
    %1116 = arith.index_cast %1115 : i32 to index
    %1117 = memref.load %arg3[%1116] : memref<128xf32, #tpu.memory_space<smem>>
    %1118 = vector.broadcast %1117 : f32 to vector<16x16xf32>
    %1119 = arith.mulf %39, %1118 : vector<16x16xf32>
    %1120 = arith.addf %1114, %1119 : vector<16x16xf32>
    %c4_i32_464 = arith.constant 4 : i32
    %1121 = arith.muli %1087, %c4_i32_464 : i32
    %c1_i32_465 = arith.constant 1 : i32
    %1122 = arith.addi %1121, %c1_i32_465 : i32
    %c2_i32_466 = arith.constant 2 : i32
    %1123 = arith.muli %1122, %c2_i32_466 : i32
    %c0_i32_467 = arith.constant 0 : i32
    %1124 = arith.addi %1123, %c0_i32_467 : i32
    %c2_i32_468 = arith.constant 2 : i32
    %1125 = arith.muli %1124, %c2_i32_468 : i32
    %1126 = arith.index_cast %1125 : i32 to index
    %1127 = memref.load %arg3[%1126] : memref<128xf32, #tpu.memory_space<smem>>
    %1128 = vector.broadcast %1127 : f32 to vector<16x16xf32>
    %1129 = arith.mulf %42, %1128 : vector<16x16xf32>
    %1130 = arith.addf %1120, %1129 : vector<16x16xf32>
    %c1_i32_469 = arith.constant 1 : i32
    %1131 = arith.addi %1125, %c1_i32_469 : i32
    %1132 = arith.index_cast %1131 : i32 to index
    %1133 = memref.load %arg3[%1132] : memref<128xf32, #tpu.memory_space<smem>>
    %1134 = vector.broadcast %1133 : f32 to vector<16x16xf32>
    %1135 = arith.mulf %43, %1134 : vector<16x16xf32>
    %1136 = arith.addf %1130, %1135 : vector<16x16xf32>
    %c4_i32_470 = arith.constant 4 : i32
    %1137 = arith.muli %1087, %c4_i32_470 : i32
    %c1_i32_471 = arith.constant 1 : i32
    %1138 = arith.addi %1137, %c1_i32_471 : i32
    %c2_i32_472 = arith.constant 2 : i32
    %1139 = arith.muli %1138, %c2_i32_472 : i32
    %c1_i32_473 = arith.constant 1 : i32
    %1140 = arith.addi %1139, %c1_i32_473 : i32
    %c2_i32_474 = arith.constant 2 : i32
    %1141 = arith.muli %1140, %c2_i32_474 : i32
    %1142 = arith.index_cast %1141 : i32 to index
    %1143 = memref.load %arg3[%1142] : memref<128xf32, #tpu.memory_space<smem>>
    %1144 = vector.broadcast %1143 : f32 to vector<16x16xf32>
    %1145 = arith.mulf %46, %1144 : vector<16x16xf32>
    %1146 = arith.addf %1136, %1145 : vector<16x16xf32>
    %c1_i32_475 = arith.constant 1 : i32
    %1147 = arith.addi %1141, %c1_i32_475 : i32
    %1148 = arith.index_cast %1147 : i32 to index
    %1149 = memref.load %arg3[%1148] : memref<128xf32, #tpu.memory_space<smem>>
    %1150 = vector.broadcast %1149 : f32 to vector<16x16xf32>
    %1151 = arith.mulf %47, %1150 : vector<16x16xf32>
    %1152 = arith.addf %1146, %1151 : vector<16x16xf32>
    %c4_i32_476 = arith.constant 4 : i32
    %1153 = arith.muli %1087, %c4_i32_476 : i32
    %c2_i32_477 = arith.constant 2 : i32
    %1154 = arith.addi %1153, %c2_i32_477 : i32
    %c2_i32_478 = arith.constant 2 : i32
    %1155 = arith.muli %1154, %c2_i32_478 : i32
    %c0_i32_479 = arith.constant 0 : i32
    %1156 = arith.addi %1155, %c0_i32_479 : i32
    %c2_i32_480 = arith.constant 2 : i32
    %1157 = arith.muli %1156, %c2_i32_480 : i32
    %1158 = arith.index_cast %1157 : i32 to index
    %1159 = memref.load %arg3[%1158] : memref<128xf32, #tpu.memory_space<smem>>
    %1160 = vector.broadcast %1159 : f32 to vector<16x16xf32>
    %1161 = arith.mulf %50, %1160 : vector<16x16xf32>
    %1162 = arith.addf %1152, %1161 : vector<16x16xf32>
    %c1_i32_481 = arith.constant 1 : i32
    %1163 = arith.addi %1157, %c1_i32_481 : i32
    %1164 = arith.index_cast %1163 : i32 to index
    %1165 = memref.load %arg3[%1164] : memref<128xf32, #tpu.memory_space<smem>>
    %1166 = vector.broadcast %1165 : f32 to vector<16x16xf32>
    %1167 = arith.mulf %51, %1166 : vector<16x16xf32>
    %1168 = arith.addf %1162, %1167 : vector<16x16xf32>
    %c4_i32_482 = arith.constant 4 : i32
    %1169 = arith.muli %1087, %c4_i32_482 : i32
    %c2_i32_483 = arith.constant 2 : i32
    %1170 = arith.addi %1169, %c2_i32_483 : i32
    %c2_i32_484 = arith.constant 2 : i32
    %1171 = arith.muli %1170, %c2_i32_484 : i32
    %c1_i32_485 = arith.constant 1 : i32
    %1172 = arith.addi %1171, %c1_i32_485 : i32
    %c2_i32_486 = arith.constant 2 : i32
    %1173 = arith.muli %1172, %c2_i32_486 : i32
    %1174 = arith.index_cast %1173 : i32 to index
    %1175 = memref.load %arg3[%1174] : memref<128xf32, #tpu.memory_space<smem>>
    %1176 = vector.broadcast %1175 : f32 to vector<16x16xf32>
    %1177 = arith.mulf %54, %1176 : vector<16x16xf32>
    %1178 = arith.addf %1168, %1177 : vector<16x16xf32>
    %c1_i32_487 = arith.constant 1 : i32
    %1179 = arith.addi %1173, %c1_i32_487 : i32
    %1180 = arith.index_cast %1179 : i32 to index
    %1181 = memref.load %arg3[%1180] : memref<128xf32, #tpu.memory_space<smem>>
    %1182 = vector.broadcast %1181 : f32 to vector<16x16xf32>
    %1183 = arith.mulf %55, %1182 : vector<16x16xf32>
    %1184 = arith.addf %1178, %1183 : vector<16x16xf32>
    %c4_i32_488 = arith.constant 4 : i32
    %1185 = arith.muli %1087, %c4_i32_488 : i32
    %c3_i32_489 = arith.constant 3 : i32
    %1186 = arith.addi %1185, %c3_i32_489 : i32
    %c2_i32_490 = arith.constant 2 : i32
    %1187 = arith.muli %1186, %c2_i32_490 : i32
    %c0_i32_491 = arith.constant 0 : i32
    %1188 = arith.addi %1187, %c0_i32_491 : i32
    %c2_i32_492 = arith.constant 2 : i32
    %1189 = arith.muli %1188, %c2_i32_492 : i32
    %1190 = arith.index_cast %1189 : i32 to index
    %1191 = memref.load %arg3[%1190] : memref<128xf32, #tpu.memory_space<smem>>
    %1192 = vector.broadcast %1191 : f32 to vector<16x16xf32>
    %1193 = arith.mulf %58, %1192 : vector<16x16xf32>
    %1194 = arith.addf %1184, %1193 : vector<16x16xf32>
    %c1_i32_493 = arith.constant 1 : i32
    %1195 = arith.addi %1189, %c1_i32_493 : i32
    %1196 = arith.index_cast %1195 : i32 to index
    %1197 = memref.load %arg3[%1196] : memref<128xf32, #tpu.memory_space<smem>>
    %1198 = vector.broadcast %1197 : f32 to vector<16x16xf32>
    %1199 = arith.mulf %59, %1198 : vector<16x16xf32>
    %1200 = arith.addf %1194, %1199 : vector<16x16xf32>
    %c4_i32_494 = arith.constant 4 : i32
    %1201 = arith.muli %1087, %c4_i32_494 : i32
    %c3_i32_495 = arith.constant 3 : i32
    %1202 = arith.addi %1201, %c3_i32_495 : i32
    %c2_i32_496 = arith.constant 2 : i32
    %1203 = arith.muli %1202, %c2_i32_496 : i32
    %c1_i32_497 = arith.constant 1 : i32
    %1204 = arith.addi %1203, %c1_i32_497 : i32
    %c2_i32_498 = arith.constant 2 : i32
    %1205 = arith.muli %1204, %c2_i32_498 : i32
    %1206 = arith.index_cast %1205 : i32 to index
    %1207 = memref.load %arg3[%1206] : memref<128xf32, #tpu.memory_space<smem>>
    %1208 = vector.broadcast %1207 : f32 to vector<16x16xf32>
    %1209 = arith.mulf %62, %1208 : vector<16x16xf32>
    %1210 = arith.addf %1200, %1209 : vector<16x16xf32>
    %c1_i32_499 = arith.constant 1 : i32
    %1211 = arith.addi %1205, %c1_i32_499 : i32
    %1212 = arith.index_cast %1211 : i32 to index
    %1213 = memref.load %arg3[%1212] : memref<128xf32, #tpu.memory_space<smem>>
    %1214 = vector.broadcast %1213 : f32 to vector<16x16xf32>
    %1215 = arith.mulf %63, %1214 : vector<16x16xf32>
    %1216 = arith.addf %1210, %1215 : vector<16x16xf32>
    %cst_500 = arith.constant dense<0.000000e+00> : vector<8x16xf32>
    %1217 = tpu.matmul %23, %1216, %cst_500 {dimension_numbers = #tpu.dot_dimension_numbers<[1], [0], [0], [1], [0, 0, 1, 1], [], []>, precision = #tpu.contract_precision<fp32>} : vector<8x16xf32>, vector<16x16xf32>, vector<8x16xf32> -> vector<8x16xf32>
    %cst_501 = arith.constant dense<0.000000e+00> : vector<8x16xf32>
    %1218 = tpu.matmul %31, %1216, %cst_501 {dimension_numbers = #tpu.dot_dimension_numbers<[1], [0], [0], [1], [0, 0, 1, 1], [], []>, precision = #tpu.contract_precision<fp32>} : vector<8x16xf32>, vector<16x16xf32>, vector<8x16xf32> -> vector<8x16xf32>
    %1219 = arith.maximumf %1217, %1218 : vector<8x16xf32>
    %cst_502 = arith.constant dense<0.000000e+00> : vector<8x8xf32>
    %1220 = tpu.matmul %1219, %7, %cst_502 {dimension_numbers = #tpu.dot_dimension_numbers<[1], [0], [0], [1], [0, 0, 1, 1], [], []>, precision = #tpu.contract_precision<fp32>} : vector<8x16xf32>, vector<16x8xf32>, vector<8x8xf32> -> vector<8x8xf32>
    %cst_503 = arith.constant dense<0.000000e+00> : vector<8x8xf32>
    %1221 = tpu.matmul %1219, %15, %cst_503 {dimension_numbers = #tpu.dot_dimension_numbers<[1], [0], [0], [1], [0, 0, 1, 1], [], []>, precision = #tpu.contract_precision<fp32>} : vector<8x16xf32>, vector<16x8xf32>, vector<8x8xf32> -> vector<8x8xf32>
    %1222 = arith.maximumf %1220, %1221 : vector<8x8xf32>
    %1223 = arith.index_cast %1087 : i32 to index
    %1224 = memref.load %arg4[%1223] : memref<8xf32, #tpu.memory_space<smem>>
    %1225 = vector.broadcast %1224 : f32 to vector<8x8xf32>
    %1226 = arith.addf %1222, %1225 : vector<8x8xf32>
    %cst_504 = arith.constant 0.000000e+00 : f32
    %1227 = vector.broadcast %cst_504 : f32 to vector<8x8xf32>
    %1228 = arith.maximumf %1226, %1227 : vector<8x8xf32>
    %c0_505 = arith.constant 0 : index
    %c7 = arith.constant 7 : index
    %c0_506 = arith.constant 0 : index
    %c0_507 = arith.constant 0 : index
    %1229 = vector.load %arg5[%c0_505, %c7, %c0_506, %c0_507] : memref<1x8x8x8xf32, #tpu.memory_space<vmem>>, vector<1x1x8x8xf32>
    %1230 = vector.shape_cast %1229 : vector<1x1x8x8xf32> to vector<8x8xf32>
    %1231 = vector.shape_cast %1228 : vector<8x8xf32> to vector<1x1x8x8xf32>
    tpu.vector_store %arg5[%c0_505, %c7, %c0_506, %c0_507], %1231 {strides = array<i32>} : memref<1x8x8x8xf32, #tpu.memory_space<vmem>>, vector<1x1x8x8xf32>,
    return
  }
  func.func @transform_0(%arg0: i32, %arg1: i32) -> (i32, i32, i32, i32) {
    %c0_i32 = arith.constant 0 : i32
    %c0_i32_0 = arith.constant 0 : i32
    %c0_i32_1 = arith.constant 0 : i32
    %c0_i32_2 = arith.constant 0 : i32
    return %arg0, %c0_i32, %c0_i32_0, %c0_i32_1 : i32, i32, i32, i32
  }
  func.func @transform_1(%arg0: i32, %arg1: i32) -> i32 {
    %c0_i32 = arith.constant 0 : i32
    %c0_i32_0 = arith.constant 0 : i32
    return %c0_i32 : i32
  }
  func.func @transform_2(%arg0: i32, %arg1: i32) -> i32 {
    %c0_i32 = arith.constant 0 : i32
    %c0_i32_0 = arith.constant 0 : i32
    return %c0_i32 : i32
  }
  func.func @transform_3(%arg0: i32, %arg1: i32) -> (i32, i32, i32, i32) {
    %c0_i32 = arith.constant 0 : i32
    %c0_i32_0 = arith.constant 0 : i32
    %c0_i32_1 = arith.constant 0 : i32
    return %arg0, %arg1, %c0_i32, %c0_i32_0 : i32, i32, i32, i32
  }
}

</mosaic_0001>

<bundles_post_ra>
// kernel: tpu_custom_call.1
= control target key start
LH: loop header
LB: loop body
LE: loop exit
PB: predicated region body
PF: predicated region fallthrough
CT: control target
= control target key end

     0   :  { %8 = vsyncpa [#allocation4], 0  ;;  %s21843_s0 = inlined_call_operand.vmem [shape: f32[2,4,18,18], index: 0, kind: input, shape index: {}]   ;;  %s21844_s1 = inlined_call_operand.vmem [shape: f32[128], index: 1, kind: input, shape index: {}]   ;;  %s21845_s2 = inlined_call_operand.vmem [shape: f32[8], index: 2, kind: input, shape index: {}]   ;;  %s21846_s3 = inlined_call_operand.hbm [shape: f32[2,8,8,8], index: 3, kind: output, shape index: {}]  }
   0x1   :  { %9 = vsyncpa [#allocation6], 0 }
   0x2   :  { %10 = vsyncpa [#allocation3], 0 }
   0x3   :  { %12 = vsyncpa [#allocation3 + $0x1], 0  ;;  %s19875_s12 = smov 0   ;;  %s19877_s13 = smov 0  }
   0x4   :  { %s19879_s14 = smov 0   ;;  %s19881_s15 = smov 0  }
   0x5   :  { %s19883_s16 = smov 0   ;;  %s19885_s17 = smov 0  }
   0x6 LB: > { %s16465_s18 = sadd.s32 4294967295, %s19843_s17   ;;  %s16466_s19 = sadd.s32 4294967294, %s19843_s17   ;;  %s19843_s17 = sphi %s19885_s17, %s18_s17   ;;  %s19839_s16 = sphi %s19883_s16, %s21868_s16   ;;  %s19835_s15 = sphi %s19881_s15, %s21867_s15   ;;  %s19831_s14 = sphi %s19879_s14, %s21866_s14   ;;  %s19827_s13 = sphi %s19877_s13, %s21865_s13   ;;  %s19823_s12 = sphi %s19875_s12, %s21864_s12  }
   0x7   : > { %s30_s20 = sadd.s32 1, %s19839_s16  ;;  %s107_s21 = sadd.s32 1, %s19831_s14 }
   0x8   : > { %p32_p0 = scmp.ge.s32.totalorder %s30_s20, 2  ;;  %p117_p1 = scmp.ne.s32.totalorder %s19831_s14, %s19827_s13 }
   0x9   : > { %p118_p2 = scmp.eq.s32.totalorder %s16465_s18, 1  ;;  %p123_p3 = scmp.ne.s32.totalorder %s19827_s13, %s19823_s12 }
   0xa   : > { %s21870_s20 = smov (%p32_p0, %s30_s20), 0  ;;  %p124_p5 = scmp.eq.s32.totalorder %s16466_s19, 1 }
   0xb   : > { %p19915_p4 = por %p118_p2, %p117_p1  ;;  %s102_s23 = ssub.s32 %s19839_s16, %s21870_s20 }
   0xc   : > { %p16467_p6 = scmp.ge.s32.totalorder %s19843_s17, 1  ;;  %p105_p7 = scmp.eq.s32.totalorder %s102_s23, 0 }
   0xd   : > { %s21851_s22 = scalar_select %p19915_p4, 1, 0 }
   0xe   : > { %p19922_p8 = por %p124_p5, %p123_p3  ;;  %p131_p9 = scmp.lt.s32.totalorder %s19843_s17, 3 }
   0xf   : > { %s19928_s25 = scalar_select %p105_p7, %s19831_s14, %s107_s21  }
  0x10   : > { %s21852_s24 = scalar_select %p19922_p8, 1, 0 }
  0x11   : > { %p19930_p10 = pnand %p16467_p6, %p131_p9  ;;  %p19934_p11 = scmp.eq.s32.totalorder %s16465_s18, 0 }
  0x12   : > { %s144_s30 = sshll.u32 %s21844_s1, 4  ;;  %s155_s6 = sshll.u32 %s21845_s2, 4  ;;  %s145_s30 = int_to_ptr.vmem [resolvable:$true] %s144_s30  ;;  %s156_s6 = int_to_ptr.vmem [resolvable:$true] %s155_s6 }
  0x13   : > { %s21853_s26 = scalar_select %p19930_p10, 1, 0 }
  0x14   : > { %s21854_s27 = scalar_select %p19934_p11, 1, 0 }
  0x15   : > { %p19606_p12 = pneg %p19930_p10  ;;  %s19727_s8 = scalar_lea.vmem %s145_s30, 16 }
  0x16   : > { %p19728_p0 = scmp.ne.s32.totalorder %s145_s30, %s19727_s8  ;;  %p19735_p5 = scmp.lt.s32.totalorder %s145_s30, %s145_s30 }
  0x17   : > { %p19948_p13 = pnand %p19934_p11, %p19606_p12  ;;  %p19736_p6 = scmp.lt.s32.totalorder %s19727_s8, %s19727_s8 }
  0x19   : > { %p19729_p1 = pneg %p19948_p13  ;;  %p19737_p7 = por %p19736_p6, %p19735_p5 }
  0x1b   : > { %p19730_p2 = pnand %p19729_p1, %p19728_p0 }
  0x1d   : > { %p19731_p3 = pneg %p19730_p2 }
  0x1f   : > { %p19738_p9 = pnand %p19737_p7, %p19731_p3 }
  0x21   : > { %19741 = shalt.err (!%p19738_p9)
}
  0x22   : > { %s19845_s9 = smov [#allocation2]   ;;  %s19742_s10 = scalar_lea.vmem %s156_s6, 16 }
  0x23   : > { %19609 = dma.vmem_to_smem (!%p19948_p13), %s145_s30, 16, %s19845_s9, [#allocation4]  }
  0x24   : > { %p19743_p12 = scmp.ne.s32.totalorder %s156_s6, %s19742_s10  ;;  %p19750_p11 = scmp.lt.s32.totalorder %s156_s6, %s156_s6 }
  0x25   : > { %p19751_p10 = scmp.lt.s32.totalorder %s19742_s10, %s19742_s10 }
  0x26   : > { %p19745_p8 = pnand %p19743_p12, %p19729_p1 }
  0x27   : > { %p19752_p0 = por %p19751_p10, %p19750_p11 }
  0x28   : > { %p19746_p4 = pneg %p19745_p8 }
  0x2a   : > { %p19753_p2 = pnand %p19752_p0, %p19746_p4 }
  0x2c   : > { %19756 = shalt.err (!%p19753_p2)
}
  0x2d   : > { %s19846_s11 = smov [#allocation5]   ;;  %p21856_p3 = scmp.ne.s32.totalorder %s21853_s26, 0 }
  0x2e   : > { %19612 = dma.vmem_to_smem (!%p19948_p13), %s156_s6, 16, %s19846_s11, [#allocation6]  }
  0x2f   : > { %176 = sbr.rel (%p21856_p3) target bundleno = 2926 (0xb6e), region = 32  ;;  %p21857_p5 = scmp.ne.s32.totalorder (!%p21856_p3), %s21854_s27, 0 }
  0x36   : > { %19810 = dma.done.wait (%p21857_p5), [#allocation4], 16  }
  0x37   : > { %19812 = vsyncadd (%p21857_p5), [#allocation4], 4294967280 }
  0x38   : > { %19814 = dma.done.wait (%p21857_p5), [#allocation6], 16  }
  0x39   : > { %19816 = vsyncadd (%p21857_p5), [#allocation6], 4294967280 }
  0x3a   : > { %186 = sfence }
  0x3b   : > { %p205_p4 = scmp.lt.s32.totalorder %s19835_s15, 1  ;;  %s16488_s18 = sld [smem:[#allocation2 + $0x1]]  ;;  %v19848_v40 = vmov 0.0|0.0   ;;  %vm19849_vm0 = vmmov 0   ;;  %v19850_v41 = vmov 0.0   ;;  %vm440_vm3 = vcmask 130048  }
  0x3c   : > { %s16490_s19 = sld [smem:[#allocation2 + $0x3]]  ;;  %s16492_s23 = sld [smem:[#allocation2 + $0x5]]  ;;  %18699 = vmatprep.subr.bf16.mxu0 %v19848_v40  ;;  %18717 = vmatprep.subr.bf16.mxu1 %v19848_v40  ;;  %vm2268_vm10 = vcmask 64512  }
  0x3d   : > { %s206_s21 = scalar_select %p205_p4, %s19835_s15, 1  ;;  %17359 = vmatprep.mubr.msk.f32.mxu0 %vm19849_vm0, %v19850_v41  ;;  %17401 = vmatprep.mubr.msk.f32.mxu1 %vm19849_vm0, %v19850_v41 }
  0x3e   : > { %s16494_s27 = sld [smem:[#allocation2 + $0x7]]  ;;  %s19847_s4 = smov 127  }
  0x3f   : > { %s19595_s26 = smul.u32 96, %s206_s21  ;;  %s16496_s5 = sld [smem:[#allocation2 + $0x9]] }
  0x40   : > { %s16498_s6 = sld [smem:[#allocation2 + $0xb]]  ;;  %s16500_s7 = sld [smem:[#allocation2 + $0xd]] }
  0x41   : > { %s19973_s30 = scalar_lea.vmem %s21843_s0, %s19595_s26  ;;  %v261_v0 = vstv %s16488_s18  ;;  %s16502_s8 = sld [smem:[#allocation2 + $0xf]] }
  0x42   : > { %v19976_v1 = vld [vmem:[%s19973_s30] sm:$0xff]  ;;  %v19979_v2 = vld [vmem:[%s19973_s30 + $0x8] sm:$0xff]  ;;  %v285_v4 = vstv %s16490_s19  ;;  %v19994_v10 = vld [vmem:[%s19973_s30 + $0x18] sm:$0xff]  ;;  %s16522_s9 = sld [smem:[#allocation2 + $0x11]]  ;;  %s16524_s10 = sld [smem:[#allocation2 + $0x13]] }
  0x43   : > { %v19982_v3 = vld [vmem:[%s19973_s30 + $0x1] sm:$0xff]  ;;  %v262_v5 = vmul.f32 %v261_v0, %v19976_v1  ;;  %v19986_v6 = vld [vmem:[%s19973_s30 + $0x9] sm:$0xff]  ;;  %v263_v8 = vmul.f32 %v261_v0, %v19979_v2  ;;  %v309_v11 = vstv %s16492_s23  ;;  %v20004_v15 = vld [vmem:[%s19973_s30 + $0x19] sm:$0xff]  ;;  %s16526_s11 = sld [smem:[#allocation2 + $0x15]]  ;;  %s16528_s18 = sld [smem:[#allocation2 + $0x17]] }
  0x44   : > { %v286_v7 = vmul.f32 %v285_v4, %v19982_v3  ;;  %v287_v9 = vmul.f32 %v285_v4, %v19986_v6  ;;  %v19997_v12 = vld [vmem:[%s19973_s30 + $0x20] sm:$0xff]  ;;  %v310_v13 = vmul.f32 %v19994_v10, %v309_v11  ;;  %v333_v16 = vstv %s16494_s27  ;;  %v20014_v20 = vld [vmem:[%s19973_s30 + $0x30] sm:$0xff]  ;;  %v20017_v22 = vld [vmem:[%s19973_s30 + $0x38] sm:$0xff]  ;;  %s16530_s19 = sld [smem:[#allocation2 + $0x19]]  ;;  %s16532_s21 = sld [smem:[#allocation2 + $0x1b]] }
  0x45   : > { %266 = vrot.lane.b32.xlu0 %v262_v5, %s19847_s4  ;;  %v311_v14 = vmul.f32 %v19997_v12, %v309_v11  ;;  %v20007_v17 = vld [vmem:[%s19973_s30 + $0x21] sm:$0xff]  ;;  %v334_v18 = vmul.f32 %v20004_v15, %v333_v16  ;;  %v356_v21 = vstv %s16496_s5  ;;  %v20024_v25 = vld [vmem:[%s19973_s30 + $0x31] sm:$0xff]  ;;  %s16534_s23 = sld [smem:[#allocation2 + $0x1d]]  ;;  %s16536_s26 = sld [smem:[#allocation2 + $0x1f]] }
  0x46   : > { %290 = vrot.lane.b32.xlu1 %v286_v7, %s19847_s4  ;;  %v335_v19 = vmul.f32 %v20007_v17, %v333_v16  ;;  %v357_v23 = vmul.f32 %v20014_v20, %v356_v21  ;;  %v358_v24 = vmul.f32 %v20017_v22, %v356_v21  ;;  %v380_v26 = vstv %s16498_s6  ;;  %v20027_v27 = vld [vmem:[%s19973_s30 + $0x39] sm:$0xff]  ;;  %v20034_v30 = vld [vmem:[%s19973_s30 + $0x48] sm:$0xff]  ;;  %s253_s28 = sld [smem:[#allocation2]]  ;;  %s16489_s29 = sld [smem:[#allocation2 + $0x2]] }
  0x47   : > { %v381_v28 = vmul.f32 %v20024_v25, %v380_v26  ;;  %v382_v29 = vmul.f32 %v20027_v27, %v380_v26  ;;  %v403_v31 = vstv %s16500_s7  ;;  %v20037_v32 = vld [vmem:[%s19973_s30 + $0x50] sm:$0xff]  ;;  %v427_v36 = vstv %s16502_s8  ;;  %s16491_s27 = sld [smem:[#allocation2 + $0x4]]  ;;  %s20093_s5 = sld [smem:[#allocation2 + $0x6]] }
  0x48   : > { %v404_v33 = vmul.f32 %v20034_v30, %v403_v31  ;;  %v405_v34 = vmul.f32 %v20037_v32, %v403_v31  ;;  %v20044_v35 = vld [vmem:[%s19973_s30 + $0x49] sm:$0xff]  ;;  %v20047_v37 = vld [vmem:[%s19973_s30 + $0x51] sm:$0xff]  ;;  %v2280_v42 = vstv %s16522_s9  ;;  %v2304_v43 = vstv %s16524_s10  ;;  %s20097_s6 = sld [smem:[#allocation2 + $0x8]]  ;;  %s20103_s7 = sld [smem:[#allocation2 + $0xa]] }
  0x49   : > { %268 = vrot.lane.b32.xlu0 %v263_v8, %s19847_s4  ;;  %v428_v38 = vmul.f32 %v20044_v35, %v427_v36  ;;  %v429_v39 = vmul.f32 %v20047_v37, %v427_v36  ;;  %v2282_v44 = vmul.f32 %v2280_v42, %v19979_v2  ;;  %v2281_v45 = vmul.f32 %v2280_v42, %v19976_v1  ;;  %s20110_s8 = sld [smem:[#allocation2 + $0xc]]  ;;  %s20115_s9 = sld [smem:[#allocation2 + $0xe]] }
  0x4a   : > { %292 = vrot.lane.b32.xlu1 %v287_v9, %s19847_s4  ;;  %v2306_v46 = vmul.f32 %v2304_v43, %v19986_v6  ;;  %v2305_v47 = vmul.f32 %v2304_v43, %v19982_v3  ;;  %v2328_v48 = vstv %s16526_s11  ;;  %v2352_v51 = vstv %s16528_s18  ;;  %s16521_s10 = sld [smem:[#allocation2 + $0x10]]  ;;  %s16523_s11 = sld [smem:[#allocation2 + $0x12]] }
  0x4b   : > { %v2330_v49 = vmul.f32 %v19997_v12, %v2328_v48  ;;  %v2329_v50 = vmul.f32 %v19994_v10, %v2328_v48  ;;  %v2354_v52 = vmul.f32 %v20007_v17, %v2352_v51  ;;  %v2353_v53 = vmul.f32 %v20004_v15, %v2352_v51  ;;  %s16558_s18 = sld [smem:[#allocation2 + $0x21]]  ;;  %p21862_p10 = scmp.ne.s32.totalorder %s21851_s22, 0 }
  0x4c   : > { %v2375_v54 = vstv %s16530_s19  ;;  %v2399_v57 = vstv %s16532_s21  ;;  %v2422_v60 = vstv %s16534_s23  ;;  %v2446_v63 = vstv %s16536_s26  ;;  %s16560_s19 = sld [smem:[#allocation2 + $0x23]]  ;;  %s16525_s21 = sld [smem:[#allocation2 + $0x14]] }
  0x4d   : > { %314 = vrot.lane.b32.xlu0 %v310_v13, %s19847_s4  ;;  %v2377_v55 = vmul.f32 %v20017_v22, %v2375_v54  ;;  %v2376_v56 = vmul.f32 %v20014_v20, %v2375_v54  ;;  %v2401_v58 = vmul.f32 %v20027_v27, %v2399_v57  ;;  %v2400_v59 = vmul.f32 %v20024_v25, %v2399_v57  ;;  %s16562_s23 = sld [smem:[#allocation2 + $0x25]]  ;;  %s20253_s26 = sld [smem:[#allocation2 + $0x27]] }
  0x4e   : > { %316 = vrot.lane.b32.xlu1 %v311_v14, %s19847_s4  ;;  %v2424_v61 = vmul.f32 %v20037_v32, %v2422_v60  ;;  %v2423_v62 = vmul.f32 %v20034_v30, %v2422_v60  ;;  %v2448_v0 = vmul.f32 %v20047_v37, %v2446_v63  ;;  %v2447_v4 = vmul.f32 %v20044_v35, %v2446_v63 }
  0x4f   : > { %v254_v5 = vstv %s253_s28  ;;  %v278_v7 = vstv %s16489_s29  ;;  %v302_v14 = vstv %s16491_s27  ;;  %s20257_s28 = sld [smem:[#allocation2 + $0x16]]  ;;  %s16566_s29 = sld [smem:[#allocation2 + $0x29]] }
  0x50   : > { %v255_v8 = vmul.f32 %v254_v5, %v19976_v1  ;;  %v279_v9 = vmul.f32 %v278_v7, %v19982_v3  ;;  %s20270_s27 = sld [smem:[#allocation2 + $0x2b]] }
  0x51   : > { %338 = vrot.lane.b32.xlu0 %v334_v18, %s19847_s4  ;;  %v256_v18 = vmul.f32 %v254_v5, %v19979_v2  ;;  %v396_v5 = vstv %s20110_s8  ;;  %s20289_s8 = sld [smem:[#allocation2 + $0x1a]] }
  0x52   : > { %340 = vrot.lane.b32.xlu1 %v335_v19, %s19847_s4  ;;  %v211_v19 = vlaneseq }
  0x55   : > { %361 = vrot.lane.b32.xlu0 %v357_v23, %s19847_s4  ;;  %v280_v23 = vmul.f32 %v278_v7, %v19986_v6 }
  0x56   : > { %363 = vrot.lane.b32.xlu1 %v358_v24, %s19847_s4  ;;  %v303_v24 = vmul.f32 %v19994_v10, %v302_v14 }
  0x59   : > { %385 = vrot.lane.b32.xlu0 %v381_v28, %s19847_s4 }
  0x5a   : > { %387 = vrot.lane.b32.xlu1 %v382_v29, %s19847_s4  ;;  %v326_v29 = vstv %s20093_s5  ;;  %s20273_s5 = sld [smem:[#allocation2 + $0x18]] }
  0x5b   : > { %v327_v42 = vmul.f32 %v20004_v15, %v326_v29  ;;  %v328_v51 = vmul.f32 %v20007_v17, %v326_v29 }
  0x5d   : > { %408 = vrot.lane.b32.xlu0 %v404_v33, %s19847_s4 }
  0x5e   : > { %410 = vrot.lane.b32.xlu1 %v405_v34, %s19847_s4  ;;  %v20105_v34 = vshrl.u32 %v211_v19, 7 }
  0x60   : > { %v226_v48 = vmul.u32 2, %v20105_v34 }
  0x61   : > { %432 = vrot.lane.b32.xlu0 %v428_v38, %s19847_s4 }
  0x62   : > { %434 = vrot.lane.b32.xlu1 %v429_v39, %s19847_s4  ;;  %v304_v39 = vmul.f32 %v19997_v12, %v302_v14  ;;  %v397_v14 = vmul.f32 %v20034_v30, %v396_v5 }
  0x65   : > { %2285 = vrot.lane.b32.xlu0 %v2281_v45, %s19847_s4  ;;  %v349_v45 = vstv %s20097_s6  ;;  %s16570_s6 = sld [smem:[#allocation2 + $0x2d]] }
  0x66   : > { %2287 = vrot.lane.b32.xlu1 %v2282_v44, %s19847_s4 }
  0x69   : > { %2309 = vrot.lane.b32.xlu0 %v2305_v47, %s19847_s4 }
  0x6a   : > { %2311 = vrot.lane.b32.xlu1 %v2306_v46, %s19847_s4 }
  0x6d   : > { %2333 = vrot.lane.b32.xlu0 %v2329_v50, %s19847_s4 }
  0x6e   : > { %2335 = vrot.lane.b32.xlu1 %v2330_v49, %s19847_s4 }
  0x71   : > { %2357 = vrot.lane.b32.xlu0 %v2353_v53, %s19847_s4 }
  0x72   : > { %2359 = vrot.lane.b32.xlu1 %v2354_v52, %s19847_s4  ;;  %v350_v52 = vmul.f32 %v20014_v20, %v349_v45 }
  0x75   : > { %2380 = vrot.lane.b32.xlu0 %v2376_v56, %s19847_s4 }
  0x76   : > { %2382 = vrot.lane.b32.xlu1 %v2377_v55, %s19847_s4  ;;  %v373_v55 = vstv %s20103_s7  ;;  %s20286_s7 = sld [smem:[#allocation2 + $0x2f]] }
  0x77   : > { %v374_v63 = vmul.f32 %v20024_v25, %v373_v55 }
  0x79   : > { %2404 = vrot.lane.b32.xlu0 %v2400_v59, %s19847_s4  ;;  %v229_v59 = vadd.s32 1, %v226_v48 }
  0x7a   : > { %2406 = vrot.lane.b32.xlu1 %v2401_v58, %s19847_s4  ;;  %v20118_v58 = vand.u32 127, %v211_v19 }
  0x7c   : > { %vm227_vm1 = vcmp.eq.s32.totalorder %v20118_v58, %v226_v48  ;;  %vm230_vm2 = vcmp.eq.s32.totalorder %v20118_v58, %v229_v59 }
  0x7d   : > { %2427 = vrot.lane.b32.xlu0 %v2423_v62, %s19847_s4  ;;  %v351_v62 = vmul.f32 %v20017_v22, %v349_v45 }
  0x7e   : > { %2429 = vrot.lane.b32.xlu1 %v2424_v61, %s19847_s4 }
  0x81   : > { %2451 = vrot.lane.b32.xlu0 %v2447_v4, %s19847_s4 }
  0x82   : > { %2453 = vrot.lane.b32.xlu1 %v2448_v0, %s19847_s4 }
  0xb7   : > { %v267_v11 = vpop.permute.xlu0 %266 }
  0xb8   : > { %v291_v13 = vpop.permute.xlu1 %290  ;;  %v272_v16 = vadd.f32 %v267_v11, %v255_v8 }
  0xba   : > { %v281_v21 = vadd.f32 %v279_v9, %v272_v16  ;;  %v375_v9 = vmul.f32 %v20027_v27, %v373_v55  ;;  %v420_v16 = vstv %s20115_s9  ;;  %s16533_s9 = sld [smem:[#allocation2 + $0x1c]] }
  0xbb   : > { %v269_v26 = vpop.permute.xlu0 %268  ;;  %v421_v29 = vmul.f32 %v20044_v35, %v420_v16 }
  0xbc   : > { %v293_v28 = vpop.permute.xlu1 %292  ;;  %v296_v31 = vadd.f32 %v291_v13, %v281_v21  ;;  %v273_v33 = vadd.f32 %v269_v26, %v256_v18  ;;  %v20129_v21 = vsel %vm227_vm1, 1.0, %v19850_v41 }
  0xbe   : > { %v282_v36 = vadd.f32 %v280_v23, %v273_v33  ;;  %v305_v38 = vadd.f32 %v303_v24, %v296_v31  ;;  %v20132_v23 = vsel %vm230_vm2, 1.0, %v19850_v41 }
  0xbf   : > { %v315_v43 = vpop.permute.xlu0 %314 }
  0xc0   : > { %v317_v44 = vpop.permute.xlu1 %316  ;;  %v297_v46 = vadd.f32 %v293_v28, %v282_v36  ;;  %v320_v47 = vadd.f32 %v315_v43, %v305_v38  ;;  %v398_v28 = vmul.f32 %v20037_v32, %v396_v5  ;;  %v442_v36 = vsel %vm440_vm3, %v20129_v21, 0 }
  0xc1   : > { %v904_v38 = vsel %vm440_vm3, %v20132_v23, 0  ;;  %v20140_v45 = vsub.f32 %v442_v36, %v442_v36 }
  0xc2   : > { %v306_v49 = vadd.f32 %v304_v39, %v297_v46  ;;  %v329_v50 = vadd.f32 %v327_v42, %v320_v47  ;;  %v20142_v46 = vsub.f32 %v904_v38, %v904_v38 }
  0xc3   : > { %v339_v53 = vpop.permute.xlu0 %338 }
  0xc4   : > { %v341_v54 = vpop.permute.xlu1 %340  ;;  %v321_v56 = vadd.f32 %v317_v44, %v306_v49  ;;  %v344_v57 = vadd.f32 %v339_v53, %v329_v50  ;;  %v422_v49 = vmul.f32 %v20047_v37, %v420_v16  ;;  %v20149_v55 = vand.u32 4294901760, %v20142_v46 }
  0xc6   : > { %v330_v60 = vadd.f32 %v328_v51, %v321_v56  ;;  %v352_v61 = vadd.f32 %v350_v52, %v344_v57 }
  0xc7   : > { %v362_v0 = vpop.permute.xlu0 %361 }
  0xc8   : > { %v364_v4 = vpop.permute.xlu1 %363  ;;  %v345_v7 = vadd.f32 %v341_v54, %v330_v60  ;;  %v367_v8 = vadd.f32 %v362_v0, %v352_v61  ;;  %v20146_v54 = vand.u32 4294901760, %v20140_v45 }
  0xca   : > { %v353_v11 = vadd.f32 %v351_v62, %v345_v7  ;;  %v376_v13 = vadd.f32 %v374_v63, %v367_v8  ;;  %v514_v61 = vsub.f32 %v20140_v45, %v20146_v54  ;;  %v976_v62 = vsub.f32 %v20142_v46, %v20149_v55 }
  0xcb   : > { %v386_v18 = vpop.permute.xlu0 %385 }
  0xcc   : > { %v388_v19 = vpop.permute.xlu1 %387  ;;  %v368_v24 = vadd.f32 %v364_v4, %v353_v11  ;;  %v391_v26 = vadd.f32 %v386_v18, %v376_v13  ;;  %v20155_v7 = vand.u32 4294901760, %v514_v61  ;;  %v20157_v8 = vand.u32 4294901760, %v976_v62 }
  0xce   : > { %v377_v31 = vadd.f32 %v375_v9, %v368_v24  ;;  %v399_v33 = vadd.f32 %v397_v14, %v391_v26  ;;  %v216_v26 = vmul.u32 2, %v20118_v58  ;;  %v19851_v58 = vmov 1.0|1.0  }
  0xcf   : > { %v409_v39 = vpop.permute.xlu0 %408 }
  0xd0   : > { %v411_v42 = vpop.permute.xlu1 %410  ;;  %v392_v43 = vadd.f32 %v388_v19, %v377_v31  ;;  %v414_v44 = vadd.f32 %v409_v39, %v399_v33  ;;  %vm217_vm4 = vcmp.eq.s32.totalorder %v20105_v34, %v216_v26 }
  0xd1   : > { %v219_v33 = vsel %vm217_vm4, 1.0, %v19850_v41 }
  0xd2   : > { %v400_v47 = vadd.f32 %v398_v28, %v392_v43  ;;  %v423_v48 = vadd.f32 %v421_v29, %v414_v44  ;;  %v213_v28 = vadd.s32 8, %v20105_v34  ;;  %v221_v29 = vadd.s32 1, %v216_v26 }
  0xd3   : > { %v433_v50 = vpop.permute.xlu0 %432 }
  0xd4   : > { %v415_v51 = vadd.f32 %v411_v42, %v400_v47  ;;  %v438_v52 = vadd.f32 %v433_v50, %v423_v48  ;;  %v435_v53 = vpop.permute.xlu1 %434  ;;  %vm218_vm5 = vcmp.eq.s32.totalorder %v213_v28, %v216_v26  ;;  %vm222_vm6 = vcmp.eq.s32.totalorder %v20105_v34, %v221_v29 }
  0xd5   : > { %vm20217_vm7 = vmpackc.low %vm218_vm5, %vm217_vm4  ;;  %vm223_vm8 = vcmp.eq.s32.totalorder %v213_v28, %v221_v29  ;;  %v220_v36 = vsel %vm218_vm5, 1.0, %v19850_v41  ;;  %v224_v38 = vsel %vm222_vm6, 1.0, %v19850_v41  ;;  %v1445_v34 = vsub.f32 %v219_v33, %v219_v33 }
  0xd6   : > { %v445_v56 = vand.u32 4294901760, %v438_v52  ;;  %v424_v57 = vadd.f32 %v422_v49, %v415_v51  ;;  %vm20227_vm9 = vmpackc.low %vm223_vm8, %vm222_vm6  ;;  %v1451_v42 = vsub.f32 %v220_v36, %v220_v36  ;;  %v225_v43 = vsel %vm223_vm8, 1.0, %v19850_v41 }
  0xd7   : > { %v1892_v44 = vsub.f32 %v224_v38, %v224_v38  ;;  %v1898_v47 = vsub.f32 %v225_v43, %v225_v43  ;;  %v1446_v48 = vand.u32 4294901760, %v1445_v34  ;;  %v4292_v36 = vstv %s16558_s18  ;;  %s202_s18 = sand.u32 1, %s19827_s13  }
  0xd8   : > { %v523_v59 = vsub.f32 %v438_v52, %v445_v56  ;;  %v439_v60 = vadd.f32 %v435_v53, %v424_v57  ;;  %v1452_v49 = vand.u32 4294901760, %v1451_v42  ;;  %v4316_v38 = vstv %s16560_s19  ;;  %s16474_s19 = sshll.u32 %s202_s18, 6 }
  0xd9   : > { %v1893_v50 = vand.u32 4294901760, %v1892_v44  ;;  %v1899_v51 = vand.u32 4294901760, %v1898_v47  ;;  %v1447_v52 = vsub.f32 %v1445_v34, %v1446_v48 }
  0xda   : > { %v524_v63 = vand.u32 4294901760, %v523_v59  ;;  %v448_v0 = vand.u32 4294901760, %v439_v60  ;;  %v1453_v53 = vsub.f32 %v1451_v42, %v1452_v49 }
  0xdb   : > { %v1900_v57 = vsub.f32 %v1898_v47, %v1899_v51 }
  0xdc   : > { %v18700_v4 = vpack.c.bf16 %v448_v0, %v445_v56  ;;  %v530_v5 = vsub.f32 %v439_v60, %v448_v0  ;;  %v525_v9 = vsub.f32 %v523_v59, %v524_v63  ;;  %v1894_v56 = vsub.f32 %v1892_v44, %v1893_v50 }
  0xdd   : > { %v1454_v60 = vand.u32 4294901760, %v1453_v53  ;;  %v1901_v62 = vand.u32 4294901760, %v1900_v57 }
  0xde   : > { %v531_v11 = vand.u32 4294901760, %v530_v5  ;;  %18701 = vmatpush3.bf16.msra.mxu0 %v18700_v4  ;;  %18719 = vmatpush3.bf16.msra.mxu1 %v18700_v4  ;;  %v526_v14 = vand.u32 4294901760, %v525_v9  ;;  %v18706_v19 = vpack.c.bf16 %v530_v5, %v523_v59  ;;  %v1448_v59 = vand.u32 4294901760, %v1447_v52 }
  0xdf   : > { %18702 = vmatprep.subr.bf16.mxu0 %v19848_v40  ;;  %18720 = vmatprep.subr.bf16.mxu1 %v19848_v40  ;;  %v1895_v61 = vand.u32 4294901760, %v1894_v56  ;;  %v20245_v9 = vpack.c.bf16 %v1452_v49, %v1446_v48  ;;  %v2321_v49 = vstv %s16525_s21  ;;  %v4340_v52 = vstv %s16562_s23  ;;  %s16557_s21 = sld [smem:[#allocation2 + $0x20]]  ;;  %s20442_s23 = scalar_lea.vmem [#allocation7], %s16474_s19 }
  0xe0   : > { %v532_v13 = vsub.f32 %v530_v5, %v531_v11  ;;  %v18712_v24 = vpack.c.bf16 %v531_v11, %v524_v63  ;;  %v20237_v63 = vpack.c.bf16 %v1454_v60, %v1448_v59  ;;  %v20243_v5 = vpack.c.bf16 %v1898_v47, %v1892_v44  ;;  %s20524_s19 = sld [smem:[#allocation2 + $0x3f]] }
  0xe1   : > { %17360 = vmatmul.mubr.f32.vlgmr.msra.gmra.mrb[0].mxu0 %v20155_v7  ;;  %17402 = vmatmul.mubr.f32.vlgmr.msra.gmra.mrb[0].mxu1 %v20157_v8  ;;  %v20239_v0 = vpack.c.bf16 %v1901_v62, %v1895_v61  ;;  %v20247_v11 = vpack.c.bf16 %v1899_v51, %v1893_v50  ;;  %v4318_v50 = vmul.f32 %v4316_v38, %v19986_v6 }
  0xe2   : > { %v533_v16 = vand.u32 4294901760, %v532_v13  ;;  %17366 = vmatprep.mubr.msk.f32.mxu0 %vm19849_vm0, %v19850_v41  ;;  %17408 = vmatprep.mubr.msk.f32.mxu1 %vm19849_vm0, %v19850_v41  ;;  %v2273_v13 = vstv %s16521_s10  ;;  %v4317_v51 = vmul.f32 %v4316_v38, %v19982_v3  ;;  %v2323_v53 = vmul.f32 %v19997_v12, %v2321_v49  ;;  %s16535_s10 = sld [smem:[#allocation2 + $0x1e]] }
  0xe3   : > { %v2322_v56 = vmul.f32 %v19994_v10, %v2321_v49  ;;  %v4342_v57 = vmul.f32 %v19997_v12, %v4340_v52  ;;  %v4341_v59 = vmul.f32 %v19994_v10, %v4340_v52  ;;  %v4387_v10 = vstv %s16566_s29  ;;  %s16596_s29 = sld [smem:[#allocation2 + $0x33]] }
  0xe4   : > { %v18703_v18 = vpack.c.bf16 %v533_v16, %v526_v14  ;;  %v2275_v14 = vmul.f32 %v2273_v13, %v19979_v2  ;;  %v2274_v16 = vmul.f32 %v2273_v13, %v19976_v1  ;;  %v2345_v13 = vstv %s20257_s28  ;;  %s16594_s28 = sld [smem:[#allocation2 + $0x31]] }
  0xe6   : > { %18704 = vmatpush3.bf16.msra.mxu0 %v18703_v18  ;;  %18722 = vmatpush3.bf16.msra.mxu1 %v18703_v18  ;;  %v2288_v18 = vpop.permute.xlu1 %2287 }
  0xe7   : > { %18705 = vmatprep.subr.bf16.mxu0 %v19848_v40  ;;  %18723 = vmatprep.subr.bf16.mxu1 %v19848_v40  ;;  %v2292_v26 = vadd.f32 %v2288_v18, %v2275_v14 }
  0xe9   : > { %17367 = vmatmul.mubr.msk.f32.vlgmr.msra.gmra.mrb[0].mxu0 %vm440_vm3, %v20129_v21  ;;  %17409 = vmatmul.mubr.msk.f32.vlgmr.msra.gmra.mrb[0].mxu1 %vm440_vm3, %v20132_v23 }
  0xea   : > { %18707 = vmatpush3.bf16.msra.mxu0 %v18706_v19  ;;  %18725 = vmatpush3.bf16.msra.mxu1 %v18706_v19  ;;  %v2286_v19 = vpop.permute.xlu0 %2285  ;;  %v2312_v47 = vpop.permute.xlu1 %2311 }
  0xeb   : > { %17373 = vmatprep.mubr.msk.f32.mxu0 %vm19849_vm0, %v19850_v41  ;;  %18708 = vmatprep.subr.bf16.mxu0 %v19848_v40  ;;  %v2291_v28 = vadd.f32 %v2286_v19, %v2274_v16  ;;  %v2347_v19 = vmul.f32 %v20007_v17, %v2345_v13 }
  0xec   : > { %17415 = vmatprep.mubr.msk.f32.mxu1 %vm19849_vm0, %v19850_v41  ;;  %18726 = vmatprep.subr.bf16.mxu1 %v19848_v40 }
  0xee   : > { %v2310_v48 = vpop.permute.xlu0 %2309  ;;  %v2336_v61 = vpop.permute.xlu1 %2335 }
  0xf1   : > { %17374 = vmatmul.mubr.f32.vlgmr.msra.gmra.mrb[0].mxu0 %v20140_v45  ;;  %17416 = vmatmul.mubr.f32.vlgmr.msra.gmra.mrb[0].mxu1 %v20142_v46 }
  0xf2   : > { %18710 = vmatpush3.bf16.msra.mxu0 %v18700_v4  ;;  %18728 = vmatpush3.bf16.msra.mxu1 %v18700_v4  ;;  %v2334_v62 = vpop.permute.xlu0 %2333  ;;  %v2360_v38 = vpop.permute.xlu1 %2359 }
  0xf3   : > { %17380 = vmatprep.mubr.msk.f32.mxu0 %vm19849_vm0, %v19850_v41  ;;  %18711 = vmatprep.subr.bf16.mxu0 %v19848_v40 }
  0xf4   : > { %17422 = vmatprep.mubr.msk.f32.mxu1 %vm19849_vm0, %v19850_v41  ;;  %18729 = vmatprep.subr.bf16.mxu1 %v19848_v40 }
  0xf9   : > { %17381 = vmatmul.mubr.f32.vlgmr.msra.gmra.mrb[0].mxu0 %v20146_v54  ;;  %17423 = vmatmul.mubr.f32.vlgmr.msra.gmra.mrb[0].mxu1 %v20149_v55 }
  0xfa   : > { %18713 = vmatpush3.bf16.msra.mxu0 %v18712_v24  ;;  %18731 = vmatpush3.bf16.msra.mxu1 %v18712_v24  ;;  %v2297_v24 = vstv %s16523_s11  ;;  %s2264_s11 = sld [smem:[#allocation5]] }
  0xfb   : > { %17387 = vmatprep.mubr.msk.f32.mxu0 %vm19849_vm0, %v19850_v41  ;;  %18714 = vmatprep.subr.bf16.mxu0 %v19848_v40  ;;  %v2299_v29 = vmul.f32 %v2297_v24, %v19986_v6  ;;  %v2298_v33 = vmul.f32 %v2297_v24, %v19982_v3  ;;  %v4364_v6 = vstv %s20253_s26  ;;  %v2346_v24 = vmul.f32 %v20004_v15, %v2345_v13  ;;  %s16559_s26 = sld [smem:[#allocation2 + $0x22]] }
  0xfc   : > { %17429 = vmatprep.mubr.msk.f32.mxu1 %vm19849_vm0, %v19850_v41  ;;  %18732 = vmatprep.subr.bf16.mxu1 %v19848_v40  ;;  %v4366_v14 = vmul.f32 %v20007_v17, %v4364_v6  ;;  %v4365_v12 = vmul.f32 %v20004_v15, %v4364_v6 }
  0xfd   : > { %v2301_v43 = vadd.f32 %v2299_v29, %v2292_v26  ;;  %v2300_v44 = vadd.f32 %v2298_v33, %v2291_v28  ;;  %v4389_v26 = vmul.f32 %v20017_v22, %v4387_v10  ;;  %v4388_v28 = vmul.f32 %v20014_v20, %v4387_v10 }
  0xfe   : > { %v4411_v29 = vstv %s20270_s27  ;;  %s20454_s27 = sld [smem:[#allocation2 + $0x24]] }
  0xff   : > { %v4413_v15 = vmul.f32 %v20027_v27, %v4411_v29  ;;  %v4412_v17 = vmul.f32 %v20024_v25, %v4411_v29 }
 0x101   : > { %17388 = vmatmul.mubr.msk.f32.vlgmr.msra.gmra.mrb[0].mxu0 %vm440_vm3, %v20129_v21  ;;  %17430 = vmatmul.mubr.msk.f32.vlgmr.msra.gmra.mrb[0].mxu1 %vm440_vm3, %v20132_v23 }
 0x102   : > { %18716 = vmatpush3.bf16.msra.mxu0 %v18700_v4  ;;  %18734 = vmatpush3.bf16.msra.mxu1 %v18700_v4  ;;  %v20241_v4 = vpack.c.bf16 %v1451_v42, %v1445_v34  ;;  %v4294_v34 = vmul.f32 %v4292_v36, %v19979_v2  ;;  %v4293_v42 = vmul.f32 %v4292_v36, %v19976_v1 }
 0x103   : > { %17394 = vmatprep.mubr.msk.f32.mxu0 %vm19849_vm0, %v19850_v41  ;;  %17436 = vmatprep.mubr.msk.f32.mxu1 %vm19849_vm0, %v19850_v41  ;;  %v2316_v1 = vadd.f32 %v2312_v47, %v2301_v43  ;;  %v2315_v2 = vadd.f32 %v2310_v48, %v2300_v44  ;;  %v4434_v43 = vstv %s16570_s6  ;;  %s20466_s6 = sld [smem:[#allocation2 + $0x37]] }
 0x104   : > { %18735 = vmatprep.subr.bf16.mxu0 %v19848_v40  ;;  %18753 = vmatprep.subr.bf16.mxu1 %v19848_v40 }
 0x105   : > { %4299 = vrot.lane.b32.xlu1 %v4294_v34, %s19847_s4  ;;  %4297 = vrot.lane.b32.xlu0 %v4293_v42, %s19847_s4  ;;  %v2325_v3 = vadd.f32 %v2323_v53, %v2316_v1  ;;  %v2324_v60 = vadd.f32 %v2322_v56, %v2315_v2  ;;  %v2358_v34 = vpop.permute.xlu0 %2357  ;;  %v2368_v42 = vstv %s20273_s5  ;;  %v4458_v2 = vstv %s20286_s7  ;;  %s20456_s5 = sld [smem:[#allocation2 + $0x35]]  ;;  %s20471_s7 = sld [smem:[#allocation2 + $0x26]] }
 0x106   : > { %v2370_v48 = vmul.f32 %v20017_v22, %v2368_v42  ;;  %v2369_v49 = vmul.f32 %v20014_v20, %v2368_v42  ;;  %v2392_v20 = vstv %s20289_s8  ;;  %s20478_s8 = sld [smem:[#allocation2 + $0x39]] }
 0x107   : > { %v2340_v16 = vadd.f32 %v2336_v61, %v2325_v3  ;;  %v2339_v18 = vadd.f32 %v2334_v62, %v2324_v60  ;;  %v2383_v3 = vpop.permute.xlu1 %2382  ;;  %v4460_v60 = vmul.f32 %v20047_v37, %v4458_v2  ;;  %v4459_v61 = vmul.f32 %v20044_v35, %v4458_v2 }
 0x108   : > { %v2394_v10 = vmul.f32 %v20027_v27, %v2392_v20 }
 0x109   : > { %17395 = vmatmul.mubr.msk.f32.vlgmr.msra.gmra.mrb[0].mxu0 %vm440_vm3, %v20129_v21  ;;  %17437 = vmatmul.mubr.msk.f32.vlgmr.msra.gmra.mrb[0].mxu1 %vm440_vm3, %v20132_v23  ;;  %v2349_v33 = vadd.f32 %v2347_v19, %v2340_v16  ;;  %v2348_v36 = vadd.f32 %v2346_v24, %v2339_v18  ;;  %v2381_v13 = vpop.permute.xlu0 %2380  ;;  %v2393_v18 = vmul.f32 %v20024_v25, %v2392_v20 }
 0x10a   : > { %17443 = vmatprep.mubr.msk.f32.mxu0 %vm19849_vm0, %v19850_v41  ;;  %17485 = vmatprep.mubr.msk.f32.mxu1 %vm19849_vm0, %v19850_v41 }
 0x10b   : > { %18737 = vmatpush3.bf16.msk.msra.mxu0 %vm20217_vm7, %v19851_v58  ;;  %18755 = vmatpush3.bf16.msk.msra.mxu1 %vm20227_vm9, %v19851_v58  ;;  %v2364_v44 = vadd.f32 %v2360_v38, %v2349_v33  ;;  %v2363_v47 = vadd.f32 %v2358_v34, %v2348_v36  ;;  %v2415_v33 = vstv %s16533_s9  ;;  %s20493_s9 = sld [smem:[#allocation2 + $0x3b]] }
 0x10c   : > { %18738 = vmatprep.subr.bf16.mxu0 %v19848_v40  ;;  %18756 = vmatprep.subr.bf16.mxu1 %v19848_v40  ;;  %v2417_v27 = vmul.f32 %v20037_v32, %v2415_v33  ;;  %v2416_v42 = vmul.f32 %v20034_v30, %v2415_v33  ;;  %v20447_v33 = vld [vmem:[%s19973_s30 + $0x8] sm:$0xff] }
 0x10d   : > { %4323 = vrot.lane.b32.xlu1 %v4318_v50, %s19847_s4  ;;  %4321 = vrot.lane.b32.xlu0 %v4317_v51, %s19847_s4  ;;  %v4436_v50 = vmul.f32 %v20037_v32, %v4434_v43  ;;  %v4435_v51 = vmul.f32 %v20034_v30, %v4434_v43  ;;  %v2371_v6 = vadd.f32 %v2369_v49, %v2363_v47  ;;  %v2405_v38 = vpop.permute.xlu0 %2404 }
 0x10f   : > { %v2386_v16 = vadd.f32 %v2381_v13, %v2371_v6 }
 0x111   : > { %4347 = vrot.lane.b32.xlu1 %v4342_v57, %s19847_s4  ;;  %4345 = vrot.lane.b32.xlu0 %v4341_v59, %s19847_s4  ;;  %v2372_v59 = vadd.f32 %v2370_v48, %v2364_v44  ;;  %v2395_v29 = vadd.f32 %v2393_v18, %v2386_v16  ;;  %v2428_v43 = vpop.permute.xlu0 %2427  ;;  %v2439_v44 = vstv %s16535_s10  ;;  %v2265_v16 = vstv %s2264_s11  ;;  %s20496_s10 = sld [smem:[#allocation2 + $0x28]]  ;;  %s20509_s11 = sld [smem:[#allocation2 + $0x3d]] }
 0x112   : > { %v2441_v48 = vmul.f32 %v20047_v37, %v2439_v44  ;;  %v2440_v49 = vmul.f32 %v20044_v35, %v2439_v44  ;;  %v20463_v44 = vld [vmem:[%s19973_s30 + $0x1] sm:$0xff] }
 0x113   : > { %v2410_v25 = vadd.f32 %v2405_v38, %v2395_v29  ;;  %v4285_v29 = vstv %s16557_s21  ;;  %v20451_v38 = vld [vmem:[%s19973_s30] sm:$0xff]  ;;  %s20527_s21 = sld [smem:[#allocation2 + $0x2a]] }
 0x115   : > { %4371 = vrot.lane.b32.xlu1 %v4366_v14, %s19847_s4  ;;  %4369 = vrot.lane.b32.xlu0 %v4365_v12, %s19847_s4  ;;  %v2387_v12 = vadd.f32 %v2383_v3, %v2372_v59  ;;  %v2418_v32 = vadd.f32 %v2416_v42, %v2410_v25  ;;  %v4309_v42 = vstv %s16559_s26  ;;  %s20555_s26 = sld [smem:[#allocation2 + $0x2c]] }
 0x117   : > { %v2433_v47 = vadd.f32 %v2428_v43, %v2418_v32  ;;  %v20459_v32 = vld [vmem:[%s19973_s30 + $0x9] sm:$0xff] }
 0x118   : > { %v4311_v43 = vmul.f32 %v20459_v32, %v4309_v42 }
 0x119   : > { %4394 = vrot.lane.b32.xlu1 %v4389_v26, %s19847_s4  ;;  %4392 = vrot.lane.b32.xlu0 %v4388_v28, %s19847_s4  ;;  %v2396_v26 = vadd.f32 %v2394_v10, %v2387_v12  ;;  %v2407_v28 = vpop.permute.xlu1 %2406 }
 0x11b   : > { %v2411_v34 = vadd.f32 %v2407_v28, %v2396_v26 }
 0x11d   : > { %4418 = vrot.lane.b32.xlu1 %v4413_v15, %s19847_s4  ;;  %4416 = vrot.lane.b32.xlu0 %v4412_v17, %s19847_s4  ;;  %v2419_v15 = vadd.f32 %v2417_v27, %v2411_v34  ;;  %v2430_v17 = vpop.permute.xlu1 %2429  ;;  %v4286_v34 = vmul.f32 %v20451_v38, %v4285_v29 }
 0x11f   : > { %v2434_v30 = vadd.f32 %v2430_v17, %v2419_v15 }
 0x121   : > { %4441 = vrot.lane.b32.xlu1 %v4436_v50, %s19847_s4  ;;  %4439 = vrot.lane.b32.xlu0 %v4435_v51, %s19847_s4  ;;  %v2443_v50 = vadd.f32 %v2441_v48, %v2434_v30  ;;  %v2442_v51 = vadd.f32 %v2440_v49, %v2433_v47  ;;  %v4310_v30 = vmul.f32 %v20463_v44, %v4309_v42  ;;  %v6304_v47 = vstv %s16594_s28  ;;  %s16571_s28 = sld [smem:[#allocation2 + $0x2e]] }
 0x122   : > { %v6328_v48 = vstv %s16596_s29  ;;  %v6306_v49 = vmul.f32 %v20447_v33, %v6304_v47  ;;  %s16555_s29 = sld [smem:[#allocation5 + $0x1]] }
 0x125   : > { %4465 = vrot.lane.b32.xlu1 %v4460_v60, %s19847_s4  ;;  %4463 = vrot.lane.b32.xlu0 %v4459_v61, %s19847_s4 }
 0x129   : > { %6311 = vrot.lane.b32.xlu1 %v6306_v49, %s19847_s4 }
 0x1dc   : > { %v899_v52 = vpop.f32.mrb[0].mxu0  ;;  %v1361_v1 = vpop.f32.mrb[0].mxu1 }
 0x1dd   : > { %v1365_v53 = vmax.f32 %v899_v52, %v1361_v1  ;;  %v17396_v56 = vpop.f32.mrb[1].mxu0  ;;  %v17438_v57 = vpop.f32.mrb[1].mxu1 }
 0x1de   : > { %v2454_v52 = vpop.permute.xlu1 %2453  ;;  %v2452_v1 = vpop.permute.xlu0 %2451 }
 0x1df   : > { %v1367_v22 = vsel %vm440_vm3, %v1365_v53, 0  ;;  %v2458_v35 = vadd.f32 %v2454_v52, %v2443_v50  ;;  %v2457_v37 = vadd.f32 %v2452_v1, %v2442_v51  ;;  %v6305_v50 = vmul.f32 %v20451_v38, %v6304_v47 }
 0x1e0   : > { %v20308_v62 = vand.u32 4294901760, %v1367_v22 }
 0x1e1   : > { %v2463_v2 = vand.u32 4294901760, %v2458_v35  ;;  %v2460_v53 = vand.u32 4294901760, %v2457_v37  ;;  %6309 = vrot.lane.b32.xlu0 %v6305_v50, %s19847_s4  ;;  %v4380_v50 = vstv %s20496_s10  ;;  %s20705_s10 = sld [smem:[#allocation2 + $0x47]] }
 0x1e2   : > { %v1435_v14 = vsub.f32 %v1367_v22, %v20308_v62  ;;  %v4300_v27 = vpop.permute.xlu1 %4299  ;;  %v4298_v25 = vpop.permute.xlu0 %4297 }
 0x1e3   : > { %v2545_v56 = vsub.f32 %v2458_v35, %v2463_v2  ;;  %v2538_v57 = vsub.f32 %v2457_v37, %v2460_v53  ;;  %v18772_v60 = vpack.c.bf16 %v2463_v2, %v2460_v53  ;;  %v4303_v17 = vadd.f32 %v4298_v25, %v4286_v34  ;;  %v20516_v25 = vld [vmem:[%s19973_s30 + $0x38] sm:$0xff] }
 0x1e4   : > { %v1436_v19 = vand.u32 4294901760, %v1435_v14  ;;  %v4333_v37 = vstv %s20454_s27  ;;  %v6330_v2 = vmul.f32 %v20459_v32, %v6328_v48  ;;  %v6329_v53 = vmul.f32 %v20463_v44, %v6328_v48  ;;  %s16593_s27 = sld [smem:[#allocation2 + $0x30]] }
 0x1e5   : > { %v2546_v59 = vand.u32 4294901760, %v2545_v56  ;;  %v2539_v6 = vand.u32 4294901760, %v2538_v57  ;;  %v4312_v52 = vadd.f32 %v4310_v30, %v4303_v17 }
 0x1e6   : > { %v1437_v24 = vsub.f32 %v1435_v14, %v1436_v19  ;;  %v4324_v1 = vpop.permute.xlu1 %4323  ;;  %v4322_v35 = vpop.permute.xlu0 %4321  ;;  %6335 = vrot.lane.b32.xlu1 %v6330_v2, %s19847_s4  ;;  %6333 = vrot.lane.b32.xlu0 %v6329_v53, %s19847_s4 }
 0x1e7   : > { %v2547_v22 = vsub.f32 %v2545_v56, %v2546_v59  ;;  %v2540_v3 = vsub.f32 %v2538_v57, %v2539_v6 }
 0x1e8   : > { %v1438_v36 = vand.u32 4294901760, %v1437_v24 }
 0x1e9   : > { %v2548_v20 = vand.u32 4294901760, %v2547_v22  ;;  %v2541_v61 = vand.u32 4294901760, %v2540_v3  ;;  %v20485_v3 = vld [vmem:[%s19973_s30 + $0x18] sm:$0xff] }
 0x1ea   : > { %17444 = vmatmul.mubr.f32.vlgmr.msra.gmra.mrb[2].mxu0 %v1438_v36  ;;  %17486 = vmatmul.mubr.f32.vlgmr.msra.gmra.mrb[2].mxu1 %v1438_v36  ;;  %v4287_v36 = vmul.f32 %v20447_v33, %v4285_v29 }
 0x1eb   : > { %18740 = vmatpush3.bf16.msra.mxu0 %v20237_v63  ;;  %18758 = vmatpush3.bf16.msra.mxu1 %v20239_v0  ;;  %v18775_v13 = vpack.c.bf16 %v2548_v20, %v2541_v61  ;;  %v4334_v20 = vmul.f32 %v20485_v3, %v4333_v37 }
 0x1ec   : > { %17450 = vmatprep.mubr.msk.f32.mxu0 %vm19849_vm0, %v19850_v41  ;;  %17492 = vmatprep.mubr.msk.f32.mxu1 %vm19849_vm0, %v19850_v41  ;;  %v4304_v15 = vadd.f32 %v4300_v27, %v4287_v36 }
 0x1ed   : > { %18741 = vmatprep.subr.bf16.mxu0 %v19848_v40  ;;  %18759 = vmatprep.subr.bf16.mxu1 %v19848_v40 }
 0x1ee   : > { %v4313_v51 = vadd.f32 %v4311_v43, %v4304_v15  ;;  %v20520_v15 = vld [vmem:[%s19973_s30 + $0x30] sm:$0xff]  ;;  %v6423_v43 = vstv %s20493_s9  ;;  %s16634_s9 = sld [smem:[#allocation2 + $0x45]] }
 0x1f2   : > { %17451 = vmatmul.mubr.f32.vlgmr.msra.gmra.mrb[2].mxu0 %v20308_v62  ;;  %17493 = vmatmul.mubr.f32.vlgmr.msra.gmra.mrb[2].mxu1 %v20308_v62 }
 0x1f3   : > { %18743 = vmatpush3.bf16.msra.mxu0 %v20241_v4  ;;  %18761 = vmatpush3.bf16.msra.mxu1 %v20243_v5 }
 0x1f4   : > { %17457 = vmatprep.mubr.msk.f32.mxu0 %vm19849_vm0, %v19850_v41  ;;  %17499 = vmatprep.mubr.msk.f32.mxu1 %vm19849_vm0, %v19850_v41 }
 0x1f5   : > { %18744 = vmatprep.subr.bf16.mxu0 %v19848_v40  ;;  %18762 = vmatprep.subr.bf16.mxu1 %v19848_v40 }
 0x1fa   : > { %17458 = vmatmul.mubr.f32.vlgmr.msra.gmra.mrb[2].mxu0 %v1435_v14  ;;  %17500 = vmatmul.mubr.f32.vlgmr.msra.gmra.mrb[2].mxu1 %v1435_v14  ;;  %v18784_v14 = vpack.c.bf16 %v2546_v59, %v2539_v6  ;;  %v4327_v59 = vadd.f32 %v4322_v35, %v4312_v52  ;;  %v20481_v6 = vld [vmem:[%s19973_s30 + $0x20] sm:$0xff] }
 0x1fb   : > { %18746 = vmatpush3.bf16.msk.msra.mxu0 %vm20217_vm7, %v19851_v58  ;;  %18764 = vmatpush3.bf16.msk.msra.mxu1 %vm20227_vm9, %v19851_v58  ;;  %v4335_v22 = vmul.f32 %v20481_v6, %v4333_v37  ;;  %v6446_v37 = vstv %s20509_s11  ;;  %s20709_s11 = sld [smem:[#allocation2 + $0x36]] }
 0x1fc   : > { %17464 = vmatprep.mubr.msk.f32.mxu0 %vm19849_vm0, %v19850_v41  ;;  %17506 = vmatprep.mubr.msk.f32.mxu1 %vm19849_vm0, %v19850_v41 }
 0x1fd   : > { %18747 = vmatprep.subr.bf16.mxu0 %v19848_v40  ;;  %18765 = vmatprep.subr.bf16.mxu1 %v19848_v40 }
 0x202   : > { %17465 = vmatmul.mubr.f32.vlgmr.msra.gmra.mrb[2].mxu0 %v1436_v19  ;;  %17507 = vmatmul.mubr.f32.vlgmr.msra.gmra.mrb[2].mxu1 %v1436_v19 }
 0x203   : > { %18749 = vmatpush3.bf16.msra.mxu0 %v20245_v9  ;;  %18767 = vmatpush3.bf16.msra.mxu1 %v20247_v11 }
 0x204   : > { %17471 = vmatprep.mubr.msk.f32.mxu0 %vm19849_vm0, %v19850_v41  ;;  %17513 = vmatprep.mubr.msk.f32.mxu1 %vm19849_vm0, %v19850_v41 }
 0x205   : > { %18750 = vmatprep.subr.bf16.mxu0 %v19848_v40  ;;  %18768 = vmatprep.subr.bf16.mxu1 %v19848_v40 }
 0x20a   : > { %17472 = vmatmul.mubr.f32.vlgmr.msra.gmra.mrb[2].mxu0 %v20308_v62  ;;  %17514 = vmatmul.mubr.f32.vlgmr.msra.gmra.mrb[2].mxu1 %v20308_v62 }
 0x20b   : > { %18752 = vmatpush3.bf16.msk.msra.mxu0 %vm20217_vm7, %v19851_v58  ;;  %18770 = vmatpush3.bf16.msk.msra.mxu1 %vm20227_vm9, %v19851_v58 }
 0x20c   : > { %17478 = vmatprep.mubr.msk.f32.mxu0 %vm19849_vm0, %v19850_v41  ;;  %17520 = vmatprep.mubr.msk.f32.mxu1 %vm19849_vm0, %v19850_v41 }
 0x20d   : > { %18771 = vmatprep.subr.bf16.mxu0 %v19848_v40  ;;  %18789 = vmatprep.subr.bf16.mxu1 %v19848_v40 }
 0x212   : > { %17479 = vmatmul.mubr.f32.vlgmr.msra.gmra.mrb[2].mxu0 %v20308_v62  ;;  %17521 = vmatmul.mubr.f32.vlgmr.msra.gmra.mrb[2].mxu1 %v20308_v62  ;;  %v18778_v62 = vpack.c.bf16 %v2545_v56, %v2538_v57  ;;  %v6352_v56 = vstv %s20456_s5  ;;  %v4328_v57 = vadd.f32 %v4324_v1, %v4313_v51  ;;  %v20532_v51 = vld [vmem:[%s19973_s30 + $0x39] sm:$0xff]  ;;  %v20536_v1 = vld [vmem:[%s19973_s30 + $0x31] sm:$0xff]  ;;  %s16595_s5 = sld [smem:[#allocation2 + $0x32]] }
 0x213   : > { %18773 = vmatpush3.bf16.msra.mxu0 %v18772_v60  ;;  %18791 = vmatpush3.bf16.msra.mxu1 %v18772_v60  ;;  %v6353_v61 = vmul.f32 %v20485_v3, %v6352_v56  ;;  %v6425_v52 = vmul.f32 %v20532_v51, %v6423_v43  ;;  %v6424_v35 = vmul.f32 %v20536_v1, %v6423_v43 }
 0x214   : > { %17527 = vmatprep.mubr.msk.f32.mxu0 %vm19849_vm0, %v19850_v41  ;;  %17569 = vmatprep.mubr.msk.f32.mxu1 %vm19849_vm0, %v19850_v41 }
 0x215   : > { %18774 = vmatprep.subr.bf16.mxu0 %v19848_v40  ;;  %18792 = vmatprep.subr.bf16.mxu1 %v19848_v40 }
 0x216   : > { %17528 = vmatmul.mubr.f32.vlgmr.msra.gmra.mrb[4].mxu0 %v20155_v7  ;;  %17570 = vmatmul.mubr.f32.vlgmr.msra.gmra.mrb[4].mxu1 %v20157_v8 }
 0x217   : > { %18776 = vmatpush3.bf16.msra.mxu0 %v18775_v13  ;;  %18794 = vmatpush3.bf16.msra.mxu1 %v18775_v13  ;;  %v6376_v13 = vstv %s20466_s6  ;;  %s16630_s6 = sld [smem:[#allocation2 + $0x41]] }
 0x218   : > { %17534 = vmatprep.mubr.msk.f32.mxu0 %vm19849_vm0, %v19850_v41  ;;  %18777 = vmatprep.subr.bf16.mxu0 %v19848_v40 }
 0x219   : > { %17576 = vmatprep.mubr.msk.f32.mxu1 %vm19849_vm0, %v19850_v41  ;;  %18795 = vmatprep.subr.bf16.mxu1 %v19848_v40 }
 0x21a   : > { %6357 = vrot.lane.b32.xlu0 %v6353_v61, %s19847_s4 }
 0x21e   : > { %17535 = vmatmul.mubr.msk.f32.vlgmr.msra.gmra.mrb[4].mxu0 %vm440_vm3, %v20129_v21  ;;  %17577 = vmatmul.mubr.msk.f32.vlgmr.msra.gmra.mrb[4].mxu1 %vm440_vm3, %v20132_v23 }
 0x21f   : > { %18779 = vmatpush3.bf16.msra.mxu0 %v18778_v62  ;;  %18797 = vmatpush3.bf16.msra.mxu1 %v18778_v62  ;;  %v4337_v62 = vadd.f32 %v4335_v22, %v4328_v57  ;;  %v4381_v57 = vmul.f32 %v20520_v15, %v4380_v50 }
 0x220   : > { %17541 = vmatprep.mubr.msk.f32.mxu0 %vm19849_vm0, %v19850_v41  ;;  %18780 = vmatprep.subr.bf16.mxu0 %v19848_v40 }
 0x221   : > { %17583 = vmatprep.mubr.msk.f32.mxu1 %vm19849_vm0, %v19850_v41  ;;  %18798 = vmatprep.subr.bf16.mxu1 %v19848_v40 }
 0x226   : > { %17542 = vmatmul.mubr.f32.vlgmr.msra.gmra.mrb[4].mxu0 %v20140_v45  ;;  %17584 = vmatmul.mubr.f32.vlgmr.msra.gmra.mrb[4].mxu1 %v20142_v46 }
 0x227   : > { %18782 = vmatpush3.bf16.msra.mxu0 %v18772_v60  ;;  %18800 = vmatpush3.bf16.msra.mxu1 %v18772_v60 }
 0x228   : > { %17548 = vmatprep.mubr.msk.f32.mxu0 %vm19849_vm0, %v19850_v41  ;;  %18783 = vmatprep.subr.bf16.mxu0 %v19848_v40 }
 0x229   : > { %17590 = vmatprep.mubr.msk.f32.mxu1 %vm19849_vm0, %v19850_v41  ;;  %18801 = vmatprep.subr.bf16.mxu1 %v19848_v40 }
 0x22e   : > { %17549 = vmatmul.mubr.f32.vlgmr.msra.gmra.mrb[4].mxu0 %v20146_v54  ;;  %17591 = vmatmul.mubr.f32.vlgmr.msra.gmra.mrb[4].mxu1 %v20149_v55 }
 0x22f   : > { %18785 = vmatpush3.bf16.msra.mxu0 %v18784_v14  ;;  %18803 = vmatpush3.bf16.msra.mxu1 %v18784_v14  ;;  %v4336_v14 = vadd.f32 %v4334_v20, %v4327_v59  ;;  %v20545_v59 = vld [vmem:[%s19973_s30 + $0x50] sm:$0xff]  ;;  %v20549_v20 = vld [vmem:[%s19973_s30 + $0x48] sm:$0xff] }
 0x230   : > { %17555 = vmatprep.mubr.msk.f32.mxu0 %vm19849_vm0, %v19850_v41  ;;  %18786 = vmatprep.subr.bf16.mxu0 %v19848_v40  ;;  %v6448_v22 = vmul.f32 %v20545_v59, %v6446_v37 }
 0x231   : > { %17597 = vmatprep.mubr.msk.f32.mxu1 %vm19849_vm0, %v19850_v41  ;;  %18804 = vmatprep.subr.bf16.mxu1 %v19848_v40 }
 0x236   : > { %17556 = vmatmul.mubr.msk.f32.vlgmr.msra.gmra.mrb[4].mxu0 %vm440_vm3, %v20129_v21  ;;  %17598 = vmatmul.mubr.msk.f32.vlgmr.msra.gmra.mrb[4].mxu1 %vm440_vm3, %v20132_v23 }
 0x237   : > { %18788 = vmatpush3.bf16.msra.mxu0 %v18772_v60  ;;  %18806 = vmatpush3.bf16.msra.mxu1 %v18772_v60  ;;  %v6354_v60 = vmul.f32 %v20481_v6, %v6352_v56  ;;  %v4382_v56 = vmul.f32 %v20516_v25, %v4380_v50 }
 0x238   : > { %17562 = vmatprep.mubr.msk.f32.mxu0 %vm19849_vm0, %v19850_v41  ;;  %17604 = vmatprep.mubr.msk.f32.mxu1 %vm19849_vm0, %v19850_v41 }
 0x239   : > { %18807 = vmatprep.subr.bf16.mxu0 %v19848_v40  ;;  %18825 = vmatprep.subr.bf16.mxu1 %v19848_v40 }
 0x23a   : > { %6359 = vrot.lane.b32.xlu1 %v6354_v60, %s19847_s4  ;;  %v6447_v60 = vmul.f32 %v20549_v20, %v6446_v37 }
 0x23e   : > { %17563 = vmatmul.mubr.msk.f32.vlgmr.msra.gmra.mrb[4].mxu0 %vm440_vm3, %v20129_v21  ;;  %17605 = vmatmul.mubr.msk.f32.vlgmr.msra.gmra.mrb[4].mxu1 %vm440_vm3, %v20132_v23 }
 0x23f   : > { %18809 = vmatpush3.bf16.msk.msra.mxu0 %vm20217_vm7, %v19851_v58  ;;  %18827 = vmatpush3.bf16.msk.msra.mxu1 %vm20227_vm9, %v19851_v58 }
 0x240   : > { %17611 = vmatprep.mubr.msk.f32.mxu0 %vm19849_vm0, %v19850_v41  ;;  %17653 = vmatprep.mubr.msk.f32.mxu1 %vm19849_vm0, %v19850_v41 }
 0x241   : > { %18810 = vmatprep.subr.bf16.mxu0 %v19848_v40  ;;  %18828 = vmatprep.subr.bf16.mxu1 %v19848_v40 }
 0x2e5   : > { %v1812_v12 = vpop.f32.mrb[2].mxu0  ;;  %v2259_v10 = vpop.f32.mrb[2].mxu1 }
 0x2e6   : > { %v2263_v18 = vmax.f32 %v1812_v12, %v2259_v10  ;;  %v17480_v19 = vpop.f32.mrb[3].mxu0  ;;  %v17522_v24 = vpop.f32.mrb[3].mxu1 }
 0x2e7   : > { %v4348_v12 = vpop.permute.xlu1 %4347  ;;  %v4346_v10 = vpop.permute.xlu0 %4345  ;;  %v20505_v24 = vld [vmem:[%s19973_s30 + $0x19] sm:$0xff] }
 0x2e8   : > { %v2266_v26 = vadd.f32 %v2265_v16, %v2263_v18  ;;  %v4357_v16 = vstv %s20471_s7  ;;  %v20501_v18 = vld [vmem:[%s19973_s30 + $0x21] sm:$0xff]  ;;  %v4352_v29 = vadd.f32 %v4348_v12, %v4337_v62  ;;  %v4351_v36 = vadd.f32 %v4346_v10, %v4336_v14  ;;  %s16632_s7 = sld [smem:[#allocation2 + $0x43]] }
 0x2e9   : > { %v6378_v19 = vmul.f32 %v20501_v18, %v6376_v13  ;;  %v4359_v34 = vmul.f32 %v20501_v18, %v4357_v16  ;;  %v4358_v27 = vmul.f32 %v20505_v24, %v4357_v16  ;;  %v6470_v62 = vstv %s20524_s19  ;;  %s16638_s19 = sld [smem:[#allocation2 + $0x49]] }
 0x2ea   : > { %v2267_v28 = vmax.f32 %v2266_v26, 0.0  ;;  %v6377_v26 = vmul.f32 %v20505_v24, %v6376_v13 }
 0x2eb   : > { %6383 = vrot.lane.b32.xlu1 %v6378_v19, %s19847_s4  ;;  %v4361_v30 = vadd.f32 %v4359_v34, %v4352_v29  ;;  %v4360_v47 = vadd.f32 %v4358_v27, %v4351_v36  ;;  %v4372_v48 = vpop.permute.xlu1 %4371  ;;  %v4370_v49 = vpop.permute.xlu0 %4369  ;;  %v4404_v29 = vstv %s20527_s21  ;;  %v20560_v36 = vld [vmem:[%s19973_s30 + $0x51] sm:$0xff]  ;;  %v20564_v27 = vld [vmem:[%s19973_s30 + $0x49] sm:$0xff]  ;;  %s20722_s21 = sld [smem:[#allocation2 + $0x4b]] }
 0x2ec   : > { %2269 = vst.msk [vmem:[%s20442_s23] sm:$0xff] %vm2268_vm10, %v2267_v28  ;;  %v6399_v28 = vstv %s20478_s8  ;;  %6381 = vrot.lane.b32.xlu0 %v6377_v26, %s19847_s4  ;;  %v6472_v34 = vmul.f32 %v20560_v36, %v6470_v62  ;;  %v4405_v50 = vmul.f32 %v20536_v1, %v4404_v29  ;;  %s16597_s8 = sld [smem:[#allocation2 + $0x34]] }
 0x2ed   : > { %v6401_v42 = vmul.f32 %v20516_v25, %v6399_v28  ;;  %v6400_v17 = vmul.f32 %v20520_v15, %v6399_v28  ;;  %v4376_v2 = vadd.f32 %v4372_v48, %v4361_v30  ;;  %v4375_v53 = vadd.f32 %v4370_v49, %v4360_v47 }
 0x2ee   : > { %v4406_v48 = vmul.f32 %v20532_v51, %v4404_v29 }
 0x2ef   : > { %6406 = vrot.lane.b32.xlu1 %v6401_v42, %s19847_s4  ;;  %v4384_v16 = vadd.f32 %v4382_v56, %v4376_v2  ;;  %v4383_v19 = vadd.f32 %v4381_v57, %v4375_v53  ;;  %v4395_v28 = vpop.permute.xlu1 %4394  ;;  %v6471_v42 = vmul.f32 %v20564_v27, %v6470_v62  ;;  %v4393_v43 = vpop.permute.xlu0 %4392  ;;  %v4427_v56 = vstv %s20555_s26  ;;  %s20725_s26 = sld [smem:[#allocation2 + $0x38]] }
 0x2f0   : > { %6404 = vrot.lane.b32.xlu0 %v6400_v17, %s19847_s4  ;;  %v4428_v62 = vmul.f32 %v20549_v20, %v4427_v56 }
 0x2f1   : > { %v4399_v47 = vadd.f32 %v4395_v28, %v4384_v16  ;;  %v4398_v49 = vadd.f32 %v4393_v43, %v4383_v19  ;;  %v4451_v19 = vstv %s16571_s28  ;;  %s16642_s28 = sld [smem:[#allocation2 + $0x4d]] }
 0x2f2   : > { %v4453_v29 = vmul.f32 %v20560_v36, %v4451_v19 }
 0x2f3   : > { %6430 = vrot.lane.b32.xlu1 %v6425_v52, %s19847_s4  ;;  %v4408_v37 = vadd.f32 %v4406_v48, %v4399_v47  ;;  %v4419_v2 = vpop.permute.xlu1 %4418  ;;  %v4407_v53 = vadd.f32 %v4405_v50, %v4398_v49 }
 0x2f4   : > { %6428 = vrot.lane.b32.xlu0 %v6424_v35, %s19847_s4 }
 0x2f7   : > { %6453 = vrot.lane.b32.xlu1 %v6448_v22, %s19847_s4  ;;  %v4417_v22 = vpop.permute.xlu0 %4416 }
 0x2f8   : > { %6451 = vrot.lane.b32.xlu0 %v6447_v60, %s19847_s4  ;;  %v4423_v60 = vadd.f32 %v4419_v2, %v4408_v37 }
 0x2fb   : > { %6477 = vrot.lane.b32.xlu1 %v6472_v34, %s19847_s4  ;;  %v4440_v16 = vpop.permute.xlu0 %4439  ;;  %v4452_v34 = vmul.f32 %v20564_v27, %v4451_v19 }
 0x2fc   : > { %6475 = vrot.lane.b32.xlu0 %v6471_v42, %s19847_s4 }
 0x2ff   : > { %v4464_v48 = vpop.permute.xlu0 %4463 }
 0x311   : > { %v2914_v61 = vpop.f32.mrb[4].mxu0  ;;  %v3373_v13 = vpop.f32.mrb[4].mxu1 }
 0x312   : > { %v3377_v14 = vmax.f32 %v2914_v61, %v3373_v13  ;;  %v17564_v12 = vpop.f32.mrb[5].mxu0  ;;  %v17606_v10 = vpop.f32.mrb[5].mxu1  ;;  %v4429_v61 = vmul.f32 %v20545_v59, %v4427_v56  ;;  %v4422_v13 = vadd.f32 %v4417_v22, %v4407_v53 }
 0x313   : > { %v4442_v12 = vpop.permute.xlu1 %4441 }
 0x314   : > { %v3379_v26 = vsel %vm440_vm3, %v3377_v14, 0  ;;  %v4431_v14 = vadd.f32 %v4429_v61, %v4423_v60  ;;  %v4430_v10 = vadd.f32 %v4428_v62, %v4422_v13 }
 0x315   : > { %v20567_v17 = vand.u32 4294901760, %v3379_v26 }
 0x316   : > { %v4445_v28 = vadd.f32 %v4440_v16, %v4430_v10  ;;  %v4277_v10 = vstv %s16555_s29  ;;  %s20738_s29 = sld [smem:[#allocation2 + $0x4f]] }
 0x317   : > { %v3447_v30 = vsub.f32 %v3379_v26, %v20567_v17  ;;  %v4446_v26 = vadd.f32 %v4442_v12, %v4431_v14  ;;  %v4466_v47 = vpop.permute.xlu1 %4465 }
 0x318   : > { %v4454_v43 = vadd.f32 %v4452_v34, %v4445_v28  ;;  %v6297_v34 = vstv %s16593_s27  ;;  %s20741_s27 = sld [smem:[#allocation2 + $0x3a]] }
 0x319   : > { %v3448_v52 = vand.u32 4294901760, %v3447_v30  ;;  %v4455_v42 = vadd.f32 %v4453_v29, %v4446_v26 }
 0x31a   : > { %v4469_v50 = vadd.f32 %v4464_v48, %v4454_v43  ;;  %v6298_v43 = vmul.f32 %v20451_v38, %v6297_v34  ;;  %v6310_v48 = vpop.permute.xlu0 %6309 }
 0x31b   : > { %v3449_v35 = vsub.f32 %v3447_v30, %v3448_v52  ;;  %v4470_v49 = vadd.f32 %v4466_v47, %v4455_v42  ;;  %v6299_v42 = vmul.f32 %v20447_v33, %v6297_v34  ;;  %v6312_v47 = vpop.permute.xlu1 %6311  ;;  %v6369_v34 = vstv %s20709_s11  ;;  %s16668_s11 = sld [smem:[#allocation2 + $0x53]] }
 0x31d   : > { %v3450_v57 = vand.u32 4294901760, %v3449_v35  ;;  %v4472_v35 = vand.u32 4294901760, %v4469_v50 }
 0x31f   : > { %17612 = vmatmul.mubr.f32.vlgmr.msra.gmra.mrb[6].mxu0 %v3450_v57  ;;  %17654 = vmatmul.mubr.f32.vlgmr.msra.gmra.mrb[6].mxu1 %v3450_v57  ;;  %v4550_v2 = vsub.f32 %v4469_v50, %v4472_v35  ;;  %v6316_v50 = vadd.f32 %v6312_v47, %v6299_v42 }
 0x320   : > { %18812 = vmatpush3.bf16.msra.mxu0 %v20237_v63  ;;  %18830 = vmatpush3.bf16.msra.mxu1 %v20239_v0 }
 0x321   : > { %17618 = vmatprep.mubr.msk.f32.mxu0 %vm19849_vm0, %v19850_v41  ;;  %17660 = vmatprep.mubr.msk.f32.mxu1 %vm19849_vm0, %v19850_v41  ;;  %v4551_v56 = vand.u32 4294901760, %v4550_v2 }
 0x322   : > { %18813 = vmatprep.subr.bf16.mxu0 %v19848_v40  ;;  %18831 = vmatprep.subr.bf16.mxu1 %v19848_v40 }
 0x323   : > { %v4552_v57 = vsub.f32 %v4550_v2, %v4551_v56 }
 0x325   : > { %v4553_v61 = vand.u32 4294901760, %v4552_v57 }
 0x327   : > { %17619 = vmatmul.mubr.f32.vlgmr.msra.gmra.mrb[6].mxu0 %v20567_v17  ;;  %17661 = vmatmul.mubr.f32.vlgmr.msra.gmra.mrb[6].mxu1 %v20567_v17 }
 0x328   : > { %18815 = vmatpush3.bf16.msra.mxu0 %v20241_v4  ;;  %18833 = vmatpush3.bf16.msra.mxu1 %v20243_v5 }
 0x329   : > { %17625 = vmatprep.mubr.msk.f32.mxu0 %vm19849_vm0, %v19850_v41  ;;  %17667 = vmatprep.mubr.msk.f32.mxu1 %vm19849_vm0, %v19850_v41 }
 0x32a   : > { %18816 = vmatprep.subr.bf16.mxu0 %v19848_v40  ;;  %18834 = vmatprep.subr.bf16.mxu1 %v19848_v40 }
 0x32f   : > { %17626 = vmatmul.mubr.f32.vlgmr.msra.gmra.mrb[6].mxu0 %v3447_v30  ;;  %17668 = vmatmul.mubr.f32.vlgmr.msra.gmra.mrb[6].mxu1 %v3447_v30  ;;  %v4475_v30 = vand.u32 4294901760, %v4470_v49 }
 0x330   : > { %18818 = vmatpush3.bf16.msk.msra.mxu0 %vm20217_vm7, %v19851_v58  ;;  %18836 = vmatpush3.bf16.msk.msra.mxu1 %vm20227_vm9, %v19851_v58 }
 0x331   : > { %17632 = vmatprep.mubr.msk.f32.mxu0 %vm19849_vm0, %v19850_v41  ;;  %17674 = vmatprep.mubr.msk.f32.mxu1 %vm19849_vm0, %v19850_v41  ;;  %v4557_v37 = vsub.f32 %v4470_v49, %v4475_v30  ;;  %v18844_v60 = vpack.c.bf16 %v4475_v30, %v4472_v35  ;;  %v6321_v49 = vstv %s16595_s5  ;;  %v6315_v30 = vadd.f32 %v6310_v48, %v6298_v43  ;;  %s16605_s5 = sld [smem:[#allocation2 + $0x3c]] }
 0x332   : > { %18819 = vmatprep.subr.bf16.mxu0 %v19848_v40  ;;  %18837 = vmatprep.subr.bf16.mxu1 %v19848_v40  ;;  %v6323_v35 = vmul.f32 %v20459_v32, %v6321_v49  ;;  %v6371_v48 = vmul.f32 %v20501_v18, %v6369_v34 }
 0x333   : > { %v4558_v53 = vand.u32 4294901760, %v4557_v37 }
 0x334   : > { %v6325_v57 = vadd.f32 %v6323_v35, %v6316_v50  ;;  %v8435_v35 = vstv %s20722_s21  ;;  %s20903_s21 = sld [smem:[#allocation2 + $0x55]] }
 0x335   : > { %v18856_v62 = vpack.c.bf16 %v4558_v53, %v4551_v56 }
 0x337   : > { %17633 = vmatmul.mubr.f32.vlgmr.msra.gmra.mrb[6].mxu0 %v3448_v52  ;;  %17675 = vmatmul.mubr.f32.vlgmr.msra.gmra.mrb[6].mxu1 %v3448_v52  ;;  %v4559_v52 = vsub.f32 %v4557_v37, %v4558_v53  ;;  %v8340_v53 = vstv %s16632_s7  ;;  %s16591_s7 = sld [smem:[#allocation5 + $0x2]] }
 0x338   : > { %18821 = vmatpush3.bf16.msra.mxu0 %v20245_v9  ;;  %18839 = vmatpush3.bf16.msra.mxu1 %v20247_v11 }
 0x339   : > { %17639 = vmatprep.mubr.msk.f32.mxu0 %vm19849_vm0, %v19850_v41  ;;  %17681 = vmatprep.mubr.msk.f32.mxu1 %vm19849_vm0, %v19850_v41  ;;  %v4560_v22 = vand.u32 4294901760, %v4559_v52 }
 0x33a   : > { %18822 = vmatprep.subr.bf16.mxu0 %v19848_v40  ;;  %18840 = vmatprep.subr.bf16.mxu1 %v19848_v40 }
 0x33b   : > { %v18847_v13 = vpack.c.bf16 %v4560_v22, %v4553_v61  ;;  %v6334_v61 = vpop.permute.xlu0 %6333 }
 0x33f   : > { %17640 = vmatmul.mubr.f32.vlgmr.msra.gmra.mrb[6].mxu0 %v20567_v17  ;;  %17682 = vmatmul.mubr.f32.vlgmr.msra.gmra.mrb[6].mxu1 %v20567_v17 }
 0x340   : > { %18824 = vmatpush3.bf16.msk.msra.mxu0 %vm20217_vm7, %v19851_v58  ;;  %18842 = vmatpush3.bf16.msk.msra.mxu1 %vm20227_vm9, %v19851_v58 }
 0x341   : > { %17646 = vmatprep.mubr.msk.f32.mxu0 %vm19849_vm0, %v19850_v41  ;;  %17688 = vmatprep.mubr.msk.f32.mxu1 %vm19849_vm0, %v19850_v41 }
 0x342   : > { %18843 = vmatprep.subr.bf16.mxu0 %v19848_v40  ;;  %18861 = vmatprep.subr.bf16.mxu1 %v19848_v40 }
 0x347   : > { %17647 = vmatmul.mubr.f32.vlgmr.msra.gmra.mrb[6].mxu0 %v20567_v17  ;;  %17689 = vmatmul.mubr.f32.vlgmr.msra.gmra.mrb[6].mxu1 %v20567_v17  ;;  %v18850_v17 = vpack.c.bf16 %v4557_v37, %v4550_v2  ;;  %v6322_v37 = vmul.f32 %v20463_v44, %v6321_v49  ;;  %v8316_v2 = vstv %s16630_s6  ;;  %v6370_v49 = vmul.f32 %v20505_v24, %v6369_v34  ;;  %s16607_s6 = sld [smem:[#allocation2 + $0x3e]] }
 0x348   : > { %18845 = vmatpush3.bf16.msra.mxu0 %v18844_v60  ;;  %18863 = vmatpush3.bf16.msra.mxu1 %v18844_v60  ;;  %v8318_v56 = vmul.f32 %v20447_v33, %v8316_v2  ;;  %v8317_v52 = vmul.f32 %v20451_v38, %v8316_v2 }
 0x349   : > { %17695 = vmatprep.mubr.msk.f32.mxu0 %vm19849_vm0, %v19850_v41  ;;  %17737 = vmatprep.mubr.msk.f32.mxu1 %vm19849_vm0, %v19850_v41  ;;  %v6324_v22 = vadd.f32 %v6322_v37, %v6315_v30 }
 0x34a   : > { %18846 = vmatprep.subr.bf16.mxu0 %v19848_v40  ;;  %18864 = vmatprep.subr.bf16.mxu1 %v19848_v40 }
 0x34b   : > { %17696 = vmatmul.mubr.f32.vlgmr.msra.gmra.mrb[8].mxu0 %v20155_v7  ;;  %17738 = vmatmul.mubr.f32.vlgmr.msra.gmra.mrb[8].mxu1 %v20157_v8  ;;  %v6339_v38 = vadd.f32 %v6334_v61, %v6324_v22 }
 0x34c   : > { %18848 = vmatpush3.bf16.msra.mxu0 %v18847_v13  ;;  %18866 = vmatpush3.bf16.msra.mxu1 %v18847_v13  ;;  %v6345_v13 = vstv %s16597_s8  ;;  %s16629_s8 = sld [smem:[#allocation2 + $0x40]] }
 0x34d   : > { %17702 = vmatprep.mubr.msk.f32.mxu0 %vm19849_vm0, %v19850_v41  ;;  %18849 = vmatprep.subr.bf16.mxu0 %v19848_v40 }
 0x34e   : > { %17744 = vmatprep.mubr.msk.f32.mxu1 %vm19849_vm0, %v19850_v41  ;;  %18867 = vmatprep.subr.bf16.mxu1 %v19848_v40 }
 0x34f   : > { %8323 = vrot.lane.b32.xlu1 %v8318_v56, %s19847_s4  ;;  %8321 = vrot.lane.b32.xlu0 %v8317_v52, %s19847_s4  ;;  %v6392_v52 = vstv %s20725_s26  ;;  %s20913_s26 = sld [smem:[#allocation2 + $0x57]] }
 0x350   : > { %v6394_v61 = vmul.f32 %v20516_v25, %v6392_v52 }
 0x353   : > { %17703 = vmatmul.mubr.msk.f32.vlgmr.msra.gmra.mrb[8].mxu0 %vm440_vm3, %v20129_v21  ;;  %17745 = vmatmul.mubr.msk.f32.vlgmr.msra.gmra.mrb[8].mxu1 %vm440_vm3, %v20132_v23 }
 0x354   : > { %18851 = vmatpush3.bf16.msra.mxu0 %v18850_v17  ;;  %18869 = vmatpush3.bf16.msra.mxu1 %v18850_v17  ;;  %v8342_v17 = vmul.f32 %v20459_v32, %v8340_v53  ;;  %v8388_v32 = vstv %s20705_s10  ;;  %s16666_s10 = sld [smem:[#allocation2 + $0x51]] }
 0x355   : > { %17709 = vmatprep.mubr.msk.f32.mxu0 %vm19849_vm0, %v19850_v41  ;;  %18852 = vmatprep.subr.bf16.mxu0 %v19848_v40  ;;  %v8390_v42 = vmul.f32 %v20501_v18, %v8388_v32  ;;  %v8437_v18 = vmul.f32 %v20532_v51, %v8435_v35 }
 0x356   : > { %17751 = vmatprep.mubr.msk.f32.mxu1 %vm19849_vm0, %v19850_v41  ;;  %18870 = vmatprep.subr.bf16.mxu1 %v19848_v40 }
 0x357   : > { %8347 = vrot.lane.b32.xlu1 %v8342_v17, %s19847_s4 }
 0x35b   : > { %17710 = vmatmul.mubr.f32.vlgmr.msra.gmra.mrb[8].mxu0 %v20140_v45  ;;  %17752 = vmatmul.mubr.f32.vlgmr.msra.gmra.mrb[8].mxu1 %v20142_v46 }
 0x35c   : > { %18854 = vmatpush3.bf16.msra.mxu0 %v18844_v60  ;;  %18872 = vmatpush3.bf16.msra.mxu1 %v18844_v60 }
 0x35d   : > { %17716 = vmatprep.mubr.msk.f32.mxu0 %vm19849_vm0, %v19850_v41  ;;  %18855 = vmatprep.subr.bf16.mxu0 %v19848_v40 }
 0x35e   : > { %17758 = vmatprep.mubr.msk.f32.mxu1 %vm19849_vm0, %v19850_v41  ;;  %18873 = vmatprep.subr.bf16.mxu1 %v19848_v40 }
 0x363   : > { %17717 = vmatmul.mubr.f32.vlgmr.msra.gmra.mrb[8].mxu0 %v20146_v54  ;;  %17759 = vmatmul.mubr.f32.vlgmr.msra.gmra.mrb[8].mxu1 %v20149_v55 }
 0x364   : > { %18857 = vmatpush3.bf16.msra.mxu0 %v18856_v62  ;;  %18875 = vmatpush3.bf16.msra.mxu1 %v18856_v62  ;;  %v8341_v62 = vmul.f32 %v20463_v44, %v8340_v53 }
 0x365   : > { %17723 = vmatprep.mubr.msk.f32.mxu0 %vm19849_vm0, %v19850_v41  ;;  %18858 = vmatprep.subr.bf16.mxu0 %v19848_v40 }
 0x366   : > { %17765 = vmatprep.mubr.msk.f32.mxu1 %vm19849_vm0, %v19850_v41  ;;  %18876 = vmatprep.subr.bf16.mxu1 %v19848_v40 }
 0x367   : > { %8345 = vrot.lane.b32.xlu0 %v8341_v62, %s19847_s4 }
 0x36b   : > { %17724 = vmatmul.mubr.msk.f32.vlgmr.msra.gmra.mrb[8].mxu0 %vm440_vm3, %v20129_v21  ;;  %17766 = vmatmul.mubr.msk.f32.vlgmr.msra.gmra.mrb[8].mxu1 %vm440_vm3, %v20132_v23 }
 0x36c   : > { %18860 = vmatpush3.bf16.msra.mxu0 %v18844_v60  ;;  %18878 = vmatpush3.bf16.msra.mxu1 %v18844_v60  ;;  %v6336_v60 = vpop.permute.xlu1 %6335 }
 0x36d   : > { %17730 = vmatprep.mubr.msk.f32.mxu0 %vm19849_vm0, %v19850_v41  ;;  %17772 = vmatprep.mubr.msk.f32.mxu1 %vm19849_vm0, %v19850_v41  ;;  %v6340_v33 = vadd.f32 %v6336_v60, %v6325_v57  ;;  %v8458_v57 = vstv %s16642_s28  ;;  %s20918_s28 = sld [smem:[#allocation2 + $0x46]] }
 0x36e   : > { %18879 = vmatprep.subr.bf16.mxu0 %v19848_v40  ;;  %18897 = vmatprep.subr.bf16.mxu1 %v19848_v40  ;;  %v8460_v17 = vmul.f32 %v20545_v59, %v8458_v57  ;;  %v8459_v62 = vmul.f32 %v20549_v20, %v8458_v57 }
 0x373   : > { %17731 = vmatmul.mubr.msk.f32.vlgmr.msra.gmra.mrb[8].mxu0 %vm440_vm3, %v20129_v21  ;;  %17773 = vmatmul.mubr.msk.f32.vlgmr.msra.gmra.mrb[8].mxu1 %vm440_vm3, %v20132_v23 }
 0x374   : > { %18881 = vmatpush3.bf16.msk.msra.mxu0 %vm20217_vm7, %v19851_v58  ;;  %18899 = vmatpush3.bf16.msk.msra.mxu1 %vm20227_vm9, %v19851_v58 }
 0x375   : > { %17779 = vmatprep.mubr.msk.f32.mxu0 %vm19849_vm0, %v19850_v41  ;;  %17821 = vmatprep.mubr.msk.f32.mxu1 %vm19849_vm0, %v19850_v41 }
 0x376   : > { %18882 = vmatprep.subr.bf16.mxu0 %v19848_v40  ;;  %18900 = vmatprep.subr.bf16.mxu1 %v19848_v40 }
 0x41a   : > { %v3824_v14 = vpop.f32.mrb[6].mxu0  ;;  %v4271_v12 = vpop.f32.mrb[6].mxu1 }
 0x41b   : > { %v4275_v16 = vmax.f32 %v3824_v14, %v4271_v12  ;;  %v17648_v19 = vpop.f32.mrb[7].mxu0  ;;  %v17690_v26 = vpop.f32.mrb[7].mxu1  ;;  %v8364_v14 = vstv %s16634_s9  ;;  %v6347_v12 = vmul.f32 %v20481_v6, %v6345_v13  ;;  %s16631_s9 = sld [smem:[#allocation2 + $0x42]] }
 0x41c   : > { %v8365_v19 = vmul.f32 %v20485_v3, %v8364_v14 }
 0x41d   : > { %v4278_v28 = vadd.f32 %v4277_v10, %v4275_v16  ;;  %v6346_v10 = vmul.f32 %v20485_v3, %v6345_v13  ;;  %v8366_v16 = vmul.f32 %v20481_v6, %v8364_v14  ;;  %v6349_v44 = vadd.f32 %v6347_v12, %v6340_v33 }
 0x41e   : > { %8369 = vrot.lane.b32.xlu0 %v8365_v19, %s19847_s4  ;;  %v8389_v6 = vmul.f32 %v20505_v24, %v8388_v32  ;;  %v8411_v3 = vstv %s16638_s19  ;;  %v8436_v24 = vmul.f32 %v20536_v1, %v8435_v35  ;;  %v6393_v13 = vmul.f32 %v20520_v15, %v6392_v52  ;;  %s20901_s19 = sld [smem:[#allocation2 + $0x44]] }
 0x41f   : > { %v4279_v29 = vmax.f32 %v4278_v28, 0.0  ;;  %v6348_v26 = vadd.f32 %v6346_v10, %v6339_v38  ;;  %v6360_v28 = vpop.permute.xlu1 %6359  ;;  %8371 = vrot.lane.b32.xlu1 %v8366_v16, %s19847_s4  ;;  %v8413_v50 = vmul.f32 %v20516_v25, %v8411_v3  ;;  %v8412_v30 = vmul.f32 %v20520_v15, %v8411_v3 }
 0x420   : > { %v6364_v43 = vadd.f32 %v6360_v28, %v6349_v44  ;;  %v8482_v38 = vstv %s20738_s29  ;;  %v6416_v15 = vstv %s20741_s27  ;;  %s20925_s29 = sld [smem:[#allocation2 + $0x59]]  ;;  %s20940_s27 = sld [smem:[#allocation2 + $0x5b]] }
 0x421   : > { %16556 = vst.msk [vmem:[%s20442_s23 + $0x8] sm:$0xff] %vm2268_vm10, %v4279_v29  ;;  %v6358_v29 = vpop.permute.xlu0 %6357  ;;  %v8483_v28 = vmul.f32 %v20564_v27, %v8482_v38  ;;  %v6418_v3 = vmul.f32 %v20532_v51, %v6416_v15 }
 0x422   : > { %v6363_v47 = vadd.f32 %v6358_v29, %v6348_v26  ;;  %8393 = vrot.lane.b32.xlu0 %v8389_v6, %s19847_s4  ;;  %v6373_v37 = vadd.f32 %v6371_v48, %v6364_v43  ;;  %v8484_v26 = vmul.f32 %v20560_v36, %v8482_v38 }
 0x423   : > { %8395 = vrot.lane.b32.xlu1 %v8390_v42, %s19847_s4  ;;  %v6384_v53 = vpop.permute.xlu1 %6383 }
 0x424   : > { %v6372_v2 = vadd.f32 %v6370_v49, %v6363_v47  ;;  %v6388_v22 = vadd.f32 %v6384_v53, %v6373_v37  ;;  %v6417_v47 = vmul.f32 %v20536_v1, %v6416_v15  ;;  %v6439_v37 = vstv %s16605_s5  ;;  %s20943_s5 = sld [smem:[#allocation2 + $0x48]] }
 0x425   : > { %v6382_v56 = vpop.permute.xlu0 %6381  ;;  %v6441_v51 = vmul.f32 %v20545_v59, %v6439_v37  ;;  %v6440_v52 = vmul.f32 %v20549_v20, %v6439_v37  ;;  %v20894_v37 = vld [vmem:[%s19973_s30 + $0x8] sm:$0xff] }
 0x426   : > { %8416 = vrot.lane.b32.xlu0 %v8412_v30, %s19847_s4  ;;  %v6387_v60 = vadd.f32 %v6382_v56, %v6372_v2  ;;  %v6396_v19 = vadd.f32 %v6394_v61, %v6388_v22  ;;  %v6463_v22 = vstv %s16607_s6  ;;  %s20956_s6 = sld [smem:[#allocation2 + $0x5d]] }
 0x427   : > { %8418 = vrot.lane.b32.xlu1 %v8413_v50, %s19847_s4  ;;  %v6407_v44 = vpop.permute.xlu1 %6406  ;;  %v6465_v61 = vmul.f32 %v20560_v36, %v6463_v22 }
 0x428   : > { %v6395_v32 = vadd.f32 %v6393_v13, %v6387_v60  ;;  %v6411_v6 = vadd.f32 %v6407_v44, %v6396_v19  ;;  %v6464_v13 = vmul.f32 %v20564_v27, %v6463_v22  ;;  %v20910_v22 = vld [vmem:[%s19973_s30 + $0x1] sm:$0xff] }
 0x429   : > { %v6405_v34 = vpop.permute.xlu0 %6404 }
 0x42a   : > { %8440 = vrot.lane.b32.xlu0 %v8436_v24, %s19847_s4  ;;  %v6410_v43 = vadd.f32 %v6405_v34, %v6395_v32  ;;  %v6420_v50 = vadd.f32 %v6418_v3, %v6411_v6 }
 0x42b   : > { %8442 = vrot.lane.b32.xlu1 %v8437_v18, %s19847_s4  ;;  %v6431_v30 = vpop.permute.xlu1 %6430 }
 0x42c   : > { %v6419_v35 = vadd.f32 %v6417_v47, %v6410_v43  ;;  %v6435_v56 = vadd.f32 %v6431_v30, %v6420_v50  ;;  %v6289_v43 = vstv %s16591_s7  ;;  %s20971_s7 = sld [smem:[#allocation2 + $0x5f]] }
 0x42d   : > { %v6429_v53 = vpop.permute.xlu0 %6428 }
 0x42e   : > { %8463 = vrot.lane.b32.xlu0 %v8459_v62, %s19847_s4  ;;  %v6434_v1 = vadd.f32 %v6429_v53, %v6419_v35  ;;  %v6443_v18 = vadd.f32 %v6441_v51, %v6435_v56  ;;  %v8309_v35 = vstv %s16629_s8  ;;  %v20898_v53 = vld [vmem:[%s19973_s30] sm:$0xff]  ;;  %s20974_s8 = sld [smem:[#allocation2 + $0x4a]] }
 0x42f   : > { %8465 = vrot.lane.b32.xlu1 %v8460_v17, %s19847_s4  ;;  %v6454_v24 = vpop.permute.xlu1 %6453  ;;  %v8310_v56 = vmul.f32 %v20898_v53, %v8309_v35 }
 0x430   : > { %v6442_v59 = vadd.f32 %v6440_v52, %v6434_v1  ;;  %v6458_v20 = vadd.f32 %v6454_v24, %v6443_v18  ;;  %v8333_v52 = vstv %s16631_s9  ;;  %s21002_s9 = sld [smem:[#allocation2 + $0x4c]] }
 0x431   : > { %v6452_v57 = vpop.permute.xlu0 %6451 }
 0x432   : > { %8487 = vrot.lane.b32.xlu0 %v8483_v28, %s19847_s4  ;;  %v6457_v60 = vadd.f32 %v6452_v57, %v6442_v59  ;;  %v6467_v17 = vadd.f32 %v6465_v61, %v6458_v20  ;;  %v20906_v59 = vld [vmem:[%s19973_s30 + $0x9] sm:$0xff]  ;;  %v8334_v20 = vmul.f32 %v20910_v22, %v8333_v52  ;;  %v10352_v61 = vstv %s16668_s11  ;;  %s16627_s11 = sld [smem:[#allocation5 + $0x3]] }
 0x433   : > { %8489 = vrot.lane.b32.xlu1 %v8484_v26, %s19847_s4  ;;  %v8335_v57 = vmul.f32 %v20906_v59, %v8333_v52 }
 0x434   : > { %v6466_v62 = vadd.f32 %v6464_v13, %v6457_v60  ;;  %v10328_v60 = vstv %s16666_s10  ;;  %s16643_s10 = sld [smem:[#allocation2 + $0x4e]] }
 0x435   : > { %v10330_v13 = vmul.f32 %v20894_v37, %v10328_v60 }
 0x437   : > { %10335 = vrot.lane.b32.xlu1 %v10330_v13, %s19847_s4 }
 0x446   : > { %v4926_v14 = vpop.f32.mrb[8].mxu0  ;;  %v5385_v33 = vpop.f32.mrb[8].mxu1 }
 0x447   : > { %v5389_v12 = vmax.f32 %v4926_v14, %v5385_v33  ;;  %v17732_v10 = vpop.f32.mrb[9].mxu0  ;;  %v17774_v16 = vpop.f32.mrb[9].mxu1 }
 0x448   : > { %v6478_v14 = vpop.permute.xlu1 %6477  ;;  %v6476_v33 = vpop.permute.xlu0 %6475 }
 0x449   : > { %v5391_v25 = vsel %vm440_vm3, %v5389_v12, 0  ;;  %v6482_v36 = vadd.f32 %v6478_v14, %v6467_v17  ;;  %v6481_v27 = vadd.f32 %v6476_v33, %v6466_v62  ;;  %v10329_v17 = vmul.f32 %v20898_v53, %v10328_v60 }
 0x44a   : > { %v20760_v29 = vand.u32 4294901760, %v5391_v25 }
 0x44b   : > { %v6487_v38 = vand.u32 4294901760, %v6482_v36  ;;  %v6484_v12 = vand.u32 4294901760, %v6481_v27  ;;  %10333 = vrot.lane.b32.xlu0 %v10329_v17, %s19847_s4  ;;  %v8404_v17 = vstv %s20943_s5  ;;  %s21152_s5 = sld [smem:[#allocation2 + $0x67]] }
 0x44c   : > { %v5459_v42 = vsub.f32 %v5391_v25, %v20760_v29  ;;  %v8324_v51 = vpop.permute.xlu1 %8323  ;;  %v8322_v1 = vpop.permute.xlu0 %8321 }
 0x44d   : > { %v6569_v10 = vsub.f32 %v6482_v36, %v6487_v38  ;;  %v6562_v16 = vsub.f32 %v6481_v27, %v6484_v12  ;;  %v18916_v26 = vpack.c.bf16 %v6487_v38, %v6484_v12  ;;  %v8327_v24 = vadd.f32 %v8322_v1, %v8310_v56  ;;  %v20963_v1 = vld [vmem:[%s19973_s30 + $0x38] sm:$0xff] }
 0x44e   : > { %v5460_v48 = vand.u32 4294901760, %v5459_v42  ;;  %v8357_v27 = vstv %s20901_s19  ;;  %v10354_v38 = vmul.f32 %v20906_v59, %v10352_v61  ;;  %v10353_v12 = vmul.f32 %v20910_v22, %v10352_v61  ;;  %s16665_s19 = sld [smem:[#allocation2 + $0x50]] }
 0x44f   : > { %v6570_v19 = vand.u32 4294901760, %v6569_v10  ;;  %v6563_v32 = vand.u32 4294901760, %v6562_v16  ;;  %v8336_v14 = vadd.f32 %v8334_v20, %v8327_v24 }
 0x450   : > { %v5461_v49 = vsub.f32 %v5459_v42, %v5460_v48  ;;  %v8348_v33 = vpop.permute.xlu1 %8347  ;;  %v8346_v36 = vpop.permute.xlu0 %8345  ;;  %10359 = vrot.lane.b32.xlu1 %v10354_v38, %s19847_s4  ;;  %10357 = vrot.lane.b32.xlu0 %v10353_v12, %s19847_s4 }
 0x451   : > { %v6571_v25 = vsub.f32 %v6569_v10, %v6570_v19  ;;  %v6564_v44 = vsub.f32 %v6562_v16, %v6563_v32 }
 0x452   : > { %v5462_v2 = vand.u32 4294901760, %v5461_v49 }
 0x453   : > { %v6572_v15 = vand.u32 4294901760, %v6571_v25  ;;  %v6565_v28 = vand.u32 4294901760, %v6564_v44  ;;  %v20932_v44 = vld [vmem:[%s19973_s30 + $0x18] sm:$0xff] }
 0x454   : > { %17780 = vmatmul.mubr.f32.vlgmr.msra.gmra.mrb[10].mxu0 %v5462_v2  ;;  %17822 = vmatmul.mubr.f32.vlgmr.msra.gmra.mrb[10].mxu1 %v5462_v2  ;;  %v8311_v2 = vmul.f32 %v20894_v37, %v8309_v35 }
 0x455   : > { %18884 = vmatpush3.bf16.msra.mxu0 %v20237_v63  ;;  %18902 = vmatpush3.bf16.msra.mxu1 %v20239_v0  ;;  %v18919_v34 = vpack.c.bf16 %v6572_v15, %v6565_v28  ;;  %v8358_v15 = vmul.f32 %v20932_v44, %v8357_v27 }
 0x456   : > { %17786 = vmatprep.mubr.msk.f32.mxu0 %vm19849_vm0, %v19850_v41  ;;  %17828 = vmatprep.mubr.msk.f32.mxu1 %vm19849_vm0, %v19850_v41  ;;  %v8328_v18 = vadd.f32 %v8324_v51, %v8311_v2 }
 0x457   : > { %18885 = vmatprep.subr.bf16.mxu0 %v19848_v40  ;;  %18903 = vmatprep.subr.bf16.mxu1 %v19848_v40 }
 0x458   : > { %v8337_v62 = vadd.f32 %v8335_v57, %v8328_v18  ;;  %v20967_v18 = vld [vmem:[%s19973_s30 + $0x30] sm:$0xff]  ;;  %v10447_v57 = vstv %s20940_s27  ;;  %s16706_s27 = sld [smem:[#allocation2 + $0x65]] }
 0x45c   : > { %17787 = vmatmul.mubr.f32.vlgmr.msra.gmra.mrb[10].mxu0 %v20760_v29  ;;  %17829 = vmatmul.mubr.f32.vlgmr.msra.gmra.mrb[10].mxu1 %v20760_v29 }
 0x45d   : > { %18887 = vmatpush3.bf16.msra.mxu0 %v20241_v4  ;;  %18905 = vmatpush3.bf16.msra.mxu1 %v20243_v5 }
 0x45e   : > { %17793 = vmatprep.mubr.msk.f32.mxu0 %vm19849_vm0, %v19850_v41  ;;  %17835 = vmatprep.mubr.msk.f32.mxu1 %vm19849_vm0, %v19850_v41 }
 0x45f   : > { %18888 = vmatprep.subr.bf16.mxu0 %v19848_v40  ;;  %18906 = vmatprep.subr.bf16.mxu1 %v19848_v40 }
 0x464   : > { %17794 = vmatmul.mubr.f32.vlgmr.msra.gmra.mrb[10].mxu0 %v5459_v42  ;;  %17836 = vmatmul.mubr.f32.vlgmr.msra.gmra.mrb[10].mxu1 %v5459_v42  ;;  %v18928_v42 = vpack.c.bf16 %v6570_v19, %v6563_v32  ;;  %v8351_v19 = vadd.f32 %v8346_v36, %v8336_v14  ;;  %v20928_v32 = vld [vmem:[%s19973_s30 + $0x20] sm:$0xff] }
 0x465   : > { %18890 = vmatpush3.bf16.msk.msra.mxu0 %vm20217_vm7, %v19851_v58  ;;  %18908 = vmatpush3.bf16.msk.msra.mxu1 %vm20227_vm9, %v19851_v58  ;;  %v8359_v25 = vmul.f32 %v20928_v32, %v8357_v27  ;;  %v10470_v27 = vstv %s20956_s6  ;;  %s21156_s6 = sld [smem:[#allocation2 + $0x56]] }
 0x466   : > { %17800 = vmatprep.mubr.msk.f32.mxu0 %vm19849_vm0, %v19850_v41  ;;  %17842 = vmatprep.mubr.msk.f32.mxu1 %vm19849_vm0, %v19850_v41 }
 0x467   : > { %18891 = vmatprep.subr.bf16.mxu0 %v19848_v40  ;;  %18909 = vmatprep.subr.bf16.mxu1 %v19848_v40 }
 0x46c   : > { %17801 = vmatmul.mubr.f32.vlgmr.msra.gmra.mrb[10].mxu0 %v5460_v48  ;;  %17843 = vmatmul.mubr.f32.vlgmr.msra.gmra.mrb[10].mxu1 %v5460_v48 }
 0x46d   : > { %18893 = vmatpush3.bf16.msra.mxu0 %v20245_v9  ;;  %18911 = vmatpush3.bf16.msra.mxu1 %v20247_v11 }
 0x46e   : > { %17807 = vmatprep.mubr.msk.f32.mxu0 %vm19849_vm0, %v19850_v41  ;;  %17849 = vmatprep.mubr.msk.f32.mxu1 %vm19849_vm0, %v19850_v41 }
 0x46f   : > { %18894 = vmatprep.subr.bf16.mxu0 %v19848_v40  ;;  %18912 = vmatprep.subr.bf16.mxu1 %v19848_v40 }
 0x474   : > { %17808 = vmatmul.mubr.f32.vlgmr.msra.gmra.mrb[10].mxu0 %v20760_v29  ;;  %17850 = vmatmul.mubr.f32.vlgmr.msra.gmra.mrb[10].mxu1 %v20760_v29 }
 0x475   : > { %18896 = vmatpush3.bf16.msk.msra.mxu0 %vm20217_vm7, %v19851_v58  ;;  %18914 = vmatpush3.bf16.msk.msra.mxu1 %vm20227_vm9, %v19851_v58 }
 0x476   : > { %17814 = vmatprep.mubr.msk.f32.mxu0 %vm19849_vm0, %v19850_v41  ;;  %17856 = vmatprep.mubr.msk.f32.mxu1 %vm19849_vm0, %v19850_v41 }
 0x477   : > { %18915 = vmatprep.subr.bf16.mxu0 %v19848_v40  ;;  %18933 = vmatprep.subr.bf16.mxu1 %v19848_v40 }
 0x47c   : > { %17815 = vmatmul.mubr.f32.vlgmr.msra.gmra.mrb[10].mxu0 %v20760_v29  ;;  %17857 = vmatmul.mubr.f32.vlgmr.msra.gmra.mrb[10].mxu1 %v20760_v29  ;;  %v18922_v29 = vpack.c.bf16 %v6569_v10, %v6562_v16  ;;  %v10376_v10 = vstv %s20903_s21  ;;  %v8352_v16 = vadd.f32 %v8348_v33, %v8337_v62  ;;  %v20979_v62 = vld [vmem:[%s19973_s30 + $0x39] sm:$0xff]  ;;  %v20983_v33 = vld [vmem:[%s19973_s30 + $0x31] sm:$0xff]  ;;  %s16667_s21 = sld [smem:[#allocation2 + $0x52]] }
 0x47d   : > { %18917 = vmatpush3.bf16.msra.mxu0 %v18916_v26  ;;  %18935 = vmatpush3.bf16.msra.mxu1 %v18916_v26  ;;  %v10377_v28 = vmul.f32 %v20932_v44, %v10376_v10  ;;  %v10449_v14 = vmul.f32 %v20979_v62, %v10447_v57  ;;  %v10448_v36 = vmul.f32 %v20983_v33, %v10447_v57 }
 0x47e   : > { %17863 = vmatprep.mubr.msk.f32.mxu0 %vm19849_vm0, %v19850_v41  ;;  %17905 = vmatprep.mubr.msk.f32.mxu1 %vm19849_vm0, %v19850_v41 }
 0x47f   : > { %18918 = vmatprep.subr.bf16.mxu0 %v19848_v40  ;;  %18936 = vmatprep.subr.bf16.mxu1 %v19848_v40 }
 0x480   : > { %17864 = vmatmul.mubr.f32.vlgmr.msra.gmra.mrb[12].mxu0 %v20155_v7  ;;  %17906 = vmatmul.mubr.f32.vlgmr.msra.gmra.mrb[12].mxu1 %v20157_v8 }
 0x481   : > { %18920 = vmatpush3.bf16.msra.mxu0 %v18919_v34  ;;  %18938 = vmatpush3.bf16.msra.mxu1 %v18919_v34  ;;  %v10400_v34 = vstv %s20913_s26  ;;  %s16702_s26 = sld [smem:[#allocation2 + $0x61]] }
 0x482   : > { %17870 = vmatprep.mubr.msk.f32.mxu0 %vm19849_vm0, %v19850_v41  ;;  %18921 = vmatprep.subr.bf16.mxu0 %v19848_v40 }
 0x483   : > { %17912 = vmatprep.mubr.msk.f32.mxu1 %vm19849_vm0, %v19850_v41  ;;  %18939 = vmatprep.subr.bf16.mxu1 %v19848_v40 }
 0x484   : > { %10381 = vrot.lane.b32.xlu0 %v10377_v28, %s19847_s4 }
 0x488   : > { %17871 = vmatmul.mubr.msk.f32.vlgmr.msra.gmra.mrb[12].mxu0 %vm440_vm3, %v20129_v21  ;;  %17913 = vmatmul.mubr.msk.f32.vlgmr.msra.gmra.mrb[12].mxu1 %vm440_vm3, %v20132_v23 }
 0x489   : > { %18923 = vmatpush3.bf16.msra.mxu0 %v18922_v29  ;;  %18941 = vmatpush3.bf16.msra.mxu1 %v18922_v29  ;;  %v8361_v29 = vadd.f32 %v8359_v25, %v8352_v16  ;;  %v8405_v16 = vmul.f32 %v20967_v18, %v8404_v17 }
 0x48a   : > { %17877 = vmatprep.mubr.msk.f32.mxu0 %vm19849_vm0, %v19850_v41  ;;  %18924 = vmatprep.subr.bf16.mxu0 %v19848_v40 }
 0x48b   : > { %17919 = vmatprep.mubr.msk.f32.mxu1 %vm19849_vm0, %v19850_v41  ;;  %18942 = vmatprep.subr.bf16.mxu1 %v19848_v40 }
 0x490   : > { %17878 = vmatmul.mubr.f32.vlgmr.msra.gmra.mrb[12].mxu0 %v20140_v45  ;;  %17920 = vmatmul.mubr.f32.vlgmr.msra.gmra.mrb[12].mxu1 %v20142_v46 }
 0x491   : > { %18926 = vmatpush3.bf16.msra.mxu0 %v18916_v26  ;;  %18944 = vmatpush3.bf16.msra.mxu1 %v18916_v26 }
 0x492   : > { %17884 = vmatprep.mubr.msk.f32.mxu0 %vm19849_vm0, %v19850_v41  ;;  %18927 = vmatprep.subr.bf16.mxu0 %v19848_v40 }
 0x493   : > { %17926 = vmatprep.mubr.msk.f32.mxu1 %vm19849_vm0, %v19850_v41  ;;  %18945 = vmatprep.subr.bf16.mxu1 %v19848_v40 }
 0x498   : > { %17885 = vmatmul.mubr.f32.vlgmr.msra.gmra.mrb[12].mxu0 %v20146_v54  ;;  %17927 = vmatmul.mubr.f32.vlgmr.msra.gmra.mrb[12].mxu1 %v20149_v55 }
 0x499   : > { %18929 = vmatpush3.bf16.msra.mxu0 %v18928_v42  ;;  %18947 = vmatpush3.bf16.msra.mxu1 %v18928_v42  ;;  %v8360_v42 = vadd.f32 %v8358_v15, %v8351_v19  ;;  %v20992_v19 = vld [vmem:[%s19973_s30 + $0x50] sm:$0xff]  ;;  %v20996_v15 = vld [vmem:[%s19973_s30 + $0x48] sm:$0xff] }
 0x49a   : > { %17891 = vmatprep.mubr.msk.f32.mxu0 %vm19849_vm0, %v19850_v41  ;;  %18930 = vmatprep.subr.bf16.mxu0 %v19848_v40  ;;  %v10472_v25 = vmul.f32 %v20992_v19, %v10470_v27 }
 0x49b   : > { %17933 = vmatprep.mubr.msk.f32.mxu1 %vm19849_vm0, %v19850_v41  ;;  %18948 = vmatprep.subr.bf16.mxu1 %v19848_v40 }
 0x4a0   : > { %17892 = vmatmul.mubr.msk.f32.vlgmr.msra.gmra.mrb[12].mxu0 %vm440_vm3, %v20129_v21  ;;  %17934 = vmatmul.mubr.msk.f32.vlgmr.msra.gmra.mrb[12].mxu1 %vm440_vm3, %v20132_v23 }
 0x4a1   : > { %18932 = vmatpush3.bf16.msra.mxu0 %v18916_v26  ;;  %18950 = vmatpush3.bf16.msra.mxu1 %v18916_v26  ;;  %v10378_v26 = vmul.f32 %v20928_v32, %v10376_v10  ;;  %v8406_v10 = vmul.f32 %v20963_v1, %v8404_v17 }
 0x4a2   : > { %17898 = vmatprep.mubr.msk.f32.mxu0 %vm19849_vm0, %v19850_v41  ;;  %17940 = vmatprep.mubr.msk.f32.mxu1 %vm19849_vm0, %v19850_v41 }
 0x4a3   : > { %18951 = vmatprep.subr.bf16.mxu0 %v19848_v40  ;;  %18969 = vmatprep.subr.bf16.mxu1 %v19848_v40 }
 0x4a4   : > { %10383 = vrot.lane.b32.xlu1 %v10378_v26, %s19847_s4  ;;  %v10471_v26 = vmul.f32 %v20996_v15, %v10470_v27 }
 0x4a8   : > { %17899 = vmatmul.mubr.msk.f32.vlgmr.msra.gmra.mrb[12].mxu0 %vm440_vm3, %v20129_v21  ;;  %17941 = vmatmul.mubr.msk.f32.vlgmr.msra.gmra.mrb[12].mxu1 %vm440_vm3, %v20132_v23 }
 0x4a9   : > { %18953 = vmatpush3.bf16.msk.msra.mxu0 %vm20217_vm7, %v19851_v58  ;;  %18971 = vmatpush3.bf16.msk.msra.mxu1 %vm20227_vm9, %v19851_v58 }
 0x4aa   : > { %17947 = vmatprep.mubr.msk.f32.mxu0 %vm19849_vm0, %v19850_v41  ;;  %17989 = vmatprep.mubr.msk.f32.mxu1 %vm19849_vm0, %v19850_v41 }
 0x4ab   : > { %18954 = vmatprep.subr.bf16.mxu0 %v19848_v40  ;;  %18972 = vmatprep.subr.bf16.mxu1 %v19848_v40 }
 0x54f   : > { %v5836_v6 = vpop.f32.mrb[10].mxu0  ;;  %v6283_v3 = vpop.f32.mrb[10].mxu1 }
 0x550   : > { %v6287_v47 = vmax.f32 %v5836_v6, %v6283_v3  ;;  %v17816_v48 = vpop.f32.mrb[11].mxu0  ;;  %v17858_v49 = vpop.f32.mrb[11].mxu1 }
 0x551   : > { %v8372_v6 = vpop.permute.xlu1 %8371  ;;  %v8370_v3 = vpop.permute.xlu0 %8369  ;;  %v20952_v49 = vld [vmem:[%s19973_s30 + $0x19] sm:$0xff] }
 0x552   : > { %v6290_v50 = vadd.f32 %v6289_v43, %v6287_v47  ;;  %v8381_v43 = vstv %s20918_s28  ;;  %v20948_v47 = vld [vmem:[%s19973_s30 + $0x21] sm:$0xff]  ;;  %v8376_v35 = vadd.f32 %v8372_v6, %v8361_v29  ;;  %v8375_v2 = vadd.f32 %v8370_v3, %v8360_v42  ;;  %s16704_s28 = sld [smem:[#allocation2 + $0x63]] }
 0x553   : > { %v10402_v48 = vmul.f32 %v20948_v47, %v10400_v34  ;;  %v8383_v56 = vmul.f32 %v20948_v47, %v8381_v43  ;;  %v8382_v51 = vmul.f32 %v20952_v49, %v8381_v43  ;;  %v10494_v29 = vstv %s20971_s7  ;;  %s16710_s7 = sld [smem:[#allocation2 + $0x69]] }
 0x554   : > { %v6291_v30 = vmax.f32 %v6290_v50, 0.0  ;;  %v10401_v50 = vmul.f32 %v20952_v49, %v10400_v34 }
 0x555   : > { %10407 = vrot.lane.b32.xlu1 %v10402_v48, %s19847_s4  ;;  %v8385_v20 = vadd.f32 %v8383_v56, %v8376_v35  ;;  %v8384_v60 = vadd.f32 %v8382_v51, %v8375_v2  ;;  %v8396_v61 = vpop.permute.xlu1 %8395  ;;  %v8394_v13 = vpop.permute.xlu0 %8393  ;;  %v8428_v35 = vstv %s20974_s8  ;;  %v21007_v2 = vld [vmem:[%s19973_s30 + $0x51] sm:$0xff]  ;;  %v21011_v51 = vld [vmem:[%s19973_s30 + $0x49] sm:$0xff]  ;;  %s21169_s8 = sld [smem:[#allocation2 + $0x6b]] }
 0x556   : > { %16592 = vst.msk [vmem:[%s20442_s23 + $0x10] sm:$0xff] %vm2268_vm10, %v6291_v30  ;;  %v10423_v30 = vstv %s20925_s29  ;;  %10405 = vrot.lane.b32.xlu0 %v10401_v50, %s19847_s4  ;;  %v10496_v56 = vmul.f32 %v21007_v2, %v10494_v29  ;;  %v8429_v17 = vmul.f32 %v20983_v33, %v8428_v35  ;;  %s16669_s29 = sld [smem:[#allocation2 + $0x54]] }
 0x557   : > { %v10425_v52 = vmul.f32 %v20963_v1, %v10423_v30  ;;  %v10424_v24 = vmul.f32 %v20967_v18, %v10423_v30  ;;  %v8400_v38 = vadd.f32 %v8396_v61, %v8385_v20  ;;  %v8399_v12 = vadd.f32 %v8394_v13, %v8384_v60 }
 0x558   : > { %v8430_v61 = vmul.f32 %v20979_v62, %v8428_v35 }
 0x559   : > { %10430 = vrot.lane.b32.xlu1 %v10425_v52, %s19847_s4  ;;  %v8408_v43 = vadd.f32 %v8406_v10, %v8400_v38  ;;  %v8407_v48 = vadd.f32 %v8405_v16, %v8399_v12  ;;  %v8419_v30 = vpop.permute.xlu1 %8418  ;;  %v10495_v52 = vmul.f32 %v21011_v51, %v10494_v29  ;;  %v8417_v57 = vpop.permute.xlu0 %8416  ;;  %v8451_v10 = vstv %s21002_s9  ;;  %s21172_s9 = sld [smem:[#allocation2 + $0x58]] }
 0x55a   : > { %10428 = vrot.lane.b32.xlu0 %v10424_v24, %s19847_s4  ;;  %v8452_v29 = vmul.f32 %v20996_v15, %v8451_v10 }
 0x55b   : > { %v8423_v60 = vadd.f32 %v8419_v30, %v8408_v43  ;;  %v8422_v13 = vadd.f32 %v8417_v57, %v8407_v48  ;;  %v8475_v48 = vstv %s16643_s10  ;;  %s16714_s10 = sld [smem:[#allocation2 + $0x6d]] }
 0x55c   : > { %v8477_v35 = vmul.f32 %v21007_v2, %v8475_v48 }
 0x55d   : > { %10454 = vrot.lane.b32.xlu1 %v10449_v14, %s19847_s4  ;;  %v8432_v27 = vadd.f32 %v8430_v61, %v8423_v60  ;;  %v8443_v38 = vpop.permute.xlu1 %8442  ;;  %v8431_v12 = vadd.f32 %v8429_v17, %v8422_v13 }
 0x55e   : > { %10452 = vrot.lane.b32.xlu0 %v10448_v36, %s19847_s4 }
 0x561   : > { %10477 = vrot.lane.b32.xlu1 %v10472_v25, %s19847_s4  ;;  %v8441_v25 = vpop.permute.xlu0 %8440 }
 0x562   : > { %10475 = vrot.lane.b32.xlu0 %v10471_v26, %s19847_s4  ;;  %v8447_v26 = vadd.f32 %v8443_v38, %v8432_v27 }
 0x565   : > { %10501 = vrot.lane.b32.xlu1 %v10496_v56, %s19847_s4  ;;  %v8464_v43 = vpop.permute.xlu0 %8463  ;;  %v8476_v56 = vmul.f32 %v21011_v51, %v8475_v48 }
 0x566   : > { %10499 = vrot.lane.b32.xlu0 %v10495_v52, %s19847_s4 }
 0x569   : > { %v8488_v61 = vpop.permute.xlu0 %8487 }
 0x57b   : > { %v6938_v28 = vpop.f32.mrb[12].mxu0  ;;  %v7397_v34 = vpop.f32.mrb[12].mxu1 }
 0x57c   : > { %v7401_v42 = vmax.f32 %v6938_v28, %v7397_v34  ;;  %v17900_v6 = vpop.f32.mrb[13].mxu0  ;;  %v17942_v3 = vpop.f32.mrb[13].mxu1  ;;  %v8453_v28 = vmul.f32 %v20992_v19, %v8451_v10  ;;  %v8446_v34 = vadd.f32 %v8441_v25, %v8431_v12 }
 0x57d   : > { %v8466_v6 = vpop.permute.xlu1 %8465 }
 0x57e   : > { %v7403_v50 = vsel %vm440_vm3, %v7401_v42, 0  ;;  %v8455_v42 = vadd.f32 %v8453_v28, %v8447_v26  ;;  %v8454_v3 = vadd.f32 %v8452_v29, %v8446_v34 }
 0x57f   : > { %v21014_v24 = vand.u32 4294901760, %v7403_v50 }
 0x580   : > { %v8469_v30 = vadd.f32 %v8464_v43, %v8454_v3  ;;  %v8301_v3 = vstv %s16627_s11  ;;  %s21185_s11 = sld [smem:[#allocation2 + $0x6f]] }
 0x581   : > { %v7471_v20 = vsub.f32 %v7403_v50, %v21014_v24  ;;  %v8470_v50 = vadd.f32 %v8466_v6, %v8455_v42  ;;  %v8490_v60 = vpop.permute.xlu1 %8489 }
 0x582   : > { %v8478_v57 = vadd.f32 %v8476_v56, %v8469_v30  ;;  %v10321_v56 = vstv %s16665_s19  ;;  %s21188_s19 = sld [smem:[#allocation2 + $0x5a]] }
 0x583   : > { %v7472_v14 = vand.u32 4294901760, %v7471_v20  ;;  %v8479_v52 = vadd.f32 %v8477_v35, %v8470_v50 }
 0x584   : > { %v8493_v17 = vadd.f32 %v8488_v61, %v8478_v57  ;;  %v10322_v57 = vmul.f32 %v20898_v53, %v10321_v56  ;;  %v10334_v61 = vpop.permute.xlu0 %10333 }
 0x585   : > { %v7473_v36 = vsub.f32 %v7471_v20, %v7472_v14  ;;  %v8494_v13 = vadd.f32 %v8490_v60, %v8479_v52  ;;  %v10323_v52 = vmul.f32 %v20894_v37, %v10321_v56  ;;  %v10336_v60 = vpop.permute.xlu1 %10335  ;;  %v10393_v56 = vstv %s21156_s6  ;;  %s16740_s6 = sld [smem:[#allocation2 + $0x73]] }
 0x587   : > { %v7474_v16 = vand.u32 4294901760, %v7473_v36  ;;  %v8496_v36 = vand.u32 4294901760, %v8493_v17 }
 0x589   : > { %17948 = vmatmul.mubr.f32.vlgmr.msra.gmra.mrb[14].mxu0 %v7474_v16  ;;  %17990 = vmatmul.mubr.f32.vlgmr.msra.gmra.mrb[14].mxu1 %v7474_v16  ;;  %v8574_v38 = vsub.f32 %v8493_v17, %v8496_v36  ;;  %v10340_v17 = vadd.f32 %v10336_v60, %v10323_v52 }
 0x58a   : > { %18956 = vmatpush3.bf16.msra.mxu0 %v20237_v63  ;;  %18974 = vmatpush3.bf16.msra.mxu1 %v20239_v0 }
 0x58b   : > { %17954 = vmatprep.mubr.msk.f32.mxu0 %vm19849_vm0, %v19850_v41  ;;  %17996 = vmatprep.mubr.msk.f32.mxu1 %vm19849_vm0, %v19850_v41  ;;  %v8575_v10 = vand.u32 4294901760, %v8574_v38 }
 0x58c   : > { %18957 = vmatprep.subr.bf16.mxu0 %v19848_v40  ;;  %18975 = vmatprep.subr.bf16.mxu1 %v19848_v40 }
 0x58d   : > { %v8576_v16 = vsub.f32 %v8574_v38, %v8575_v10 }
 0x58f   : > { %v8577_v28 = vand.u32 4294901760, %v8576_v16 }
 0x591   : > { %17955 = vmatmul.mubr.f32.vlgmr.msra.gmra.mrb[14].mxu0 %v21014_v24  ;;  %17997 = vmatmul.mubr.f32.vlgmr.msra.gmra.mrb[14].mxu1 %v21014_v24 }
 0x592   : > { %18959 = vmatpush3.bf16.msra.mxu0 %v20241_v4  ;;  %18977 = vmatpush3.bf16.msra.mxu1 %v20243_v5 }
 0x593   : > { %17961 = vmatprep.mubr.msk.f32.mxu0 %vm19849_vm0, %v19850_v41  ;;  %18003 = vmatprep.mubr.msk.f32.mxu1 %vm19849_vm0, %v19850_v41 }
 0x594   : > { %18960 = vmatprep.subr.bf16.mxu0 %v19848_v40  ;;  %18978 = vmatprep.subr.bf16.mxu1 %v19848_v40 }
 0x599   : > { %17962 = vmatmul.mubr.f32.vlgmr.msra.gmra.mrb[14].mxu0 %v7471_v20  ;;  %18004 = vmatmul.mubr.f32.vlgmr.msra.gmra.mrb[14].mxu1 %v7471_v20  ;;  %v8499_v20 = vand.u32 4294901760, %v8494_v13 }
 0x59a   : > { %18962 = vmatpush3.bf16.msk.msra.mxu0 %vm20217_vm7, %v19851_v58  ;;  %18980 = vmatpush3.bf16.msk.msra.mxu1 %vm20227_vm9, %v19851_v58 }
 0x59b   : > { %17968 = vmatprep.mubr.msk.f32.mxu0 %vm19849_vm0, %v19850_v41  ;;  %18010 = vmatprep.mubr.msk.f32.mxu1 %vm19849_vm0, %v19850_v41  ;;  %v8581_v27 = vsub.f32 %v8494_v13, %v8499_v20  ;;  %v18988_v26 = vpack.c.bf16 %v8499_v20, %v8496_v36  ;;  %v10345_v13 = vstv %s16667_s21  ;;  %v10339_v20 = vadd.f32 %v10334_v61, %v10322_v57  ;;  %s16677_s21 = sld [smem:[#allocation2 + $0x5c]] }
 0x59c   : > { %18963 = vmatprep.subr.bf16.mxu0 %v19848_v40  ;;  %18981 = vmatprep.subr.bf16.mxu1 %v19848_v40  ;;  %v10347_v36 = vmul.f32 %v20906_v59, %v10345_v13  ;;  %v10395_v61 = vmul.f32 %v20948_v47, %v10393_v56 }
 0x59d   : > { %v8582_v12 = vand.u32 4294901760, %v8581_v27 }
 0x59e   : > { %v10349_v16 = vadd.f32 %v10347_v36, %v10340_v17  ;;  %v12459_v36 = vstv %s21169_s8  ;;  %s21350_s8 = sld [smem:[#allocation2 + $0x75]] }
 0x59f   : > { %v19000_v29 = vpack.c.bf16 %v8582_v12, %v8575_v10 }
 0x5a1   : > { %17969 = vmatmul.mubr.f32.vlgmr.msra.gmra.mrb[14].mxu0 %v7472_v14  ;;  %18011 = vmatmul.mubr.f32.vlgmr.msra.gmra.mrb[14].mxu1 %v7472_v14  ;;  %v8583_v14 = vsub.f32 %v8581_v27, %v8582_v12  ;;  %v12364_v12 = vstv %s16704_s28  ;;  %s16663_s28 = sld [smem:[#allocation5 + $0x4]] }
 0x5a2   : > { %18965 = vmatpush3.bf16.msra.mxu0 %v20245_v9  ;;  %18983 = vmatpush3.bf16.msra.mxu1 %v20247_v11 }
 0x5a3   : > { %17975 = vmatprep.mubr.msk.f32.mxu0 %vm19849_vm0, %v19850_v41  ;;  %18017 = vmatprep.mubr.msk.f32.mxu1 %vm19849_vm0, %v19850_v41  ;;  %v8584_v25 = vand.u32 4294901760, %v8583_v14 }
 0x5a4   : > { %18966 = vmatprep.subr.bf16.mxu0 %v19848_v40  ;;  %18984 = vmatprep.subr.bf16.mxu1 %v19848_v40 }
 0x5a5   : > { %v18991_v34 = vpack.c.bf16 %v8584_v25, %v8577_v28  ;;  %v10358_v28 = vpop.permute.xlu0 %10357 }
 0x5a9   : > { %17976 = vmatmul.mubr.f32.vlgmr.msra.gmra.mrb[14].mxu0 %v21014_v24  ;;  %18018 = vmatmul.mubr.f32.vlgmr.msra.gmra.mrb[14].mxu1 %v21014_v24 }
 0x5aa   : > { %18968 = vmatpush3.bf16.msk.msra.mxu0 %vm20217_vm7, %v19851_v58  ;;  %18986 = vmatpush3.bf16.msk.msra.mxu1 %vm20227_vm9, %v19851_v58 }
 0x5ab   : > { %17982 = vmatprep.mubr.msk.f32.mxu0 %vm19849_vm0, %v19850_v41  ;;  %18024 = vmatprep.mubr.msk.f32.mxu1 %vm19849_vm0, %v19850_v41 }
 0x5ac   : > { %18987 = vmatprep.subr.bf16.mxu0 %v19848_v40  ;;  %19005 = vmatprep.subr.bf16.mxu1 %v19848_v40 }
 0x5b1   : > { %17983 = vmatmul.mubr.f32.vlgmr.msra.gmra.mrb[14].mxu0 %v21014_v24  ;;  %18025 = vmatmul.mubr.f32.vlgmr.msra.gmra.mrb[14].mxu1 %v21014_v24  ;;  %v18994_v24 = vpack.c.bf16 %v8581_v27, %v8574_v38  ;;  %v10346_v27 = vmul.f32 %v20910_v22, %v10345_v13  ;;  %v12340_v38 = vstv %s16702_s26  ;;  %v10394_v13 = vmul.f32 %v20952_v49, %v10393_v56  ;;  %s16679_s26 = sld [smem:[#allocation2 + $0x5e]] }
 0x5b2   : > { %18989 = vmatpush3.bf16.msra.mxu0 %v18988_v26  ;;  %19007 = vmatpush3.bf16.msra.mxu1 %v18988_v26  ;;  %v12342_v10 = vmul.f32 %v20894_v37, %v12340_v38  ;;  %v12341_v14 = vmul.f32 %v20898_v53, %v12340_v38 }
 0x5b3   : > { %18031 = vmatprep.mubr.msk.f32.mxu0 %vm19849_vm0, %v19850_v41  ;;  %18073 = vmatprep.mubr.msk.f32.mxu1 %vm19849_vm0, %v19850_v41  ;;  %v10348_v25 = vadd.f32 %v10346_v27, %v10339_v20 }
 0x5b4   : > { %18990 = vmatprep.subr.bf16.mxu0 %v19848_v40  ;;  %19008 = vmatprep.subr.bf16.mxu1 %v19848_v40 }
 0x5b5   : > { %18032 = vmatmul.mubr.f32.vlgmr.msra.gmra.mrb[16].mxu0 %v20155_v7  ;;  %18074 = vmatmul.mubr.f32.vlgmr.msra.gmra.mrb[16].mxu1 %v20157_v8  ;;  %v10363_v53 = vadd.f32 %v10358_v28, %v10348_v25 }
 0x5b6   : > { %18992 = vmatpush3.bf16.msra.mxu0 %v18991_v34  ;;  %19010 = vmatpush3.bf16.msra.mxu1 %v18991_v34  ;;  %v10369_v34 = vstv %s16669_s29  ;;  %s16701_s29 = sld [smem:[#allocation2 + $0x60]] }
 0x5b7   : > { %18038 = vmatprep.mubr.msk.f32.mxu0 %vm19849_vm0, %v19850_v41  ;;  %18993 = vmatprep.subr.bf16.mxu0 %v19848_v40 }
 0x5b8   : > { %18080 = vmatprep.mubr.msk.f32.mxu1 %vm19849_vm0, %v19850_v41  ;;  %19011 = vmatprep.subr.bf16.mxu1 %v19848_v40 }
 0x5b9   : > { %12347 = vrot.lane.b32.xlu1 %v12342_v10, %s19847_s4  ;;  %12345 = vrot.lane.b32.xlu0 %v12341_v14, %s19847_s4  ;;  %v10416_v14 = vstv %s21172_s9  ;;  %s21360_s9 = sld [smem:[#allocation2 + $0x77]] }
 0x5ba   : > { %v10418_v28 = vmul.f32 %v20963_v1, %v10416_v14 }
 0x5bd   : > { %18039 = vmatmul.mubr.msk.f32.vlgmr.msra.gmra.mrb[16].mxu0 %vm440_vm3, %v20129_v21  ;;  %18081 = vmatmul.mubr.msk.f32.vlgmr.msra.gmra.mrb[16].mxu1 %vm440_vm3, %v20132_v23 }
 0x5be   : > { %18995 = vmatpush3.bf16.msra.mxu0 %v18994_v24  ;;  %19013 = vmatpush3.bf16.msra.mxu1 %v18994_v24  ;;  %v12366_v24 = vmul.f32 %v20906_v59, %v12364_v12  ;;  %v12412_v59 = vstv %s21152_s5  ;;  %s16738_s5 = sld [smem:[#allocation2 + $0x71]] }
 0x5bf   : > { %18045 = vmatprep.mubr.msk.f32.mxu0 %vm19849_vm0, %v19850_v41  ;;  %18996 = vmatprep.subr.bf16.mxu0 %v19848_v40  ;;  %v12414_v52 = vmul.f32 %v20948_v47, %v12412_v59  ;;  %v12461_v47 = vmul.f32 %v20979_v62, %v12459_v36 }
 0x5c0   : > { %18087 = vmatprep.mubr.msk.f32.mxu1 %vm19849_vm0, %v19850_v41  ;;  %19014 = vmatprep.subr.bf16.mxu1 %v19848_v40 }
 0x5c1   : > { %12371 = vrot.lane.b32.xlu1 %v12366_v24, %s19847_s4 }
 0x5c5   : > { %18046 = vmatmul.mubr.f32.vlgmr.msra.gmra.mrb[16].mxu0 %v20140_v45  ;;  %18088 = vmatmul.mubr.f32.vlgmr.msra.gmra.mrb[16].mxu1 %v20142_v46 }
 0x5c6   : > { %18998 = vmatpush3.bf16.msra.mxu0 %v18988_v26  ;;  %19016 = vmatpush3.bf16.msra.mxu1 %v18988_v26 }
 0x5c7   : > { %18052 = vmatprep.mubr.msk.f32.mxu0 %vm19849_vm0, %v19850_v41  ;;  %18999 = vmatprep.subr.bf16.mxu0 %v19848_v40 }
 0x5c8   : > { %18094 = vmatprep.mubr.msk.f32.mxu1 %vm19849_vm0, %v19850_v41  ;;  %19017 = vmatprep.subr.bf16.mxu1 %v19848_v40 }
 0x5cd   : > { %18053 = vmatmul.mubr.f32.vlgmr.msra.gmra.mrb[16].mxu0 %v20146_v54  ;;  %18095 = vmatmul.mubr.f32.vlgmr.msra.gmra.mrb[16].mxu1 %v20149_v55 }
 0x5ce   : > { %19001 = vmatpush3.bf16.msra.mxu0 %v19000_v29  ;;  %19019 = vmatpush3.bf16.msra.mxu1 %v19000_v29  ;;  %v12365_v29 = vmul.f32 %v20910_v22, %v12364_v12 }
 0x5cf   : > { %18059 = vmatprep.mubr.msk.f32.mxu0 %vm19849_vm0, %v19850_v41  ;;  %19002 = vmatprep.subr.bf16.mxu0 %v19848_v40 }
 0x5d0   : > { %18101 = vmatprep.mubr.msk.f32.mxu1 %vm19849_vm0, %v19850_v41  ;;  %19020 = vmatprep.subr.bf16.mxu1 %v19848_v40 }
 0x5d1   : > { %12369 = vrot.lane.b32.xlu0 %v12365_v29, %s19847_s4 }
 0x5d5   : > { %18060 = vmatmul.mubr.msk.f32.vlgmr.msra.gmra.mrb[16].mxu0 %vm440_vm3, %v20129_v21  ;;  %18102 = vmatmul.mubr.msk.f32.vlgmr.msra.gmra.mrb[16].mxu1 %vm440_vm3, %v20132_v23 }
 0x5d6   : > { %19004 = vmatpush3.bf16.msra.mxu0 %v18988_v26  ;;  %19022 = vmatpush3.bf16.msra.mxu1 %v18988_v26  ;;  %v10360_v26 = vpop.permute.xlu1 %10359 }
 0x5d7   : > { %18066 = vmatprep.mubr.msk.f32.mxu0 %vm19849_vm0, %v19850_v41  ;;  %18108 = vmatprep.mubr.msk.f32.mxu1 %vm19849_vm0, %v19850_v41  ;;  %v10364_v37 = vadd.f32 %v10360_v26, %v10349_v16  ;;  %v12482_v16 = vstv %s16714_s10  ;;  %s21365_s10 = sld [smem:[#allocation2 + $0x66]] }
 0x5d8   : > { %19023 = vmatprep.subr.bf16.mxu0 %v19848_v40  ;;  %19041 = vmatprep.subr.bf16.mxu1 %v19848_v40  ;;  %v12484_v24 = vmul.f32 %v20992_v19, %v12482_v16  ;;  %v12483_v29 = vmul.f32 %v20996_v15, %v12482_v16 }
 0x5dd   : > { %18067 = vmatmul.mubr.msk.f32.vlgmr.msra.gmra.mrb[16].mxu0 %vm440_vm3, %v20129_v21  ;;  %18109 = vmatmul.mubr.msk.f32.vlgmr.msra.gmra.mrb[16].mxu1 %vm440_vm3, %v20132_v23 }
 0x5de   : > { %19025 = vmatpush3.bf16.msk.msra.mxu0 %vm20217_vm7, %v19851_v58  ;;  %19043 = vmatpush3.bf16.msk.msra.mxu1 %vm20227_vm9, %v19851_v58 }
 0x5df   : > { %18115 = vmatprep.mubr.msk.f32.mxu0 %vm19849_vm0, %v19850_v41  ;;  %18157 = vmatprep.mubr.msk.f32.mxu1 %vm19849_vm0, %v19850_v41 }
 0x5e0   : > { %19026 = vmatprep.subr.bf16.mxu0 %v19848_v40  ;;  %19044 = vmatprep.subr.bf16.mxu1 %v19848_v40 }
 0x684   : > { %v7848_v42 = vpop.f32.mrb[14].mxu0  ;;  %v8295_v6 = vpop.f32.mrb[14].mxu1 }
 0x685   : > { %v8299_v43 = vmax.f32 %v7848_v42, %v8295_v6  ;;  %v17984_v48 = vpop.f32.mrb[15].mxu0  ;;  %v18026_v50 = vpop.f32.mrb[15].mxu1  ;;  %v12388_v42 = vstv %s16706_s27  ;;  %v10371_v6 = vmul.f32 %v20928_v32, %v10369_v34  ;;  %s16703_s27 = sld [smem:[#allocation2 + $0x62]] }
 0x686   : > { %v12389_v48 = vmul.f32 %v20932_v44, %v12388_v42 }
 0x687   : > { %v8302_v30 = vadd.f32 %v8301_v3, %v8299_v43  ;;  %v10370_v3 = vmul.f32 %v20932_v44, %v10369_v34  ;;  %v12390_v43 = vmul.f32 %v20928_v32, %v12388_v42  ;;  %v10373_v22 = vadd.f32 %v10371_v6, %v10364_v37 }
 0x688   : > { %12393 = vrot.lane.b32.xlu0 %v12389_v48, %s19847_s4  ;;  %v12413_v32 = vmul.f32 %v20952_v49, %v12412_v59  ;;  %v12435_v44 = vstv %s16710_s7  ;;  %v12460_v49 = vmul.f32 %v20983_v33, %v12459_v36  ;;  %v10417_v34 = vmul.f32 %v20967_v18, %v10416_v14  ;;  %s21348_s7 = sld [smem:[#allocation2 + $0x64]] }
 0x689   : > { %v8303_v35 = vmax.f32 %v8302_v30, 0.0  ;;  %v10372_v50 = vadd.f32 %v10370_v3, %v10363_v53  ;;  %v10384_v30 = vpop.permute.xlu1 %10383  ;;  %12395 = vrot.lane.b32.xlu1 %v12390_v43, %s19847_s4  ;;  %v12437_v17 = vmul.f32 %v20963_v1, %v12435_v44  ;;  %v12436_v20 = vmul.f32 %v20967_v18, %v12435_v44 }
 0x68a   : > { %v10388_v57 = vadd.f32 %v10384_v30, %v10373_v22  ;;  %v12506_v53 = vstv %s21185_s11  ;;  %v10440_v18 = vstv %s21188_s19  ;;  %s21372_s11 = sld [smem:[#allocation2 + $0x79]]  ;;  %s21387_s19 = sld [smem:[#allocation2 + $0x7b]] }
 0x68b   : > { %16628 = vst.msk [vmem:[%s20442_s23 + $0x18] sm:$0xff] %vm2268_vm10, %v8303_v35  ;;  %v10382_v35 = vpop.permute.xlu0 %10381  ;;  %v12507_v30 = vmul.f32 %v21011_v51, %v12506_v53  ;;  %v10442_v44 = vmul.f32 %v20979_v62, %v10440_v18 }
 0x68c   : > { %v10387_v60 = vadd.f32 %v10382_v35, %v10372_v50  ;;  %12417 = vrot.lane.b32.xlu0 %v12413_v32, %s19847_s4  ;;  %v10397_v27 = vadd.f32 %v10395_v61, %v10388_v57  ;;  %v12508_v50 = vmul.f32 %v21007_v2, %v12506_v53 }
 0x68d   : > { %12419 = vrot.lane.b32.xlu1 %v12414_v52, %s19847_s4  ;;  %v10408_v12 = vpop.permute.xlu1 %10407 }
 0x68e   : > { %v10396_v38 = vadd.f32 %v10394_v13, %v10387_v60  ;;  %v10412_v25 = vadd.f32 %v10408_v12, %v10397_v27  ;;  %v10441_v60 = vmul.f32 %v20983_v33, %v10440_v18  ;;  %v10463_v27 = vstv %s16677_s21  ;;  %s21390_s21 = sld [smem:[#allocation2 + $0x68]] }
 0x68f   : > { %v10406_v10 = vpop.permute.xlu0 %10405  ;;  %v10465_v62 = vmul.f32 %v20992_v19, %v10463_v27  ;;  %v10464_v14 = vmul.f32 %v20996_v15, %v10463_v27  ;;  %v21341_v27 = vld [vmem:[%s19973_s30 + $0x8] sm:$0xff] }
 0x690   : > { %12440 = vrot.lane.b32.xlu0 %v12436_v20, %s19847_s4  ;;  %v10411_v26 = vadd.f32 %v10406_v10, %v10396_v38  ;;  %v10420_v48 = vadd.f32 %v10418_v28, %v10412_v25  ;;  %v10487_v25 = vstv %s16679_s26  ;;  %s21403_s26 = sld [smem:[#allocation2 + $0x7d]] }
 0x691   : > { %12442 = vrot.lane.b32.xlu1 %v12437_v17, %s19847_s4  ;;  %v10431_v22 = vpop.permute.xlu1 %10430  ;;  %v10489_v28 = vmul.f32 %v21007_v2, %v10487_v25 }
 0x692   : > { %v10419_v59 = vadd.f32 %v10417_v34, %v10411_v26  ;;  %v10435_v32 = vadd.f32 %v10431_v22, %v10420_v48  ;;  %v10488_v34 = vmul.f32 %v21011_v51, %v10487_v25  ;;  %v21357_v25 = vld [vmem:[%s19973_s30 + $0x1] sm:$0xff] }
 0x693   : > { %v10429_v56 = vpop.permute.xlu0 %10428 }
 0x694   : > { %12464 = vrot.lane.b32.xlu0 %v12460_v49, %s19847_s4  ;;  %v10434_v57 = vadd.f32 %v10429_v56, %v10419_v59  ;;  %v10444_v17 = vadd.f32 %v10442_v44, %v10435_v32 }
 0x695   : > { %12466 = vrot.lane.b32.xlu1 %v12461_v47, %s19847_s4  ;;  %v10455_v20 = vpop.permute.xlu1 %10454 }
 0x696   : > { %v10443_v36 = vadd.f32 %v10441_v60, %v10434_v57  ;;  %v10459_v10 = vadd.f32 %v10455_v20, %v10444_v17  ;;  %v10313_v57 = vstv %s16663_s28  ;;  %s21418_s28 = sld [smem:[#allocation2 + $0x7f]] }
 0x697   : > { %v10453_v12 = vpop.permute.xlu0 %10452 }
 0x698   : > { %12487 = vrot.lane.b32.xlu0 %v12483_v29, %s19847_s4  ;;  %v10458_v33 = vadd.f32 %v10453_v12, %v10443_v36  ;;  %v10467_v47 = vadd.f32 %v10465_v62, %v10459_v10  ;;  %v12333_v36 = vstv %s16701_s29  ;;  %v21345_v12 = vld [vmem:[%s19973_s30] sm:$0xff]  ;;  %s21421_s29 = sld [smem:[#allocation2 + $0x6a]] }
 0x699   : > { %12489 = vrot.lane.b32.xlu1 %v12484_v24, %s19847_s4  ;;  %v10478_v49 = vpop.permute.xlu1 %10477  ;;  %v12334_v10 = vmul.f32 %v21345_v12, %v12333_v36 }
 0x69a   : > { %v10466_v19 = vadd.f32 %v10464_v14, %v10458_v33  ;;  %v10482_v15 = vadd.f32 %v10478_v49, %v10467_v47  ;;  %v12357_v14 = vstv %s16703_s27  ;;  %s21449_s27 = sld [smem:[#allocation2 + $0x6c]] }
 0x69b   : > { %v10476_v16 = vpop.permute.xlu0 %10475 }
 0x69c   : > { %12511 = vrot.lane.b32.xlu0 %v12507_v30, %s19847_s4  ;;  %v10481_v26 = vadd.f32 %v10476_v16, %v10466_v19  ;;  %v10491_v24 = vadd.f32 %v10489_v28, %v10482_v15  ;;  %v21353_v19 = vld [vmem:[%s19973_s30 + $0x9] sm:$0xff]  ;;  %v12358_v15 = vmul.f32 %v21357_v25, %v12357_v14  ;;  %v14376_v28 = vstv %s16740_s6  ;;  %s16739_s6 = sld [smem:[#allocation2 + $0x72]] }
 0x69d   : > { %12513 = vrot.lane.b32.xlu1 %v12508_v50, %s19847_s4  ;;  %v12359_v16 = vmul.f32 %v21353_v19, %v12357_v14 }
 0x69e   : > { %v10490_v29 = vadd.f32 %v10488_v34, %v10481_v26  ;;  %v14352_v26 = vstv %s16738_s5  ;;  %s16737_s5 = sld [smem:[#allocation2 + $0x70]] }
 0x69f   : > { %v14354_v34 = vmul.f32 %v21341_v27, %v14352_v26 }
 0x6a1   : > { %14359 = vrot.lane.b32.xlu1 %v14354_v34, %s19847_s4 }
 0x6b0   : > { %v8950_v42 = vpop.f32.mrb[16].mxu0  ;;  %v9409_v37 = vpop.f32.mrb[16].mxu1 }
 0x6b1   : > { %v9413_v6 = vmax.f32 %v8950_v42, %v9409_v37  ;;  %v18068_v3 = vpop.f32.mrb[17].mxu0  ;;  %v18110_v43 = vpop.f32.mrb[17].mxu1 }
 0x6b2   : > { %v10502_v42 = vpop.permute.xlu1 %10501  ;;  %v10500_v37 = vpop.permute.xlu0 %10499 }
 0x6b3   : > { %v9415_v1 = vsel %vm440_vm3, %v9413_v6, 0  ;;  %v10506_v2 = vadd.f32 %v10502_v42, %v10491_v24  ;;  %v10505_v51 = vadd.f32 %v10500_v37, %v10490_v29  ;;  %v14353_v24 = vmul.f32 %v21345_v12, %v14352_v26 }
 0x6b4   : > { %v21207_v35 = vand.u32 4294901760, %v9415_v1 }
 0x6b5   : > { %v10511_v53 = vand.u32 4294901760, %v10506_v2  ;;  %v10508_v6 = vand.u32 4294901760, %v10505_v51  ;;  %14357 = vrot.lane.b32.xlu0 %v14353_v24, %s19847_s4  ;;  %v12428_v24 = vstv %s21390_s21  ;;  %s16735_s21 = sld [smem:[#allocation5 + $0x6]] }
 0x6b6   : > { %v9483_v52 = vsub.f32 %v9415_v1, %v21207_v35  ;;  %v12348_v62 = vpop.permute.xlu1 %12347  ;;  %v12346_v33 = vpop.permute.xlu0 %12345 }
 0x6b7   : > { %v10593_v3 = vsub.f32 %v10506_v2, %v10511_v53  ;;  %v10586_v43 = vsub.f32 %v10505_v51, %v10508_v6  ;;  %v19060_v50 = vpack.c.bf16 %v10511_v53, %v10508_v6  ;;  %v12351_v49 = vadd.f32 %v12346_v33, %v12334_v10  ;;  %v21410_v33 = vld [vmem:[%s19973_s30 + $0x38] sm:$0xff] }
 0x6b8   : > { %v9484_v61 = vand.u32 4294901760, %v9483_v52  ;;  %v12381_v51 = vstv %s21348_s7  ;;  %v14378_v53 = vmul.f32 %v21353_v19, %v14376_v28  ;;  %v14377_v6 = vmul.f32 %v21357_v25, %v14376_v28  ;;  %s16741_s7 = sld [smem:[#allocation2 + $0x74]] }
 0x6b9   : > { %v10594_v48 = vand.u32 4294901760, %v10593_v3  ;;  %v10587_v59 = vand.u32 4294901760, %v10586_v43  ;;  %v12360_v42 = vadd.f32 %v12358_v15, %v12351_v49 }
 0x6ba   : > { %v9485_v13 = vsub.f32 %v9483_v52, %v9484_v61  ;;  %v12372_v37 = vpop.permute.xlu1 %12371  ;;  %v12370_v2 = vpop.permute.xlu0 %12369  ;;  %14383 = vrot.lane.b32.xlu1 %v14378_v53, %s19847_s4  ;;  %14381 = vrot.lane.b32.xlu0 %v14377_v6, %s19847_s4 }
 0x6bb   : > { %v10595_v1 = vsub.f32 %v10593_v3, %v10594_v48  ;;  %v10588_v22 = vsub.f32 %v10586_v43, %v10587_v59 }
 0x6bc   : > { %v9486_v38 = vand.u32 4294901760, %v9485_v13 }
 0x6bd   : > { %v10596_v18 = vand.u32 4294901760, %v10595_v1  ;;  %v10589_v30 = vand.u32 4294901760, %v10588_v22  ;;  %v21379_v22 = vld [vmem:[%s19973_s30 + $0x18] sm:$0xff] }
 0x6be   : > { %18116 = vmatmul.mubr.f32.vlgmr.msra.gmra.mrb[18].mxu0 %v9486_v38  ;;  %18158 = vmatmul.mubr.f32.vlgmr.msra.gmra.mrb[18].mxu1 %v9486_v38  ;;  %v12335_v38 = vmul.f32 %v21341_v27, %v12333_v36 }
 0x6bf   : > { %19028 = vmatpush3.bf16.msra.mxu0 %v20237_v63  ;;  %19046 = vmatpush3.bf16.msra.mxu1 %v20239_v0  ;;  %v19063_v56 = vpack.c.bf16 %v10596_v18, %v10589_v30  ;;  %v12382_v18 = vmul.f32 %v21379_v22, %v12381_v51 }
 0x6c0   : > { %18122 = vmatprep.mubr.msk.f32.mxu0 %vm19849_vm0, %v19850_v41  ;;  %18164 = vmatprep.mubr.msk.f32.mxu1 %vm19849_vm0, %v19850_v41  ;;  %v12352_v47 = vadd.f32 %v12348_v62, %v12335_v38 }
 0x6c1   : > { %19029 = vmatprep.subr.bf16.mxu0 %v19848_v40  ;;  %19047 = vmatprep.subr.bf16.mxu1 %v19848_v40 }
 0x6c2   : > { %v12361_v29 = vadd.f32 %v12359_v16, %v12352_v47  ;;  %v21414_v47 = vld [vmem:[%s19973_s30 + $0x30] sm:$0xff]  ;;  %v14471_v16 = vstv %s21387_s19  ;;  %s16751_s19 = sld [smem:[#allocation2 + $0x7e]] }
 0x6c6   : > { %18123 = vmatmul.mubr.f32.vlgmr.msra.gmra.mrb[18].mxu0 %v21207_v35  ;;  %18165 = vmatmul.mubr.f32.vlgmr.msra.gmra.mrb[18].mxu1 %v21207_v35 }
 0x6c7   : > { %19031 = vmatpush3.bf16.msra.mxu0 %v20241_v4  ;;  %19049 = vmatpush3.bf16.msra.mxu1 %v20243_v5 }
 0x6c8   : > { %18129 = vmatprep.mubr.msk.f32.mxu0 %vm19849_vm0, %v19850_v41  ;;  %18171 = vmatprep.mubr.msk.f32.mxu1 %vm19849_vm0, %v19850_v41 }
 0x6c9   : > { %19032 = vmatprep.subr.bf16.mxu0 %v19848_v40  ;;  %19050 = vmatprep.subr.bf16.mxu1 %v19848_v40 }
 0x6ce   : > { %18130 = vmatmul.mubr.f32.vlgmr.msra.gmra.mrb[18].mxu0 %v9483_v52  ;;  %18172 = vmatmul.mubr.f32.vlgmr.msra.gmra.mrb[18].mxu1 %v9483_v52  ;;  %v19072_v52 = vpack.c.bf16 %v10594_v48, %v10587_v59  ;;  %v12375_v48 = vadd.f32 %v12370_v2, %v12360_v42  ;;  %v21375_v59 = vld [vmem:[%s19973_s30 + $0x20] sm:$0xff] }
 0x6cf   : > { %19034 = vmatpush3.bf16.msk.msra.mxu0 %vm20217_vm7, %v19851_v58  ;;  %19052 = vmatpush3.bf16.msk.msra.mxu1 %vm20227_vm9, %v19851_v58  ;;  %v12383_v1 = vmul.f32 %v21375_v59, %v12381_v51  ;;  %v14494_v51 = vstv %s21403_s26  ;;  %s16771_s26 = sld [smem:[#allocation5 + $0x7]] }
 0x6d0   : > { %18136 = vmatprep.mubr.msk.f32.mxu0 %vm19849_vm0, %v19850_v41  ;;  %18178 = vmatprep.mubr.msk.f32.mxu1 %vm19849_vm0, %v19850_v41 }
 0x6d1   : > { %19035 = vmatprep.subr.bf16.mxu0 %v19848_v40  ;;  %19053 = vmatprep.subr.bf16.mxu1 %v19848_v40 }
 0x6d5   : > { %v16349_v31 = vstv %s16771_s26 }
 0x6d6   : > { %18137 = vmatmul.mubr.f32.vlgmr.msra.gmra.mrb[18].mxu0 %v9484_v61  ;;  %18179 = vmatmul.mubr.f32.vlgmr.msra.gmra.mrb[18].mxu1 %v9484_v61 }
 0x6d7   : > { %19037 = vmatpush3.bf16.msra.mxu0 %v20245_v9  ;;  %19055 = vmatpush3.bf16.msra.mxu1 %v20247_v11 }
 0x6d8   : > { %18143 = vmatprep.mubr.msk.f32.mxu0 %vm19849_vm0, %v19850_v41  ;;  %18185 = vmatprep.mubr.msk.f32.mxu1 %vm19849_vm0, %v19850_v41 }
 0x6d9   : > { %19038 = vmatprep.subr.bf16.mxu0 %v19848_v40  ;;  %19056 = vmatprep.subr.bf16.mxu1 %v19848_v40 }
 0x6de   : > { %18144 = vmatmul.mubr.f32.vlgmr.msra.gmra.mrb[18].mxu0 %v21207_v35  ;;  %18186 = vmatmul.mubr.f32.vlgmr.msra.gmra.mrb[18].mxu1 %v21207_v35 }
 0x6df   : > { %19040 = vmatpush3.bf16.msk.msra.mxu0 %vm20217_vm7, %v19851_v58  ;;  %19058 = vmatpush3.bf16.msk.msra.mxu1 %vm20227_vm9, %v19851_v58 }
 0x6e0   : > { %18150 = vmatprep.mubr.msk.f32.mxu0 %vm19849_vm0, %v19850_v41  ;;  %18192 = vmatprep.mubr.msk.f32.mxu1 %vm19849_vm0, %v19850_v41 }
 0x6e1   : > { %19059 = vmatprep.subr.bf16.mxu0 %v19848_v40  ;;  %19077 = vmatprep.subr.bf16.mxu1 %v19848_v40 }
 0x6e6   : > { %18151 = vmatmul.mubr.f32.vlgmr.msra.gmra.mrb[18].mxu0 %v21207_v35  ;;  %18193 = vmatmul.mubr.f32.vlgmr.msra.gmra.mrb[18].mxu1 %v21207_v35  ;;  %v19066_v35 = vpack.c.bf16 %v10593_v3, %v10586_v43  ;;  %v14400_v3 = vstv %s21350_s8  ;;  %v12376_v43 = vadd.f32 %v12372_v37, %v12361_v29  ;;  %v21426_v29 = vld [vmem:[%s19973_s30 + $0x39] sm:$0xff]  ;;  %v21430_v37 = vld [vmem:[%s19973_s30 + $0x31] sm:$0xff]  ;;  %s16743_s8 = sld [smem:[#allocation2 + $0x76]] }
 0x6e7   : > { %19061 = vmatpush3.bf16.msra.mxu0 %v19060_v50  ;;  %19079 = vmatpush3.bf16.msra.mxu1 %v19060_v50  ;;  %v14401_v30 = vmul.f32 %v21379_v22, %v14400_v3  ;;  %v14473_v42 = vmul.f32 %v21426_v29, %v14471_v16  ;;  %v14472_v2 = vmul.f32 %v21430_v37, %v14471_v16 }
 0x6e8   : > { %18199 = vmatprep.mubr.msk.f32.mxu0 %vm19849_vm0, %v19850_v41  ;;  %18241 = vmatprep.mubr.msk.f32.mxu1 %vm19849_vm0, %v19850_v41 }
 0x6e9   : > { %19062 = vmatprep.subr.bf16.mxu0 %v19848_v40  ;;  %19080 = vmatprep.subr.bf16.mxu1 %v19848_v40 }
 0x6ea   : > { %18200 = vmatmul.mubr.f32.vlgmr.msra.gmra.mrb[20].mxu0 %v20155_v7  ;;  %18242 = vmatmul.mubr.f32.vlgmr.msra.gmra.mrb[20].mxu1 %v20157_v8 }
 0x6eb   : > { %19064 = vmatpush3.bf16.msra.mxu0 %v19063_v56  ;;  %19082 = vmatpush3.bf16.msra.mxu1 %v19063_v56  ;;  %v14424_v56 = vstv %s21360_s9  ;;  %s16745_s9 = sld [smem:[#allocation2 + $0x78]] }
 0x6ec   : > { %18206 = vmatprep.mubr.msk.f32.mxu0 %vm19849_vm0, %v19850_v41  ;;  %19065 = vmatprep.subr.bf16.mxu0 %v19848_v40 }
 0x6ed   : > { %18248 = vmatprep.mubr.msk.f32.mxu1 %vm19849_vm0, %v19850_v41  ;;  %19083 = vmatprep.subr.bf16.mxu1 %v19848_v40 }
 0x6ee   : > { %14405 = vrot.lane.b32.xlu0 %v14401_v30, %s19847_s4 }
 0x6f2   : > { %18207 = vmatmul.mubr.msk.f32.vlgmr.msra.gmra.mrb[20].mxu0 %vm440_vm3, %v20129_v21  ;;  %18249 = vmatmul.mubr.msk.f32.vlgmr.msra.gmra.mrb[20].mxu1 %vm440_vm3, %v20132_v23 }
 0x6f3   : > { %19067 = vmatpush3.bf16.msra.mxu0 %v19066_v35  ;;  %19085 = vmatpush3.bf16.msra.mxu1 %v19066_v35  ;;  %v12385_v35 = vadd.f32 %v12383_v1, %v12376_v43  ;;  %v12429_v43 = vmul.f32 %v21414_v47, %v12428_v24 }
 0x6f4   : > { %18213 = vmatprep.mubr.msk.f32.mxu0 %vm19849_vm0, %v19850_v41  ;;  %19068 = vmatprep.subr.bf16.mxu0 %v19848_v40 }
 0x6f5   : > { %18255 = vmatprep.mubr.msk.f32.mxu1 %vm19849_vm0, %v19850_v41  ;;  %19086 = vmatprep.subr.bf16.mxu1 %v19848_v40 }
 0x6fa   : > { %18214 = vmatmul.mubr.f32.vlgmr.msra.gmra.mrb[20].mxu0 %v20140_v45  ;;  %18256 = vmatmul.mubr.f32.vlgmr.msra.gmra.mrb[20].mxu1 %v20142_v46 }
 0x6fb   : > { %19070 = vmatpush3.bf16.msra.mxu0 %v19060_v50  ;;  %19088 = vmatpush3.bf16.msra.mxu1 %v19060_v50 }
 0x6fc   : > { %18220 = vmatprep.mubr.msk.f32.mxu0 %vm19849_vm0, %v19850_v41  ;;  %19071 = vmatprep.subr.bf16.mxu0 %v19848_v40 }
 0x6fd   : > { %18262 = vmatprep.mubr.msk.f32.mxu1 %vm19849_vm0, %v19850_v41  ;;  %19089 = vmatprep.subr.bf16.mxu1 %v19848_v40 }
 0x702   : > { %18221 = vmatmul.mubr.f32.vlgmr.msra.gmra.mrb[20].mxu0 %v20146_v54  ;;  %18263 = vmatmul.mubr.f32.vlgmr.msra.gmra.mrb[20].mxu1 %v20149_v55 }
 0x703   : > { %19073 = vmatpush3.bf16.msra.mxu0 %v19072_v52  ;;  %19091 = vmatpush3.bf16.msra.mxu1 %v19072_v52  ;;  %v12384_v52 = vadd.f32 %v12382_v18, %v12375_v48  ;;  %v21439_v48 = vld [vmem:[%s19973_s30 + $0x50] sm:$0xff]  ;;  %v21443_v18 = vld [vmem:[%s19973_s30 + $0x48] sm:$0xff] }
 0x704   : > { %18227 = vmatprep.mubr.msk.f32.mxu0 %vm19849_vm0, %v19850_v41  ;;  %19074 = vmatprep.subr.bf16.mxu0 %v19848_v40  ;;  %v14496_v1 = vmul.f32 %v21439_v48, %v14494_v51 }
 0x705   : > { %18269 = vmatprep.mubr.msk.f32.mxu1 %vm19849_vm0, %v19850_v41  ;;  %19092 = vmatprep.subr.bf16.mxu1 %v19848_v40 }
 0x70a   : > { %18228 = vmatmul.mubr.msk.f32.vlgmr.msra.gmra.mrb[20].mxu0 %vm440_vm3, %v20129_v21  ;;  %18270 = vmatmul.mubr.msk.f32.vlgmr.msra.gmra.mrb[20].mxu1 %vm440_vm3, %v20132_v23 }
 0x70b   : > { %19076 = vmatpush3.bf16.msra.mxu0 %v19060_v50  ;;  %19094 = vmatpush3.bf16.msra.mxu1 %v19060_v50  ;;  %v14402_v50 = vmul.f32 %v21375_v59, %v14400_v3  ;;  %v12430_v3 = vmul.f32 %v21410_v33, %v12428_v24 }
 0x70c   : > { %18234 = vmatprep.mubr.msk.f32.mxu0 %vm19849_vm0, %v19850_v41  ;;  %18276 = vmatprep.mubr.msk.f32.mxu1 %vm19849_vm0, %v19850_v41 }
 0x70d   : > { %19095 = vmatprep.subr.bf16.mxu0 %v19848_v40  ;;  %19113 = vmatprep.subr.bf16.mxu1 %v19848_v40 }
 0x70e   : > { %14407 = vrot.lane.b32.xlu1 %v14402_v50, %s19847_s4  ;;  %v14495_v50 = vmul.f32 %v21443_v18, %v14494_v51 }
 0x712   : > { %18235 = vmatmul.mubr.msk.f32.vlgmr.msra.gmra.mrb[20].mxu0 %vm440_vm3, %v20129_v21  ;;  %18277 = vmatmul.mubr.msk.f32.vlgmr.msra.gmra.mrb[20].mxu1 %vm440_vm3, %v20132_v23 }
 0x713   : > { %19097 = vmatpush3.bf16.msk.msra.mxu0 %vm20217_vm7, %v19851_v58  ;;  %19115 = vmatpush3.bf16.msk.msra.mxu1 %vm20227_vm9, %v19851_v58 }
 0x714   : > { %18283 = vmatprep.mubr.msk.f32.mxu0 %vm19849_vm0, %v19850_v41  ;;  %18325 = vmatprep.mubr.msk.f32.mxu1 %vm19849_vm0, %v19850_v41 }
 0x715   : > { %19098 = vmatprep.subr.bf16.mxu0 %v19848_v40  ;;  %19116 = vmatprep.subr.bf16.mxu1 %v19848_v40 }
 0x7b9   : > { %v9860_v32 = vpop.f32.mrb[18].mxu0  ;;  %v10307_v44 = vpop.f32.mrb[18].mxu1 }
 0x7ba   : > { %v10311_v60 = vmax.f32 %v9860_v32, %v10307_v44  ;;  %v18152_v61 = vpop.f32.mrb[19].mxu0  ;;  %v18194_v13 = vpop.f32.mrb[19].mxu1 }
 0x7bb   : > { %v12396_v32 = vpop.permute.xlu1 %12395  ;;  %v12394_v44 = vpop.permute.xlu0 %12393  ;;  %v21399_v13 = vld [vmem:[%s19973_s30 + $0x19] sm:$0xff] }
 0x7bc   : > { %v10314_v17 = vadd.f32 %v10313_v57, %v10311_v60  ;;  %v12405_v57 = vstv %s21365_s10  ;;  %v21395_v60 = vld [vmem:[%s19973_s30 + $0x21] sm:$0xff]  ;;  %v12400_v36 = vadd.f32 %v12396_v32, %v12385_v35  ;;  %v12399_v38 = vadd.f32 %v12394_v44, %v12384_v52  ;;  %s16747_s10 = sld [smem:[#allocation2 + $0x7a]] }
 0x7bd   : > { %v14426_v61 = vmul.f32 %v21395_v60, %v14424_v56  ;;  %v12407_v10 = vmul.f32 %v21395_v60, %v12405_v57  ;;  %v12406_v62 = vmul.f32 %v21399_v13, %v12405_v57  ;;  %v14518_v35 = vstv %s21418_s28  ;;  %s16778_s28 = sshll.u32 %s19835_s15, 10  ;;  %s19852_s15 = smov [#allocation7]  }
 0x7be   : > { %v10315_v20 = vmax.f32 %v10314_v17, 0.0  ;;  %v14425_v17 = vmul.f32 %v21399_v13, %v14424_v56 }
 0x7bf   : > { %14431 = vrot.lane.b32.xlu1 %v14426_v61, %s19847_s4  ;;  %v12409_v15 = vadd.f32 %v12407_v10, %v12400_v36  ;;  %v12408_v26 = vadd.f32 %v12406_v62, %v12399_v38  ;;  %v12420_v28 = vpop.permute.xlu1 %12419  ;;  %v12418_v34 = vpop.permute.xlu0 %12417  ;;  %v12452_v36 = vstv %s21421_s29  ;;  %v21454_v38 = vld [vmem:[%s19973_s30 + $0x51] sm:$0xff]  ;;  %v21458_v62 = vld [vmem:[%s19973_s30 + $0x49] sm:$0xff]  ;;  %s16715_s30 = sld [smem:[#allocation2 + $0x6e]]  ;;  %s16370_s29 = sshll.u32 %s20442_s23, 4  ;;  %s21791_s29 = int_to_ptr.vmem [resolvable:$true] %s16370_s29 }
 0x7c0   : > { %16664 = vst.msk [vmem:[%s20442_s23 + $0x20] sm:$0xff] %vm2268_vm10, %v10315_v20  ;;  %v14447_v20 = vstv %s21372_s11  ;;  %14429 = vrot.lane.b32.xlu0 %v14425_v17, %s19847_s4  ;;  %v14520_v10 = vmul.f32 %v21454_v38, %v14518_v35  ;;  %v12453_v24 = vmul.f32 %v21430_v37, %v12452_v36  ;;  %s16749_s11 = sld [smem:[#allocation2 + $0x7c]] }
 0x7c1   : > { %v14449_v14 = vmul.f32 %v21410_v33, %v14447_v20  ;;  %v14448_v49 = vmul.f32 %v21414_v47, %v14447_v20  ;;  %v12424_v53 = vadd.f32 %v12420_v28, %v12409_v15  ;;  %v12423_v6 = vadd.f32 %v12418_v34, %v12408_v26 }
 0x7c2   : > { %v12454_v28 = vmul.f32 %v21426_v29, %v12452_v36 }
 0x7c3   : > { %14454 = vrot.lane.b32.xlu1 %v14449_v14, %s19847_s4  ;;  %v12432_v57 = vadd.f32 %v12430_v3, %v12424_v53  ;;  %v12431_v61 = vadd.f32 %v12429_v43, %v12423_v6  ;;  %v12443_v20 = vpop.permute.xlu1 %12442  ;;  %v14519_v14 = vmul.f32 %v21458_v62, %v14518_v35  ;;  %v12441_v16 = vpop.permute.xlu0 %12440  ;;  %v12475_v3 = vstv %s21449_s27 }
 0x7c4   : > { %14452 = vrot.lane.b32.xlu0 %v14448_v49, %s19847_s4  ;;  %v12476_v35 = vmul.f32 %v21443_v18, %v12475_v3 }
 0x7c5   : > { %v12447_v26 = vadd.f32 %v12443_v20, %v12432_v57  ;;  %v12446_v34 = vadd.f32 %v12441_v16, %v12431_v61  ;;  %v12499_v61 = vstv %s16715_s30 }
 0x7c6   : > { %v12501_v36 = vmul.f32 %v21454_v38, %v12499_v61 }
 0x7c7   : > { %14478 = vrot.lane.b32.xlu1 %v14473_v42, %s19847_s4  ;;  %v12456_v51 = vadd.f32 %v12454_v28, %v12447_v26  ;;  %v12467_v53 = vpop.permute.xlu1 %12466  ;;  %v12455_v6 = vadd.f32 %v12453_v24, %v12446_v34 }
 0x7c8   : > { %14476 = vrot.lane.b32.xlu0 %v14472_v2, %s19847_s4 }
 0x7cb   : > { %14501 = vrot.lane.b32.xlu1 %v14496_v1, %s19847_s4  ;;  %v12465_v1 = vpop.permute.xlu0 %12464 }
 0x7cc   : > { %14499 = vrot.lane.b32.xlu0 %v14495_v50, %s19847_s4  ;;  %v12471_v50 = vadd.f32 %v12467_v53, %v12456_v51 }
 0x7cf   : > { %14525 = vrot.lane.b32.xlu1 %v14520_v10, %s19847_s4  ;;  %v12488_v57 = vpop.permute.xlu0 %12487  ;;  %v12500_v10 = vmul.f32 %v21458_v62, %v12499_v61 }
 0x7d0   : > { %14523 = vrot.lane.b32.xlu0 %v14519_v14, %s19847_s4  ;;  %s16699_s4 = sld [smem:[#allocation5 + $0x5]] }
 0x7d3   : > { %v12512_v28 = vpop.permute.xlu0 %12511 }
 0x7e5   : > { %v10962_v30 = vpop.f32.mrb[20].mxu0  ;;  %v11421_v56 = vpop.f32.mrb[20].mxu1 }
 0x7e6   : > { %v11425_v52 = vmax.f32 %v10962_v30, %v11421_v56  ;;  %v18236_v32 = vpop.f32.mrb[21].mxu0  ;;  %v18278_v44 = vpop.f32.mrb[21].mxu1  ;;  %v12477_v30 = vmul.f32 %v21439_v48, %v12475_v3  ;;  %v12470_v56 = vadd.f32 %v12465_v1, %v12455_v6 }
 0x7e7   : > { %v12490_v32 = vpop.permute.xlu1 %12489 }
 0x7e8   : > { %v11427_v17 = vsel %vm440_vm3, %v11425_v52, 0  ;;  %v12479_v52 = vadd.f32 %v12477_v30, %v12471_v50  ;;  %v12478_v44 = vadd.f32 %v12476_v35, %v12470_v56 }
 0x7e9   : > { %v21461_v49 = vand.u32 4294901760, %v11427_v17 }
 0x7ea   : > { %v12493_v20 = vadd.f32 %v12488_v57, %v12478_v44  ;;  %v12325_v44 = vstv %s16699_s4  ;;  %s21789_s4 = scalar_lea.hbm %s21846_s3, %s16778_s28 }
 0x7eb   : > { %v11495_v15 = vsub.f32 %v11427_v17, %v21461_v49  ;;  %v12494_v17 = vadd.f32 %v12490_v32, %v12479_v52  ;;  %v12514_v26 = vpop.permute.xlu1 %12513 }
 0x7ec   : > { %v12502_v16 = vadd.f32 %v12500_v10, %v12493_v20  ;;  %v14345_v10 = vstv %s16737_s5  ;;  %s21797_s5 = scalar_lea.sflag [#allocation3], %s202_s18 }
 0x7ed   : > { %v11496_v42 = vand.u32 4294901760, %v11495_v15  ;;  %v12503_v14 = vadd.f32 %v12501_v36, %v12494_v17 }
 0x7ee   : > { %v12517_v24 = vadd.f32 %v12512_v28, %v12502_v16  ;;  %v14369_v28 = vstv %s16739_s6  ;;  %s19757_s6 = scalar_lea.vmem %s21791_s29, 1024 }
 0x7ef   : > { %v11497_v2 = vsub.f32 %v11495_v15, %v11496_v42  ;;  %v12518_v34 = vadd.f32 %v12514_v26, %v12503_v14  ;;  %v14347_v14 = vmul.f32 %v21341_v27, %v14345_v10  ;;  %v14360_v16 = vpop.permute.xlu1 %14359  ;;  %v14346_v26 = vmul.f32 %v21345_v12, %v14345_v10  ;;  %p19758_p8 = scmp.ne.s32.totalorder %s21791_s29, %s19757_s6 }
 0x7f1   : > { %v11498_v43 = vand.u32 4294901760, %v11497_v2  ;;  %v12520_v2 = vand.u32 4294901760, %v12517_v24  ;;  %p19759_p11 = pnand %p19758_p8, %p21862_p10 }
 0x7f3   : > { %18284 = vmatmul.mubr.f32.vlgmr.msra.gmra.mrb[22].mxu0 %v11498_v43  ;;  %18326 = vmatmul.mubr.f32.vlgmr.msra.gmra.mrb[22].mxu1 %v11498_v43  ;;  %v12598_v53 = vsub.f32 %v12517_v24, %v12520_v2  ;;  %v14364_v24 = vadd.f32 %v14360_v16, %v14347_v14  ;;  %p19760_p13 = pneg %p19759_p11 }
 0x7f4   : > { %19100 = vmatpush3.bf16.msra.mxu0 %v20237_v63  ;;  %19118 = vmatpush3.bf16.msra.mxu1 %v20239_v0 }
 0x7f5   : > { %18290 = vmatprep.mubr.msk.f32.mxu0 %vm19849_vm0, %v19850_v41  ;;  %18332 = vmatprep.mubr.msk.f32.mxu1 %vm19849_vm0, %v19850_v41  ;;  %v12599_v3 = vand.u32 4294901760, %v12598_v53 }
 0x7f6   : > { %19101 = vmatprep.subr.bf16.mxu0 %v19848_v40  ;;  %19119 = vmatprep.subr.bf16.mxu1 %v19848_v40 }
 0x7f7   : > { %v12600_v43 = vsub.f32 %v12598_v53, %v12599_v3 }
 0x7f9   : > { %v12601_v30 = vand.u32 4294901760, %v12600_v43 }
 0x7fb   : > { %18291 = vmatmul.mubr.f32.vlgmr.msra.gmra.mrb[22].mxu0 %v21461_v49  ;;  %18333 = vmatmul.mubr.f32.vlgmr.msra.gmra.mrb[22].mxu1 %v21461_v49 }
 0x7fc   : > { %19103 = vmatpush3.bf16.msra.mxu0 %v20241_v4  ;;  %19121 = vmatpush3.bf16.msra.mxu1 %v20243_v5 }
 0x7fd   : > { %18297 = vmatprep.mubr.msk.f32.mxu0 %vm19849_vm0, %v19850_v41  ;;  %18339 = vmatprep.mubr.msk.f32.mxu1 %vm19849_vm0, %v19850_v41 }
 0x7fe   : > { %19104 = vmatprep.subr.bf16.mxu0 %v19848_v40  ;;  %19122 = vmatprep.subr.bf16.mxu1 %v19848_v40 }
 0x803   : > { %18298 = vmatmul.mubr.f32.vlgmr.msra.gmra.mrb[22].mxu0 %v11495_v15  ;;  %18340 = vmatmul.mubr.f32.vlgmr.msra.gmra.mrb[22].mxu1 %v11495_v15  ;;  %v12523_v15 = vand.u32 4294901760, %v12518_v34 }
 0x804   : > { %19106 = vmatpush3.bf16.msk.msra.mxu0 %vm20217_vm7, %v19851_v58  ;;  %19124 = vmatpush3.bf16.msk.msra.mxu1 %vm20227_vm9, %v19851_v58 }
 0x805   : > { %18304 = vmatprep.mubr.msk.f32.mxu0 %vm19849_vm0, %v19850_v41  ;;  %18346 = vmatprep.mubr.msk.f32.mxu1 %vm19849_vm0, %v19850_v41  ;;  %v12605_v51 = vsub.f32 %v12518_v34, %v12523_v15  ;;  %v19132_v50 = vpack.c.bf16 %v12523_v15, %v12520_v2  ;;  %v14358_v34 = vpop.permute.xlu0 %14357  ;;  %v14371_v15 = vmul.f32 %v21353_v19, %v14369_v28 }
 0x806   : > { %19107 = vmatprep.subr.bf16.mxu0 %v19848_v40  ;;  %19125 = vmatprep.subr.bf16.mxu1 %v19848_v40  ;;  %v14363_v2 = vadd.f32 %v14358_v34, %v14346_v26 }
 0x807   : > { %v12606_v6 = vand.u32 4294901760, %v12605_v51 }
 0x809   : > { %v19144_v35 = vpack.c.bf16 %v12606_v6, %v12599_v3  ;;  %v14382_v43 = vpop.permute.xlu0 %14381 }
 0x80b   : > { %18305 = vmatmul.mubr.f32.vlgmr.msra.gmra.mrb[22].mxu0 %v11496_v42  ;;  %18347 = vmatmul.mubr.f32.vlgmr.msra.gmra.mrb[22].mxu1 %v11496_v42  ;;  %v12607_v42 = vsub.f32 %v12605_v51, %v12606_v6  ;;  %v14384_v6 = vpop.permute.xlu1 %14383 }
 0x80c   : > { %19109 = vmatpush3.bf16.msra.mxu0 %v20245_v9  ;;  %19127 = vmatpush3.bf16.msra.mxu1 %v20247_v11 }
 0x80d   : > { %18311 = vmatprep.mubr.msk.f32.mxu0 %vm19849_vm0, %v19850_v41  ;;  %18353 = vmatprep.mubr.msk.f32.mxu1 %vm19849_vm0, %v19850_v41  ;;  %v12608_v1 = vand.u32 4294901760, %v12607_v42  ;;  %v14393_v42 = vstv %s16741_s7  ;;  %v14406_v19 = vpop.permute.xlu0 %14405  ;;  %s19761_s7 = sshll.u32 %s19852_s15, 4  ;;  %s19762_s7 = int_to_ptr.vmem [resolvable:$false] %s19761_s7 }
 0x80e   : > { %19110 = vmatprep.subr.bf16.mxu0 %v19848_v40  ;;  %19128 = vmatprep.subr.bf16.mxu1 %v19848_v40  ;;  %v14395_v27 = vmul.f32 %v21375_v59, %v14393_v42  ;;  %v14394_v12 = vmul.f32 %v21379_v22, %v14393_v42  ;;  %p19764_p1 = scmp.lt.s32.totalorder %s21791_s29, %s19762_s7 }
 0x80f   : > { %v19135_v56 = vpack.c.bf16 %v12608_v1, %v12601_v30 }
 0x813   : > { %18312 = vmatmul.mubr.f32.vlgmr.msra.gmra.mrb[22].mxu0 %v21461_v49  ;;  %18354 = vmatmul.mubr.f32.vlgmr.msra.gmra.mrb[22].mxu1 %v21461_v49 }
 0x814   : > { %19112 = vmatpush3.bf16.msk.msra.mxu0 %vm20217_vm7, %v19851_v58  ;;  %19130 = vmatpush3.bf16.msk.msra.mxu1 %vm20227_vm9, %v19851_v58 }
 0x815   : > { %18318 = vmatprep.mubr.msk.f32.mxu0 %vm19849_vm0, %v19850_v41  ;;  %18360 = vmatprep.mubr.msk.f32.mxu1 %vm19849_vm0, %v19850_v41 }
 0x816   : > { %19131 = vmatprep.subr.bf16.mxu0 %v19848_v40  ;;  %19149 = vmatprep.subr.bf16.mxu1 %v19848_v40 }
 0x81b   : > { %18319 = vmatmul.mubr.f32.vlgmr.msra.gmra.mrb[22].mxu0 %v21461_v49  ;;  %18361 = vmatmul.mubr.f32.vlgmr.msra.gmra.mrb[22].mxu1 %v21461_v49  ;;  %v19138_v49 = vpack.c.bf16 %v12605_v51, %v12598_v53  ;;  %v14370_v51 = vmul.f32 %v21357_v25, %v14369_v28  ;;  %v14373_v53 = vadd.f32 %v14371_v15, %v14364_v24 }
 0x81c   : > { %19133 = vmatpush3.bf16.msra.mxu0 %v19132_v50  ;;  %19151 = vmatpush3.bf16.msra.mxu1 %v19132_v50 }
 0x81d   : > { %18367 = vmatprep.mubr.msk.f32.mxu0 %vm19849_vm0, %v19850_v41  ;;  %18409 = vmatprep.mubr.msk.f32.mxu1 %vm19849_vm0, %v19850_v41  ;;  %v14372_v3 = vadd.f32 %v14370_v51, %v14363_v2  ;;  %v14388_v1 = vadd.f32 %v14384_v6, %v14373_v53  ;;  %v14464_v51 = vstv %s16747_s10 }
 0x81e   : > { %19134 = vmatprep.subr.bf16.mxu0 %v19848_v40  ;;  %19152 = vmatprep.subr.bf16.mxu1 %v19848_v40 }
 0x81f   : > { %18368 = vmatmul.mubr.f32.vlgmr.msra.gmra.mrb[24].mxu0 %v20155_v7  ;;  %18410 = vmatmul.mubr.f32.vlgmr.msra.gmra.mrb[24].mxu1 %v20157_v8  ;;  %v14397_v30 = vadd.f32 %v14395_v27, %v14388_v1 }
 0x820   : > { %19136 = vmatpush3.bf16.msra.mxu0 %v19135_v56  ;;  %19154 = vmatpush3.bf16.msra.mxu1 %v19135_v56  ;;  %v14408_v56 = vpop.permute.xlu1 %14407 }
 0x821   : > { %18374 = vmatprep.mubr.msk.f32.mxu0 %vm19849_vm0, %v19850_v41  ;;  %19137 = vmatprep.subr.bf16.mxu0 %v19848_v40 }
 0x822   : > { %18416 = vmatprep.mubr.msk.f32.mxu1 %vm19849_vm0, %v19850_v41  ;;  %19155 = vmatprep.subr.bf16.mxu1 %v19848_v40 }
 0x827   : > { %18375 = vmatmul.mubr.msk.f32.vlgmr.msra.gmra.mrb[24].mxu0 %vm440_vm3, %v20129_v21  ;;  %18417 = vmatmul.mubr.msk.f32.vlgmr.msra.gmra.mrb[24].mxu1 %vm440_vm3, %v20132_v23 }
 0x828   : > { %19139 = vmatpush3.bf16.msra.mxu0 %v19138_v49  ;;  %19157 = vmatpush3.bf16.msra.mxu1 %v19138_v49 }
 0x829   : > { %18381 = vmatprep.mubr.msk.f32.mxu0 %vm19849_vm0, %v19850_v41  ;;  %19140 = vmatprep.subr.bf16.mxu0 %v19848_v40 }
 0x82a   : > { %18423 = vmatprep.mubr.msk.f32.mxu1 %vm19849_vm0, %v19850_v41  ;;  %19158 = vmatprep.subr.bf16.mxu1 %v19848_v40 }
 0x82f   : > { %18382 = vmatmul.mubr.f32.vlgmr.msra.gmra.mrb[24].mxu0 %v20140_v45  ;;  %18424 = vmatmul.mubr.f32.vlgmr.msra.gmra.mrb[24].mxu1 %v20142_v46 }
 0x830   : > { %19142 = vmatpush3.bf16.msra.mxu0 %v19132_v50  ;;  %19160 = vmatpush3.bf16.msra.mxu1 %v19132_v50 }
 0x831   : > { %18388 = vmatprep.mubr.msk.f32.mxu0 %vm19849_vm0, %v19850_v41  ;;  %19143 = vmatprep.subr.bf16.mxu0 %v19848_v40 }
 0x832   : > { %18430 = vmatprep.mubr.msk.f32.mxu1 %vm19849_vm0, %v19850_v41  ;;  %19161 = vmatprep.subr.bf16.mxu1 %v19848_v40  ;;  %v14430_v59 = vpop.permute.xlu0 %14429 }
 0x836   : > { %v14453_v6 = vpop.permute.xlu0 %14452 }
 0x837   : > { %18389 = vmatmul.mubr.f32.vlgmr.msra.gmra.mrb[24].mxu0 %v20146_v54  ;;  %18431 = vmatmul.mubr.f32.vlgmr.msra.gmra.mrb[24].mxu1 %v20149_v55 }
 0x838   : > { %19145 = vmatpush3.bf16.msra.mxu0 %v19144_v35  ;;  %19163 = vmatpush3.bf16.msra.mxu1 %v19144_v35  ;;  %v14417_v35 = vstv %s16743_s8  ;;  %s19763_s8 = scalar_lea.vmem %s19762_s7, 2048 }
 0x839   : > { %18395 = vmatprep.mubr.msk.f32.mxu0 %vm19849_vm0, %v19850_v41  ;;  %19146 = vmatprep.subr.bf16.mxu0 %v19848_v40  ;;  %v14419_v25 = vmul.f32 %v21395_v60, %v14417_v35  ;;  %p19765_p6 = scmp.lt.s32.totalorder %s19763_s8, %s19757_s6 }
 0x83a   : > { %18437 = vmatprep.mubr.msk.f32.mxu1 %vm19849_vm0, %v19850_v41  ;;  %19164 = vmatprep.subr.bf16.mxu1 %v19848_v40 }
 0x83b   : > { %p19766_p7 = por %p19765_p6, %p19764_p1 }
 0x83d   : > { %p19767_p9 = pnand %p19766_p7, %p19760_p13 }
 0x83f   : > { %18396 = vmatmul.mubr.msk.f32.vlgmr.msra.gmra.mrb[24].mxu0 %vm440_vm3, %v20129_v21  ;;  %18438 = vmatmul.mubr.msk.f32.vlgmr.msra.gmra.mrb[24].mxu1 %vm440_vm3, %v20132_v23 }
 0x840   : > { %19148 = vmatpush3.bf16.msra.mxu0 %v19132_v50  ;;  %19166 = vmatpush3.bf16.msra.mxu1 %v19132_v50  ;;  %v14387_v50 = vadd.f32 %v14382_v43, %v14372_v3  ;;  %v14465_v43 = vmul.f32 %v21430_v37, %v14464_v51 }
 0x841   : > { %18402 = vmatprep.mubr.msk.f32.mxu0 %vm19849_vm0, %v19850_v41  ;;  %18444 = vmatprep.mubr.msk.f32.mxu1 %vm19849_vm0, %v19850_v41 }
 0x842   : > { %19167 = vmatprep.subr.bf16.mxu0 %v19848_v40  ;;  %19185 = vmatprep.subr.bf16.mxu1 %v19848_v40  ;;  %v14396_v49 = vadd.f32 %v14394_v12, %v14387_v50 }
 0x847   : > { %18403 = vmatmul.mubr.msk.f32.vlgmr.msra.gmra.mrb[24].mxu0 %vm440_vm3, %v20129_v21  ;;  %18445 = vmatmul.mubr.msk.f32.vlgmr.msra.gmra.mrb[24].mxu1 %vm440_vm3, %v20132_v23 }
 0x848   : > { %19169 = vmatpush3.bf16.msk.msra.mxu0 %vm20217_vm7, %v19851_v58  ;;  %19187 = vmatpush3.bf16.msk.msra.mxu1 %vm20227_vm9, %v19851_v58 }
 0x849   : > { %18451 = vmatprep.mubr.msk.f32.mxu0 %vm19849_vm0, %v19850_v41  ;;  %18493 = vmatprep.mubr.msk.f32.mxu1 %vm19849_vm0, %v19850_v41 }
 0x84a   : > { %19170 = vmatprep.subr.bf16.mxu0 %v19848_v40  ;;  %19188 = vmatprep.subr.bf16.mxu1 %v19848_v40 }
 0x8ee   : > { %v11872_v52 = vpop.f32.mrb[22].mxu0  ;;  %v12319_v32 = vpop.f32.mrb[22].mxu1 }
 0x8ef   : > { %v12323_v57 = vmax.f32 %v11872_v52, %v12319_v32  ;;  %v18320_v61 = vpop.f32.mrb[23].mxu0  ;;  %v18362_v17 = vpop.f32.mrb[23].mxu1  ;;  %v14412_v52 = vadd.f32 %v14408_v56, %v14397_v30  ;;  %v14411_v32 = vadd.f32 %v14406_v19, %v14396_v49  ;;  %v14487_v56 = vstv %s16749_s11 }
 0x8f0   : > { %v14432_v61 = vpop.permute.xlu1 %14431  ;;  %v14488_v37 = vmul.f32 %v21443_v18, %v14487_v56 }
 0x8f1   : > { %v12326_v20 = vadd.f32 %v12325_v44, %v12323_v57  ;;  %v14418_v44 = vmul.f32 %v21399_v13, %v14417_v35  ;;  %v14421_v57 = vadd.f32 %v14419_v25, %v14412_v52  ;;  %v14477_v35 = vpop.permute.xlu0 %14476  ;;  %v14489_v52 = vmul.f32 %v21439_v48, %v14487_v56 }
 0x8f3   : > { %v12327_v36 = vmax.f32 %v12326_v20, 0.0  ;;  %v14420_v17 = vadd.f32 %v14418_v44, %v14411_v32  ;;  %v14440_v20 = vstv %s16745_s9 }
 0x8f4   : > { %v14442_v22 = vmul.f32 %v21410_v33, %v14440_v20  ;;  %v14441_v14 = vmul.f32 %v21414_v47, %v14440_v20  ;;  %v14455_v15 = vpop.permute.xlu1 %14454  ;;  %v14466_v47 = vmul.f32 %v21426_v29, %v14464_v51 }
 0x8f5   : > { %16700 = vst.msk [vmem:[%s20442_s23 + $0x28] sm:$0xff] %vm2268_vm10, %v12327_v36  ;;  %v14436_v36 = vadd.f32 %v14432_v61, %v14421_v57  ;;  %v14435_v10 = vadd.f32 %v14430_v59, %v14420_v17  ;;  %v14500_v44 = vpop.permute.xlu0 %14499  ;;  %v14511_v57 = vstv %s16751_s19 }
 0x8f6   : > { %v14513_v17 = vmul.f32 %v21454_v38, %v14511_v57  ;;  %v14512_v20 = vmul.f32 %v21458_v62, %v14511_v57 }
 0x8f7   : > { %v14444_v24 = vadd.f32 %v14442_v22, %v14436_v36  ;;  %v14443_v2 = vadd.f32 %v14441_v14, %v14435_v10 }
 0x8f8   : > { %v14479_v12 = vpop.permute.xlu1 %14478 }
 0x8f9   : > { %v14459_v3 = vadd.f32 %v14455_v15, %v14444_v24  ;;  %v14458_v42 = vadd.f32 %v14453_v6, %v14443_v2  ;;  %v14524_v10 = vpop.permute.xlu0 %14523 }
 0x8fb   : > { %v14468_v50 = vadd.f32 %v14466_v47, %v14459_v3  ;;  %v14467_v30 = vadd.f32 %v14465_v43, %v14458_v42 }
 0x8fc   : > { %v14502_v32 = vpop.permute.xlu1 %14501 }
 0x8fd   : > { %v14483_v19 = vadd.f32 %v14479_v12, %v14468_v50  ;;  %v14482_v29 = vadd.f32 %v14477_v35, %v14467_v30 }
 0x8ff   : > { %v14491_v25 = vadd.f32 %v14489_v52, %v14483_v19  ;;  %v14490_v48 = vadd.f32 %v14488_v37, %v14482_v29 }
 0x900   : > { %v14526_v22 = vpop.permute.xlu1 %14525 }
 0x901   : > { %v14506_v18 = vadd.f32 %v14502_v32, %v14491_v25  ;;  %v14505_v61 = vadd.f32 %v14500_v44, %v14490_v48 }
 0x903   : > { %v14515_v59 = vadd.f32 %v14513_v17, %v14506_v18  ;;  %v14514_v36 = vadd.f32 %v14512_v20, %v14505_v61 }
 0x905   : > { %v14530_v38 = vadd.f32 %v14526_v22, %v14515_v59  ;;  %v14529_v62 = vadd.f32 %v14524_v10, %v14514_v36 }
 0x907   : > { %v14535_v14 = vand.u32 4294901760, %v14530_v38 }
 0x91a   : > { %v12974_v16 = vpop.f32.mrb[24].mxu0  ;;  %v13433_v26 = vpop.f32.mrb[24].mxu1 }
 0x91b   : > { %v13437_v28 = vmax.f32 %v12974_v16, %v13433_v26  ;;  %v18404_v34 = vpop.f32.mrb[25].mxu0  ;;  %v18446_v60 = vpop.f32.mrb[25].mxu1  ;;  %v14532_v16 = vand.u32 4294901760, %v14529_v62  ;;  %v14617_v26 = vsub.f32 %v14530_v38, %v14535_v14 }
 0x91d   : > { %v13439_v13 = vsel %vm440_vm3, %v13437_v28, 0  ;;  %v14610_v28 = vsub.f32 %v14529_v62, %v14532_v16  ;;  %v14618_v34 = vand.u32 4294901760, %v14617_v26  ;;  %v19204_v2 = vpack.c.bf16 %v14535_v14, %v14532_v16 }
 0x91e   : > { %v21606_v53 = vand.u32 4294901760, %v13439_v13 }
 0x91f   : > { %v14611_v60 = vand.u32 4294901760, %v14610_v28  ;;  %v14619_v24 = vsub.f32 %v14617_v26, %v14618_v34 }
 0x920   : > { %v13507_v33 = vsub.f32 %v13439_v13, %v21606_v53 }
 0x921   : > { %v14612_v13 = vsub.f32 %v14610_v28, %v14611_v60  ;;  %v14620_v15 = vand.u32 4294901760, %v14619_v24 }
 0x922   : > { %v13508_v1 = vand.u32 4294901760, %v13507_v33 }
 0x923   : > { %v14613_v51 = vand.u32 4294901760, %v14612_v13 }
 0x924   : > { %v13509_v27 = vsub.f32 %v13507_v33, %v13508_v1 }
 0x925   : > { %v19207_v6 = vpack.c.bf16 %v14620_v15, %v14613_v51 }
 0x926   : > { %v13510_v49 = vand.u32 4294901760, %v13509_v27 }
 0x928   : > { %18452 = vmatmul.mubr.f32.vlgmr.msra.gmra.mrb[26].mxu0 %v13510_v49  ;;  %18494 = vmatmul.mubr.f32.vlgmr.msra.gmra.mrb[26].mxu1 %v13510_v49 }
 0x929   : > { %19172 = vmatpush3.bf16.msra.mxu0 %v20237_v63  ;;  %19190 = vmatpush3.bf16.msra.mxu1 %v20239_v0 }
 0x92a   : > { %18458 = vmatprep.mubr.msk.f32.mxu0 %vm19849_vm0, %v19850_v41  ;;  %18500 = vmatprep.mubr.msk.f32.mxu1 %vm19849_vm0, %v19850_v41 }
 0x92b   : > { %19173 = vmatprep.subr.bf16.mxu0 %v19848_v40  ;;  %19191 = vmatprep.subr.bf16.mxu1 %v19848_v40 }
 0x930   : > { %18459 = vmatmul.mubr.f32.vlgmr.msra.gmra.mrb[26].mxu0 %v21606_v53  ;;  %18501 = vmatmul.mubr.f32.vlgmr.msra.gmra.mrb[26].mxu1 %v21606_v53 }
 0x931   : > { %19175 = vmatpush3.bf16.msra.mxu0 %v20241_v4  ;;  %19193 = vmatpush3.bf16.msra.mxu1 %v20243_v5 }
 0x932   : > { %18465 = vmatprep.mubr.msk.f32.mxu0 %vm19849_vm0, %v19850_v41  ;;  %18507 = vmatprep.mubr.msk.f32.mxu1 %vm19849_vm0, %v19850_v41 }
 0x933   : > { %19176 = vmatprep.subr.bf16.mxu0 %v19848_v40  ;;  %19194 = vmatprep.subr.bf16.mxu1 %v19848_v40 }
 0x938   : > { %18466 = vmatmul.mubr.f32.vlgmr.msra.gmra.mrb[26].mxu0 %v13507_v33  ;;  %18508 = vmatmul.mubr.f32.vlgmr.msra.gmra.mrb[26].mxu1 %v13507_v33 }
 0x939   : > { %19178 = vmatpush3.bf16.msk.msra.mxu0 %vm20217_vm7, %v19851_v58  ;;  %19196 = vmatpush3.bf16.msk.msra.mxu1 %vm20227_vm9, %v19851_v58 }
 0x93a   : > { %18472 = vmatprep.mubr.msk.f32.mxu0 %vm19849_vm0, %v19850_v41  ;;  %18514 = vmatprep.mubr.msk.f32.mxu1 %vm19849_vm0, %v19850_v41 }
 0x93b   : > { %19179 = vmatprep.subr.bf16.mxu0 %v19848_v40  ;;  %19197 = vmatprep.subr.bf16.mxu1 %v19848_v40 }
 0x940   : > { %18473 = vmatmul.mubr.f32.vlgmr.msra.gmra.mrb[26].mxu0 %v13508_v1  ;;  %18515 = vmatmul.mubr.f32.vlgmr.msra.gmra.mrb[26].mxu1 %v13508_v1 }
 0x941   : > { %19181 = vmatpush3.bf16.msra.mxu0 %v20245_v9  ;;  %19199 = vmatpush3.bf16.msra.mxu1 %v20247_v11 }
 0x942   : > { %18479 = vmatprep.mubr.msk.f32.mxu0 %vm19849_vm0, %v19850_v41  ;;  %18521 = vmatprep.mubr.msk.f32.mxu1 %vm19849_vm0, %v19850_v41 }
 0x943   : > { %19182 = vmatprep.subr.bf16.mxu0 %v19848_v40  ;;  %19200 = vmatprep.subr.bf16.mxu1 %v19848_v40 }
 0x948   : > { %18480 = vmatmul.mubr.f32.vlgmr.msra.gmra.mrb[26].mxu0 %v21606_v53  ;;  %18522 = vmatmul.mubr.f32.vlgmr.msra.gmra.mrb[26].mxu1 %v21606_v53 }
 0x949   : > { %19184 = vmatpush3.bf16.msk.msra.mxu0 %vm20217_vm7, %v19851_v58  ;;  %19202 = vmatpush3.bf16.msk.msra.mxu1 %vm20227_vm9, %v19851_v58 }
 0x94a   : > { %18486 = vmatprep.mubr.msk.f32.mxu0 %vm19849_vm0, %v19850_v41  ;;  %18528 = vmatprep.mubr.msk.f32.mxu1 %vm19849_vm0, %v19850_v41 }
 0x94b   : > { %19203 = vmatprep.subr.bf16.mxu0 %v19848_v40  ;;  %19221 = vmatprep.subr.bf16.mxu1 %v19848_v40 }
 0x950   : > { %18487 = vmatmul.mubr.f32.vlgmr.msra.gmra.mrb[26].mxu0 %v21606_v53  ;;  %18529 = vmatmul.mubr.f32.vlgmr.msra.gmra.mrb[26].mxu1 %v21606_v53  ;;  %v19210_v53 = vpack.c.bf16 %v14617_v26, %v14610_v28 }
 0x951   : > { %19205 = vmatpush3.bf16.msra.mxu0 %v19204_v2  ;;  %19223 = vmatpush3.bf16.msra.mxu1 %v19204_v2 }
 0x952   : > { %18535 = vmatprep.mubr.msk.f32.mxu0 %vm19849_vm0, %v19850_v41  ;;  %18577 = vmatprep.mubr.msk.f32.mxu1 %vm19849_vm0, %v19850_v41 }
 0x953   : > { %19206 = vmatprep.subr.bf16.mxu0 %v19848_v40  ;;  %19224 = vmatprep.subr.bf16.mxu1 %v19848_v40 }
 0x954   : > { %18536 = vmatmul.mubr.f32.vlgmr.msra.gmra.mrb[28].mxu0 %v20155_v7  ;;  %18578 = vmatmul.mubr.f32.vlgmr.msra.gmra.mrb[28].mxu1 %v20157_v8  ;;  %v19216_v7 = vpack.c.bf16 %v14618_v34, %v14611_v60 }
 0x955   : > { %19208 = vmatpush3.bf16.msra.mxu0 %v19207_v6  ;;  %19226 = vmatpush3.bf16.msra.mxu1 %v19207_v6 }
 0x956   : > { %18542 = vmatprep.mubr.msk.f32.mxu0 %vm19849_vm0, %v19850_v41  ;;  %19209 = vmatprep.subr.bf16.mxu0 %v19848_v40 }
 0x957   : > { %18584 = vmatprep.mubr.msk.f32.mxu1 %vm19849_vm0, %v19850_v41  ;;  %19227 = vmatprep.subr.bf16.mxu1 %v19848_v40 }
 0x95c   : > { %18543 = vmatmul.mubr.msk.f32.vlgmr.msra.gmra.mrb[28].mxu0 %vm440_vm3, %v20129_v21  ;;  %18585 = vmatmul.mubr.msk.f32.vlgmr.msra.gmra.mrb[28].mxu1 %vm440_vm3, %v20132_v23 }
 0x95d   : > { %19211 = vmatpush3.bf16.msra.mxu0 %v19210_v53  ;;  %19229 = vmatpush3.bf16.msra.mxu1 %v19210_v53 }
 0x95e   : > { %18549 = vmatprep.mubr.msk.f32.mxu0 %vm19849_vm0, %v19850_v41  ;;  %19212 = vmatprep.subr.bf16.mxu0 %v19848_v40 }
 0x95f   : > { %18591 = vmatprep.mubr.msk.f32.mxu1 %vm19849_vm0, %v19850_v41  ;;  %19230 = vmatprep.subr.bf16.mxu1 %v19848_v40 }
 0x964   : > { %18550 = vmatmul.mubr.f32.vlgmr.msra.gmra.mrb[28].mxu0 %v20140_v45  ;;  %18592 = vmatmul.mubr.f32.vlgmr.msra.gmra.mrb[28].mxu1 %v20142_v46  ;;  %v14337_v45 = vstv %s16735_s21 }
 0x965   : > { %19214 = vmatpush3.bf16.msra.mxu0 %v19204_v2  ;;  %19232 = vmatpush3.bf16.msra.mxu1 %v19204_v2 }
 0x966   : > { %18556 = vmatprep.mubr.msk.f32.mxu0 %vm19849_vm0, %v19850_v41  ;;  %19215 = vmatprep.subr.bf16.mxu0 %v19848_v40 }
 0x967   : > { %18598 = vmatprep.mubr.msk.f32.mxu1 %vm19849_vm0, %v19850_v41  ;;  %19233 = vmatprep.subr.bf16.mxu1 %v19848_v40 }
 0x96c   : > { %18557 = vmatmul.mubr.f32.vlgmr.msra.gmra.mrb[28].mxu0 %v20146_v54  ;;  %18599 = vmatmul.mubr.f32.vlgmr.msra.gmra.mrb[28].mxu1 %v20149_v55 }
 0x96d   : > { %19217 = vmatpush3.bf16.msra.mxu0 %v19216_v7  ;;  %19235 = vmatpush3.bf16.msra.mxu1 %v19216_v7 }
 0x96e   : > { %18563 = vmatprep.mubr.msk.f32.mxu0 %vm19849_vm0, %v19850_v41  ;;  %19218 = vmatprep.subr.bf16.mxu0 %v19848_v40 }
 0x96f   : > { %18605 = vmatprep.mubr.msk.f32.mxu1 %vm19849_vm0, %v19850_v41  ;;  %19236 = vmatprep.subr.bf16.mxu1 %v19848_v40 }
 0x974   : > { %18564 = vmatmul.mubr.msk.f32.vlgmr.msra.gmra.mrb[28].mxu0 %vm440_vm3, %v20129_v21  ;;  %18606 = vmatmul.mubr.msk.f32.vlgmr.msra.gmra.mrb[28].mxu1 %vm440_vm3, %v20132_v23 }
 0x975   : > { %19220 = vmatpush3.bf16.msra.mxu0 %v19204_v2  ;;  %19238 = vmatpush3.bf16.msra.mxu1 %v19204_v2 }
 0x976   : > { %18570 = vmatprep.mubr.msk.f32.mxu0 %vm19849_vm0, %v19850_v41  ;;  %18612 = vmatprep.mubr.msk.f32.mxu1 %vm19849_vm0, %v19850_v41 }
 0x977   : > { %19239 = vmatprep.subr.bf16.mxu0 %v19848_v40  ;;  %19257 = vmatprep.subr.bf16.mxu1 %v19848_v40 }
 0x97c   : > { %18571 = vmatmul.mubr.msk.f32.vlgmr.msra.gmra.mrb[28].mxu0 %vm440_vm3, %v20129_v21  ;;  %18613 = vmatmul.mubr.msk.f32.vlgmr.msra.gmra.mrb[28].mxu1 %vm440_vm3, %v20132_v23 }
 0x97d   : > { %19241 = vmatpush3.bf16.msk.msra.mxu0 %vm20217_vm7, %v19851_v58  ;;  %19259 = vmatpush3.bf16.msk.msra.mxu1 %vm20227_vm9, %v19851_v58 }
 0x97e   : > { %18619 = vmatprep.mubr.msk.f32.mxu0 %vm19849_vm0, %v19850_v41  ;;  %18661 = vmatprep.mubr.msk.f32.mxu1 %vm19849_vm0, %v19850_v41 }
 0x97f   : > { %19242 = vmatprep.subr.bf16.mxu0 %v19848_v40  ;;  %19260 = vmatprep.subr.bf16.mxu1 %v19848_v40 }
 0xa23   : > { %v13884_v21 = vpop.f32.mrb[26].mxu0  ;;  %v14331_v23 = vpop.f32.mrb[26].mxu1 }
 0xa24   : > { %v14335_v46 = vmax.f32 %v13884_v21, %v14331_v23  ;;  %v18488_v54 = vpop.f32.mrb[27].mxu0  ;;  %v18530_v55 = vpop.f32.mrb[27].mxu1 }
 0xa26   : > { %v14338_v8 = vadd.f32 %v14337_v45, %v14335_v46 }
 0xa28   : > { %v14339_v33 = vmax.f32 %v14338_v8, 0.0 }
 0xa2a   : > { %16736 = vst.msk [vmem:[%s20442_s23 + $0x30] sm:$0xff] %vm2268_vm10, %v14339_v33 }
 0xa4f   : > { %v14986_v3 = vpop.f32.mrb[28].mxu0  ;;  %v15445_v47 = vpop.f32.mrb[28].mxu1 }
 0xa50   : > { %v15449_v42 = vmax.f32 %v14986_v3, %v15445_v47  ;;  %v18572_v43 = vpop.f32.mrb[29].mxu0  ;;  %v18614_v1 = vpop.f32.mrb[29].mxu1 }
 0xa52   : > { %v15451_v27 = vsel %vm440_vm3, %v15449_v42, 0 }
 0xa53   : > { %v15518_v50 = vand.u32 4294901760, %v15451_v27 }
 0xa55   : > { %v15519_v12 = vsub.f32 %v15451_v27, %v15518_v50 }
 0xa57   : > { %v15520_v30 = vand.u32 4294901760, %v15519_v12 }
 0xa59   : > { %v15521_v56 = vsub.f32 %v15519_v12, %v15520_v30 }
 0xa5b   : > { %v15522_v49 = vand.u32 4294901760, %v15521_v56 }
 0xa5d   : > { %18620 = vmatmul.mubr.f32.vlgmr.msra.gmra.mrb[30].mxu0 %v15522_v49  ;;  %18662 = vmatmul.mubr.f32.vlgmr.msra.gmra.mrb[30].mxu1 %v15522_v49 }
 0xa5e   : > { %19244 = vmatpush3.bf16.msra.mxu0 %v20237_v63  ;;  %19262 = vmatpush3.bf16.msra.mxu1 %v20239_v0 }
 0xa5f   : > { %18626 = vmatprep.mubr.msk.f32.mxu0 %vm19849_vm0, %v19850_v41  ;;  %18668 = vmatprep.mubr.msk.f32.mxu1 %vm19849_vm0, %v19850_v41 }
 0xa60   : > { %19245 = vmatprep.subr.bf16.mxu0 %v19848_v40  ;;  %19263 = vmatprep.subr.bf16.mxu1 %v19848_v40 }
 0xa65   : > { %18627 = vmatmul.mubr.f32.vlgmr.msra.gmra.mrb[30].mxu0 %v15518_v50  ;;  %18669 = vmatmul.mubr.f32.vlgmr.msra.gmra.mrb[30].mxu1 %v15518_v50 }
 0xa66   : > { %19247 = vmatpush3.bf16.msra.mxu0 %v20241_v4  ;;  %19265 = vmatpush3.bf16.msra.mxu1 %v20243_v5 }
 0xa67   : > { %18633 = vmatprep.mubr.msk.f32.mxu0 %vm19849_vm0, %v19850_v41  ;;  %18675 = vmatprep.mubr.msk.f32.mxu1 %vm19849_vm0, %v19850_v41 }
 0xa68   : > { %19248 = vmatprep.subr.bf16.mxu0 %v19848_v40  ;;  %19266 = vmatprep.subr.bf16.mxu1 %v19848_v40 }
 0xa6d   : > { %18634 = vmatmul.mubr.f32.vlgmr.msra.gmra.mrb[30].mxu0 %v15519_v12  ;;  %18676 = vmatmul.mubr.f32.vlgmr.msra.gmra.mrb[30].mxu1 %v15519_v12 }
 0xa6e   : > { %19250 = vmatpush3.bf16.msk.msra.mxu0 %vm20217_vm7, %v19851_v58  ;;  %19268 = vmatpush3.bf16.msk.msra.mxu1 %vm20227_vm9, %v19851_v58 }
 0xa6f   : > { %18640 = vmatprep.mubr.msk.f32.mxu0 %vm19849_vm0, %v19850_v41  ;;  %18682 = vmatprep.mubr.msk.f32.mxu1 %vm19849_vm0, %v19850_v41 }
 0xa70   : > { %19251 = vmatprep.subr.bf16.mxu0 %v19848_v40  ;;  %19269 = vmatprep.subr.bf16.mxu1 %v19848_v40 }
 0xa75   : > { %18641 = vmatmul.mubr.f32.vlgmr.msra.gmra.mrb[30].mxu0 %v15520_v30  ;;  %18683 = vmatmul.mubr.f32.vlgmr.msra.gmra.mrb[30].mxu1 %v15520_v30 }
 0xa76   : > { %19253 = vmatpush3.bf16.msra.mxu0 %v20245_v9  ;;  %19271 = vmatpush3.bf16.msra.mxu1 %v20247_v11 }
 0xa77   : > { %18647 = vmatprep.mubr.msk.f32.mxu0 %vm19849_vm0, %v19850_v41  ;;  %18689 = vmatprep.mubr.msk.f32.mxu1 %vm19849_vm0, %v19850_v41 }
 0xa78   : > { %19254 = vmatprep.subr.bf16.mxu0 %v19848_v40  ;;  %19272 = vmatprep.subr.bf16.mxu1 %v19848_v40 }
 0xa7d   : > { %18648 = vmatmul.mubr.f32.vlgmr.msra.gmra.mrb[30].mxu0 %v15518_v50  ;;  %18690 = vmatmul.mubr.f32.vlgmr.msra.gmra.mrb[30].mxu1 %v15518_v50 }
 0xa7e   : > { %19256 = vmatpush3.bf16.msk.msra.mxu0 %vm20217_vm7, %v19851_v58  ;;  %19274 = vmatpush3.bf16.msk.msra.mxu1 %vm20227_vm9, %v19851_v58 }
 0xa7f   : > { %18654 = vmatprep.mubr.msk.f32.mxu0 %vm19849_vm0, %v19850_v41  ;;  %18696 = vmatprep.mubr.msk.f32.mxu1 %vm19849_vm0, %v19850_v41 }
 0xa85   : > { %18655 = vmatmul.mubr.f32.vlgmr.msra.gmra.mrb[30].mxu0 %v15518_v50  ;;  %18697 = vmatmul.mubr.f32.vlgmr.msra.gmra.mrb[30].mxu1 %v15518_v50 }
 0xb58   : > { %v15896_v40 = vpop.f32.mrb[30].mxu0  ;;  %v16343_v63 = vpop.f32.mrb[30].mxu1 }
 0xb59   : > { %v16347_v0 = vmax.f32 %v15896_v40, %v16343_v63  ;;  %v18656_v4 = vpop.f32.mrb[31].mxu0  ;;  %v18698_v5 = vpop.f32.mrb[31].mxu1 }
 0xb5b   : > { %v16350_v58 = vadd.f32 %v16349_v31, %v16347_v0 }
 0xb5d   : > { %v16351_v41 = vmax.f32 %v16350_v58, 0.0 }
 0xb5f   : > { %16772 = vst.msk [vmem:[%s20442_s23 + $0x38] sm:$0xff] %vm2268_vm10, %v16351_v41 }
 0xb60   : > { %19770 = shalt.err (!%p19767_p9)
}
 0xb61   : > { %s19771_s18 = scalar_lea.hbm %s21789_s4, 1024  ;;  %s19775_s10 = scalar_lea.hbm %s21846_s3, 2048 }
 0xb62   : > { %p19772_p12 = scmp.ne.s32.totalorder %s21789_s4, %s19771_s18  ;;  %p19776_p3 = scmp.lt.u32.totalorder %s21789_s4, %s21846_s3 }
 0xb63   : > { %p19777_p5 = scmp.lt.u32.totalorder %s19775_s10, %s19771_s18  ;;  %p19779_p8 = scmp.lt.u32.totalorder %s19771_s18, %s21789_s4 }
 0xb64   : > { %p19773_p0 = pnand %p19772_p12, %p21862_p10 }
 0xb65   : > { %p19778_p4 = por %p19777_p5, %p19776_p3 }
 0xb66   : > { %p19774_p2 = pneg %p19773_p0 }
 0xb67   : > { %p19780_p11 = por %p19779_p8, %p19778_p4 }
 0xb69   : > { %p19781_p13 = pnand %p19780_p11, %p19774_p2 }
 0xb6b   : > { %19784 = shalt.err (!%p19781_p13)
}
 0xb6c   : > { %s19853_s21 = smov 128   ;;  %s19854_s26 = smov 8  }
 0xb6d   : > { %19604 = dma.vmem_to_hbm [thread:$0]  (%p21862_p10), %s21791_s29, 1024, %s21789_s4, %s21797_s5, %s19853_s21, %s19853_s21, %s19854_s26  }
 0xb6e PF: > { %p19621_p1 = scmp.ge.s32.totalorder %s19843_s17, 2  ;;  %s16385_s28 = sand.u32 1, %s19823_s12  }
 0xb6f   : > { %p21863_p6 = scmp.ne.s32.totalorder %s21852_s24, 0  ;;  %s16386_s27 = scalar_lea.sflag [#allocation3], %s16385_s28 }
 0xb71   : > { %p19614_p7 = pnand %p19621_p1, %p21863_p6 }
 0xb73   : > { %19818 = dma.done.wait (!%p19614_p7), %s16386_s27, 1024  }
 0xb74   : > { %19820 = vsyncadd (!%p19614_p7), %s16386_s27, 4294966272  ;;  %s18_s17 = sadd.s32 1, %s19843_s17   ;;  %s21864_s12 = smov %s19827_s13 }
 0xb75   : > { %p15_p9 = scmp.ge.s32.totalorder %s18_s17, 4   ;;  %s21865_s13 = smov %s19831_s14 }
 0xb76   : > { %s21866_s14 = smov %s19928_s25  ;;  %s21867_s15 = smov %s19839_s16 }
 0xb77   : > { %s21868_s16 = smov %s21870_s20  ;;  %17 = sbr.rel (!%p15_p9) target bundleno = 6 (0x6), region = 86 }
 0xb7e   :  { %16391 = vsyncpa [#allocation3], 1 }
 0xb7f   :  { %16393 = vsyncpa [#allocation3 + $0x1], 1 }
 0xb80   :  { %16394 = vsyncpa [#allocation4], 1 }
 0xb81   :  { %16396 = vsyncpa [#allocation4 + $0x1], 1 }
 0xb82   :  { %16397 = vsyncpa [#allocation6], 1 }

</bundles_post_ra>
